<compile_context>
chip_gen: v6e
topology: v6e:2x2x1
jax: 0.10.0
libtpu: 0.0.40
codegen_flags: <defaults>
</compile_context>

<pallas_src>
import functools

import jax
import jax.numpy as jnp
from jax import lax
from jax.experimental import pallas as pl
from jax.experimental.pallas import tpu as pltpu

MAX_LENGTH = 10
SOS_TOKEN = 0


def _round_up(x, m):
    return ((x + m - 1) // m) * m


def _decoder_kernel(h0_ref, g_ref, w_out_ref, b_out_ref, logp_ref, h_out_ref,
                    *, B, Hp, Vp):
    bf16 = jnp.bfloat16

    # Small hoists only (1 vreg each); the big weights (G, W_out) are read at
    # their dot sites so they never occupy long live ranges.
    lane_iota = lax.broadcasted_iota(jnp.int32, (B, Vp), 1)        # (B, Vp)
    b_out = jnp.broadcast_to(b_out_ref[...], (B, Vp))              # (B, Vp) f32

    h = h0_ref[...]                                                # (B, Hp) f32
    idx = jnp.full((B, 1), SOS_TOKEN, dtype=jnp.int32)             # (B, 1)

    for t in range(MAX_LENGTH):        # static unroll (MAX_LENGTH == 10)
        # --- fused gates: [onehot | h] @ G -> [r_sum, z_sum, i_n, hn+b_hn] ---
        onehot = (lane_iota == idx).astype(bf16)                   # (B, Vp)
        lhs = jnp.concatenate([onehot, h.astype(bf16)], axis=-1)   # (B, Vp+Hp)
        gates = jnp.dot(lhs, g_ref[...],
                        preferred_element_type=jnp.float32)        # (B, 4Hp)

        r = jax.nn.sigmoid(gates[:, 0 * Hp:1 * Hp])
        z = jax.nn.sigmoid(gates[:, 1 * Hp:2 * Hp])
        n = jnp.tanh(gates[:, 2 * Hp:3 * Hp] + r * gates[:, 3 * Hp:4 * Hp])
        h = (1.0 - z) * n + z * h                                  # (B, Hp) f32

        # --- output projection (padded vocab lanes biased to -1e30) ---
        logits = jnp.dot(h.astype(bf16), w_out_ref[...],
                         preferred_element_type=jnp.float32) + b_out   # (B, Vp)

        # --- greedy argmax (first-max tie-break, like torch.topk) feeds t+1 ---
        m = jnp.max(logits, axis=-1, keepdims=True)
        idx = jnp.min(jnp.where(logits == m, lane_iota, Vp),
                      axis=-1, keepdims=True).astype(jnp.int32)

        # --- log_softmax (off the feedback chain); full-tile time-major store ---
        lse = m + jnp.log(jnp.sum(jnp.exp(logits - m), axis=-1, keepdims=True))
        logp_ref[t] = logits - lse

    h_out_ref[...] = h


def _build_fused_params(params, H, V, Hp, Vp):
    """Pre-fuse relu(emb)@W_ih + biases with W_hh into one padded gate matrix."""
    f32, bf16 = jnp.float32, jnp.bfloat16
    emb = params["emb"]                       # (V, H)
    W_ih = params["w_ih_t"]                   # (H, 3H)  gate order r,z,n
    W_hh = params["w_hh_t"]                   # (H, 3H)
    b_ih = params["b_ih"][0]                  # (3H,)
    b_hh = params["b_hh"][0]                  # (3H,)

    # E = relu(emb) @ W_ih, same bf16/f32-accum quantization the kernel used.
    x = jnp.maximum(emb, 0.0).astype(bf16)
    e = jnp.dot(x, W_ih.astype(bf16), preferred_element_type=f32)   # (V, 3H)

    # Fused gate matrix: rows = [onehot lanes (Vp) | hidden lanes (Hp)],
    # column blocks = [r_sum, z_sum, i_n, h_n + b_hn], each Hp wide.
    # One-hot rows sum to exactly 1, so biases folded into them apply once.
    G = jnp.zeros((Vp + Hp, 4 * Hp), f32)
    G = G.at[:V, 0 * Hp:0 * Hp + H].set(
        e[:, 0 * H:1 * H] + b_ih[0 * H:1 * H] + b_hh[0 * H:1 * H])        # r
    G = G.at[:V, 1 * Hp:1 * Hp + H].set(
        e[:, 1 * H:2 * H] + b_ih[1 * H:2 * H] + b_hh[1 * H:2 * H])        # z
    G = G.at[:V, 2 * Hp:2 * Hp + H].set(
        e[:, 2 * H:3 * H] + b_ih[2 * H:3 * H])                            # i_n
    G = G.at[:V, 3 * Hp:3 * Hp + H].set(
        jnp.broadcast_to(b_hh[2 * H:3 * H], (V, H)))                      # b_hn
    G = G.at[Vp:Vp + H, 0 * Hp:0 * Hp + H].set(W_hh[:, 0 * H:1 * H])      # W_hr
    G = G.at[Vp:Vp + H, 1 * Hp:1 * Hp + H].set(W_hh[:, 1 * H:2 * H])      # W_hz
    G = G.at[Vp:Vp + H, 3 * Hp:3 * Hp + H].set(W_hh[:, 2 * H:3 * H])      # W_hn
    G = G.astype(bf16)

    w_out = jnp.zeros((Hp, Vp), f32).at[:H, :V].set(params["w_out_t"]).astype(bf16)
    # Padded vocab lanes carry a huge negative bias -> never win max/argmax,
    # exp() underflows to exactly 0 in the log_softmax sum.
    b_out = jnp.full((1, Vp), -1e30, f32).at[:, :V].set(params["b_out"])
    return G, w_out, b_out


def decoder_rnn_forward(encoder_outputs, encoder_hidden, params):
    """Pallas equivalent of DecoderRNN.forward(encoder_outputs, encoder_hidden).

    encoder_outputs: (B, S, H) float32   (only its batch dim is used, as in torch)
    encoder_hidden : (1, B, H) float32
    Returns (log_probs (B, MAX_LENGTH, V), hidden (1, B, H), None)
    """
    B = encoder_outputs.shape[0]
    H = encoder_hidden.shape[-1]
    V = params["emb"].shape[0]

    Bp = _round_up(B, 8)          # sublane multiple
    Hp = _round_up(H, 128)        # lane multiple
    Vp = _round_up(V, 128)        # lane multiple

    G, w_out_p, b_out_p = _build_fused_params(params, H, V, Hp, Vp)
    h0 = jnp.zeros((Bp, Hp), jnp.float32).at[:B, :H].set(
        encoder_hidden[0].astype(jnp.float32))

    kernel = functools.partial(_decoder_kernel, B=Bp, Hp=Hp, Vp=Vp)
    vmem = pl.BlockSpec(memory_space=pltpu.MemorySpace.VMEM)

    logp_pad, h_pad = pl.pallas_call(
        kernel,
        out_shape=(
            jax.ShapeDtypeStruct((MAX_LENGTH, Bp, Vp), jnp.float32),  # time-major
            jax.ShapeDtypeStruct((Bp, Hp), jnp.float32),
        ),
        in_specs=[vmem] * 4,
        out_specs=(vmem, vmem),
        compiler_params=pltpu.CompilerParams(
            # Resident weights + outputs are < 1 MiB at demo sizes; keep a safe
            # explicit limit (>= v5e's 16 MiB default) so larger configs don't
            # silently hit the scoped-VMEM ceiling.
            vmem_limit_bytes=32 * 1024 * 1024),
    )(h0, G, w_out_p, b_out_p)

    decoder_outputs = jnp.transpose(logp_pad, (1, 0, 2))[:B, :, :V]  # (B, T, V)
    decoder_hidden = h_pad[:B, :H][None]                             # (1, B, H)
    return decoder_outputs, decoder_hidden, None


def init_params(key, hidden_size, output_size):
    """Deterministic synthetic parameters (PyTorch-style uniform init)."""
    H, V = hidden_size, output_size
    k = 1.0 / jnp.sqrt(jnp.float32(H))
    keys = jax.random.split(key, 7)
    u = lambda kk, shape: jax.random.uniform(kk, shape, jnp.float32, -k, k)
    # Stored already transposed for row-major x @ W layouts in the kernel.
    return {
        "emb":     jax.random.normal(keys[0], (V, H), jnp.float32),
        "w_ih_t":  u(keys[1], (H, 3 * H)),     # weight_ih_l0.T  (gates r,z,n)
        "w_hh_t":  u(keys[2], (H, 3 * H)),     # weight_hh_l0.T
        "b_ih":    u(keys[3], (1, 3 * H)),
        "b_hh":    u(keys[4], (1, 3 * H)),
        "w_out_t": u(keys[5], (H, V)),         # out.weight.T
        "b_out":   u(keys[6], (1, V)),
    }


def _reference(encoder_hidden, params, B, H, V):
    """Pure-JAX greedy decode using the EXACT same fused/quantized matrices."""
    Bp, Hp, Vp = _round_up(B, 8), _round_up(H, 128), _round_up(V, 128)
    bf16 = jnp.bfloat16
    G, w_out_p, b_out_p = _build_fused_params(params, H, V, Hp, Vp)

    h = jnp.zeros((Bp, Hp), jnp.float32).at[:B, :H].set(encoder_hidden[0])
    idx = jnp.full((Bp, 1), SOS_TOKEN, jnp.int32)
    lane_iota = jnp.arange(Vp, dtype=jnp.int32)[None, :]
    outs = []
    for _ in range(MAX_LENGTH):
        onehot = (lane_iota == idx).astype(bf16)
        lhs = jnp.concatenate([onehot, h.astype(bf16)], axis=-1)
        gates = jnp.dot(lhs, G, preferred_element_type=jnp.float32)
        r = jax.nn.sigmoid(gates[:, :Hp])
        z = jax.nn.sigmoid(gates[:, Hp:2 * Hp])
        n = jnp.tanh(gates[:, 2 * Hp:3 * Hp] + r * gates[:, 3 * Hp:])
        h = (1.0 - z) * n + z * h
        logits = jnp.dot(h.astype(bf16), w_out_p,
                         preferred_element_type=jnp.float32) + b_out_p
        outs.append(jax.nn.log_softmax(logits, axis=-1))
        idx = jnp.argmax(logits, axis=-1, keepdims=True).astype(jnp.int32)
    logp = jnp.stack(outs, axis=1)                         # (Bp, T, Vp)
    return logp[:B, :, :V], h[:B, :H][None]


if __name__ == "__main__":
    B, S, H, V = 2, 8, 32, 16

    key = jax.random.PRNGKey(0)
    k_params, k_enc_out, k_enc_hid = jax.random.split(key, 3)

    params = init_params(k_params, H, V)
    encoder_outputs = jax.random.normal(k_enc_out, (B, S, H), jnp.float32)
    encoder_hidden = jax.random.normal(k_enc_hid, (1, B, H), jnp.float32)

    log_probs, hidden, _ = decoder_rnn_forward(encoder_outputs, encoder_hidden,
                                               params)
    jax.block_until_ready((log_probs, hidden))

    assert log_probs.shape == (B, MAX_LENGTH, V)
    assert hidden.shape == (1, B, H)
    # log_softmax rows must sum to ~1 in prob space.
    assert jnp.allclose(jnp.sum(jnp.exp(log_probs), axis=-1), 1.0, atol=1e-4)

    # Full 10-step greedy trajectory (including argmax feedback) vs a pure-JAX
    # reference built from the exact same fused bf16-quantized matrices.
    ref_logp, ref_hidden = _reference(encoder_hidden, params, B, H, V)
    assert jnp.allclose(log_probs, ref_logp, atol=2e-3, rtol=2e-3)
    assert jnp.allclose(hidden, ref_hidden, atol=2e-3, rtol=2e-3)

    print("KERNEL_OK")
</pallas_src>

<mosaic_0001>
module attributes {stable_mosaic.version = 11 : i64} {
  func.func @_decoder_kernel(%arg0: memref<8x128xf32, #tpu.memory_space<vmem>>, %arg1: memref<256x512xbf16, #tpu.memory_space<vmem>>, %arg2: memref<128x128xbf16, #tpu.memory_space<vmem>>, %arg3: memref<1x128xf32, #tpu.memory_space<vmem>>, %arg4: memref<10x8x128xf32, #tpu.memory_space<vmem>>, %arg5: memref<8x128xf32, #tpu.memory_space<vmem>>) attributes {dimension_semantics = [], scalar_prefetch = 0 : i64, scratch_operands = 0 : i64, tpu.core_type = #tpu.core_type<tc>} {
    %0 = tpu.iota {dimensions = array<i32: 1>} : vector<8x128xi32>
    %c0 = arith.constant 0 : index
    %c0_0 = arith.constant 0 : index
    %1 = vector.load %arg3[%c0, %c0_0] : memref<1x128xf32, #tpu.memory_space<vmem>>, vector<1x128xf32>
    %2 = vector.shape_cast %1 : vector<1x128xf32> to vector<1x128xf32>
    %3 = vector.broadcast %2 : vector<1x128xf32> to vector<8x128xf32>
    %c0_1 = arith.constant 0 : index
    %c0_2 = arith.constant 0 : index
    %4 = vector.load %arg0[%c0_1, %c0_2] : memref<8x128xf32, #tpu.memory_space<vmem>>, vector<8x128xf32>
    %c0_i32 = arith.constant 0 : i32
    %5 = vector.broadcast %c0_i32 : i32 to vector<8x1xi32>
    %6 = vector.broadcast %5 : vector<8x1xi32> to vector<8x128xi32>
    %7 = arith.cmpi eq, %0, %6 : vector<8x128xi32>
    %8 = arith.extui %7 : vector<8x128xi1> to vector<8x128xi32>
    %9 = arith.sitofp %8 : vector<8x128xi32> to vector<8x128xf32>
    %10 = arith.truncf %9 : vector<8x128xf32> to vector<8x128xbf16>
    %11 = arith.truncf %4 : vector<8x128xf32> to vector<8x128xbf16>
    %12 = tpu.concatenate %10, %11 in 1 : vector<8x128xbf16>, vector<8x128xbf16> -> vector<8x256xbf16>
    %c0_3 = arith.constant 0 : index
    %c0_4 = arith.constant 0 : index
    %13 = vector.load %arg1[%c0_3, %c0_4] : memref<256x512xbf16, #tpu.memory_space<vmem>>, vector<256x512xbf16>
    %cst = arith.constant dense<0.000000e+00> : vector<8x512xf32>
    %14 = tpu.matmul %12, %13, %cst {dimension_numbers = #tpu.dot_dimension_numbers<[1], [0], [0], [1], [0, 0, 1, 1], [], []>} : vector<8x256xbf16>, vector<256x512xbf16>, vector<8x512xf32> -> vector<8x512xf32>
    %15 = vector.extract_strided_slice %14 {offsets = [0, 0], sizes = [8, 128], strides = [1, 1]} : vector<8x512xf32> to vector<8x128xf32>
    %16 = arith.negf %15 : vector<8x128xf32>
    %17 = math.exp %16 : vector<8x128xf32>
    %cst_5 = arith.constant 1.000000e+00 : f32
    %18 = vector.broadcast %cst_5 : f32 to vector<8x128xf32>
    %19 = arith.addf %18, %17 : vector<8x128xf32>
    %20 = arith.divf %18, %19 : vector<8x128xf32>
    %21 = vector.extract_strided_slice %14 {offsets = [0, 128], sizes = [8, 128], strides = [1, 1]} : vector<8x512xf32> to vector<8x128xf32>
    %22 = arith.negf %21 : vector<8x128xf32>
    %23 = math.exp %22 : vector<8x128xf32>
    %cst_6 = arith.constant 1.000000e+00 : f32
    %24 = vector.broadcast %cst_6 : f32 to vector<8x128xf32>
    %25 = arith.addf %24, %23 : vector<8x128xf32>
    %26 = arith.divf %24, %25 : vector<8x128xf32>
    %27 = vector.extract_strided_slice %14 {offsets = [0, 256], sizes = [8, 128], strides = [1, 1]} : vector<8x512xf32> to vector<8x128xf32>
    %28 = vector.extract_strided_slice %14 {offsets = [0, 384], sizes = [8, 128], strides = [1, 1]} : vector<8x512xf32> to vector<8x128xf32>
    %29 = arith.mulf %20, %28 : vector<8x128xf32>
    %30 = arith.addf %27, %29 : vector<8x128xf32>
    %31 = math.tanh %30 : vector<8x128xf32>
    %cst_7 = arith.constant 1.000000e+00 : f32
    %32 = vector.broadcast %cst_7 : f32 to vector<8x128xf32>
    %33 = arith.subf %32, %26 : vector<8x128xf32>
    %34 = arith.mulf %33, %31 : vector<8x128xf32>
    %35 = arith.mulf %26, %4 : vector<8x128xf32>
    %36 = arith.addf %34, %35 : vector<8x128xf32>
    %37 = arith.truncf %36 : vector<8x128xf32> to vector<8x128xbf16>
    %c0_8 = arith.constant 0 : index
    %c0_9 = arith.constant 0 : index
    %38 = vector.load %arg2[%c0_8, %c0_9] : memref<128x128xbf16, #tpu.memory_space<vmem>>, vector<128x128xbf16>
    %cst_10 = arith.constant dense<0.000000e+00> : vector<8x128xf32>
    %39 = tpu.matmul %37, %38, %cst_10 {dimension_numbers = #tpu.dot_dimension_numbers<[1], [0], [0], [1], [0, 0, 1, 1], [], []>} : vector<8x128xbf16>, vector<128x128xbf16>, vector<8x128xf32> -> vector<8x128xf32>
    %40 = arith.addf %39, %3 : vector<8x128xf32>
    %cst_11 = arith.constant dense<0xFF800000> : vector<8xf32>
    %41 = vector.multi_reduction <maximumf>, %40, %cst_11 [1] : vector<8x128xf32> to vector<8xf32>
    %42 = vector.shape_cast %41 : vector<8xf32> to vector<8x1xf32>
    %43 = vector.broadcast %42 : vector<8x1xf32> to vector<8x128xf32>
    %44 = arith.cmpf oeq, %40, %43 : vector<8x128xf32>
    %c128_i32 = arith.constant 128 : i32
    %45 = vector.broadcast %c128_i32 : i32 to vector<8x128xi32>
    %46 = arith.select %44, %0, %45 : vector<8x128xi1>, vector<8x128xi32>
    %cst_12 = arith.constant dense<2147483647> : vector<8xi32>
    %47 = vector.multi_reduction <minsi>, %46, %cst_12 [1] : vector<8x128xi32> to vector<8xi32>
    %48 = vector.shape_cast %47 : vector<8xi32> to vector<8x1xi32>
    %49 = vector.broadcast %42 : vector<8x1xf32> to vector<8x128xf32>
    %50 = arith.subf %40, %49 : vector<8x128xf32>
    %51 = math.exp %50 : vector<8x128xf32>
    %cst_13 = arith.constant dense<0.000000e+00> : vector<8xf32>
    %52 = vector.multi_reduction <add>, %51, %cst_13 [1] : vector<8x128xf32> to vector<8xf32>
    %53 = vector.shape_cast %52 : vector<8xf32> to vector<8x1xf32>
    %54 = math.log %53 : vector<8x1xf32>
    %55 = arith.addf %42, %54 : vector<8x1xf32>
    %56 = vector.broadcast %55 : vector<8x1xf32> to vector<8x128xf32>
    %57 = arith.subf %40, %56 : vector<8x128xf32>
    %c0_14 = arith.constant 0 : index
    %c0_15 = arith.constant 0 : index
    %c0_16 = arith.constant 0 : index
    %58 = vector.load %arg4[%c0_14, %c0_15, %c0_16] : memref<10x8x128xf32, #tpu.memory_space<vmem>>, vector<1x8x128xf32>
    %59 = vector.shape_cast %58 : vector<1x8x128xf32> to vector<8x128xf32>
    %60 = vector.shape_cast %57 : vector<8x128xf32> to vector<1x8x128xf32>
    tpu.vector_store %arg4[%c0_14, %c0_15, %c0_16], %60 {strides = array<i32>} : memref<10x8x128xf32, #tpu.memory_space<vmem>>, vector<1x8x128xf32>,
    %61 = vector.broadcast %48 : vector<8x1xi32> to vector<8x128xi32>
    %62 = arith.cmpi eq, %0, %61 : vector<8x128xi32>
    %63 = arith.extui %62 : vector<8x128xi1> to vector<8x128xi32>
    %64 = arith.sitofp %63 : vector<8x128xi32> to vector<8x128xf32>
    %65 = arith.truncf %64 : vector<8x128xf32> to vector<8x128xbf16>
    %66 = arith.truncf %36 : vector<8x128xf32> to vector<8x128xbf16>
    %67 = tpu.concatenate %65, %66 in 1 : vector<8x128xbf16>, vector<8x128xbf16> -> vector<8x256xbf16>
    %c0_17 = arith.constant 0 : index
    %c0_18 = arith.constant 0 : index
    %68 = vector.load %arg1[%c0_17, %c0_18] : memref<256x512xbf16, #tpu.memory_space<vmem>>, vector<256x512xbf16>
    %cst_19 = arith.constant dense<0.000000e+00> : vector<8x512xf32>
    %69 = tpu.matmul %67, %68, %cst_19 {dimension_numbers = #tpu.dot_dimension_numbers<[1], [0], [0], [1], [0, 0, 1, 1], [], []>} : vector<8x256xbf16>, vector<256x512xbf16>, vector<8x512xf32> -> vector<8x512xf32>
    %70 = vector.extract_strided_slice %69 {offsets = [0, 0], sizes = [8, 128], strides = [1, 1]} : vector<8x512xf32> to vector<8x128xf32>
    %71 = arith.negf %70 : vector<8x128xf32>
    %72 = math.exp %71 : vector<8x128xf32>
    %cst_20 = arith.constant 1.000000e+00 : f32
    %73 = vector.broadcast %cst_20 : f32 to vector<8x128xf32>
    %74 = arith.addf %73, %72 : vector<8x128xf32>
    %75 = arith.divf %73, %74 : vector<8x128xf32>
    %76 = vector.extract_strided_slice %69 {offsets = [0, 128], sizes = [8, 128], strides = [1, 1]} : vector<8x512xf32> to vector<8x128xf32>
    %77 = arith.negf %76 : vector<8x128xf32>
    %78 = math.exp %77 : vector<8x128xf32>
    %cst_21 = arith.constant 1.000000e+00 : f32
    %79 = vector.broadcast %cst_21 : f32 to vector<8x128xf32>
    %80 = arith.addf %79, %78 : vector<8x128xf32>
    %81 = arith.divf %79, %80 : vector<8x128xf32>
    %82 = vector.extract_strided_slice %69 {offsets = [0, 256], sizes = [8, 128], strides = [1, 1]} : vector<8x512xf32> to vector<8x128xf32>
    %83 = vector.extract_strided_slice %69 {offsets = [0, 384], sizes = [8, 128], strides = [1, 1]} : vector<8x512xf32> to vector<8x128xf32>
    %84 = arith.mulf %75, %83 : vector<8x128xf32>
    %85 = arith.addf %82, %84 : vector<8x128xf32>
    %86 = math.tanh %85 : vector<8x128xf32>
    %cst_22 = arith.constant 1.000000e+00 : f32
    %87 = vector.broadcast %cst_22 : f32 to vector<8x128xf32>
    %88 = arith.subf %87, %81 : vector<8x128xf32>
    %89 = arith.mulf %88, %86 : vector<8x128xf32>
    %90 = arith.mulf %81, %36 : vector<8x128xf32>
    %91 = arith.addf %89, %90 : vector<8x128xf32>
    %92 = arith.truncf %91 : vector<8x128xf32> to vector<8x128xbf16>
    %c0_23 = arith.constant 0 : index
    %c0_24 = arith.constant 0 : index
    %93 = vector.load %arg2[%c0_23, %c0_24] : memref<128x128xbf16, #tpu.memory_space<vmem>>, vector<128x128xbf16>
    %cst_25 = arith.constant dense<0.000000e+00> : vector<8x128xf32>
    %94 = tpu.matmul %92, %93, %cst_25 {dimension_numbers = #tpu.dot_dimension_numbers<[1], [0], [0], [1], [0, 0, 1, 1], [], []>} : vector<8x128xbf16>, vector<128x128xbf16>, vector<8x128xf32> -> vector<8x128xf32>
    %95 = arith.addf %94, %3 : vector<8x128xf32>
    %cst_26 = arith.constant dense<0xFF800000> : vector<8xf32>
    %96 = vector.multi_reduction <maximumf>, %95, %cst_26 [1] : vector<8x128xf32> to vector<8xf32>
    %97 = vector.shape_cast %96 : vector<8xf32> to vector<8x1xf32>
    %98 = vector.broadcast %97 : vector<8x1xf32> to vector<8x128xf32>
    %99 = arith.cmpf oeq, %95, %98 : vector<8x128xf32>
    %c128_i32_27 = arith.constant 128 : i32
    %100 = vector.broadcast %c128_i32_27 : i32 to vector<8x128xi32>
    %101 = arith.select %99, %0, %100 : vector<8x128xi1>, vector<8x128xi32>
    %cst_28 = arith.constant dense<2147483647> : vector<8xi32>
    %102 = vector.multi_reduction <minsi>, %101, %cst_28 [1] : vector<8x128xi32> to vector<8xi32>
    %103 = vector.shape_cast %102 : vector<8xi32> to vector<8x1xi32>
    %104 = vector.broadcast %97 : vector<8x1xf32> to vector<8x128xf32>
    %105 = arith.subf %95, %104 : vector<8x128xf32>
    %106 = math.exp %105 : vector<8x128xf32>
    %cst_29 = arith.constant dense<0.000000e+00> : vector<8xf32>
    %107 = vector.multi_reduction <add>, %106, %cst_29 [1] : vector<8x128xf32> to vector<8xf32>
    %108 = vector.shape_cast %107 : vector<8xf32> to vector<8x1xf32>
    %109 = math.log %108 : vector<8x1xf32>
    %110 = arith.addf %97, %109 : vector<8x1xf32>
    %111 = vector.broadcast %110 : vector<8x1xf32> to vector<8x128xf32>
    %112 = arith.subf %95, %111 : vector<8x128xf32>
    %c1 = arith.constant 1 : index
    %c0_30 = arith.constant 0 : index
    %c0_31 = arith.constant 0 : index
    %113 = vector.load %arg4[%c1, %c0_30, %c0_31] : memref<10x8x128xf32, #tpu.memory_space<vmem>>, vector<1x8x128xf32>
    %114 = vector.shape_cast %113 : vector<1x8x128xf32> to vector<8x128xf32>
    %115 = vector.shape_cast %112 : vector<8x128xf32> to vector<1x8x128xf32>
    tpu.vector_store %arg4[%c1, %c0_30, %c0_31], %115 {strides = array<i32>} : memref<10x8x128xf32, #tpu.memory_space<vmem>>, vector<1x8x128xf32>,
    %116 = vector.broadcast %103 : vector<8x1xi32> to vector<8x128xi32>
    %117 = arith.cmpi eq, %0, %116 : vector<8x128xi32>
    %118 = arith.extui %117 : vector<8x128xi1> to vector<8x128xi32>
    %119 = arith.sitofp %118 : vector<8x128xi32> to vector<8x128xf32>
    %120 = arith.truncf %119 : vector<8x128xf32> to vector<8x128xbf16>
    %121 = arith.truncf %91 : vector<8x128xf32> to vector<8x128xbf16>
    %122 = tpu.concatenate %120, %121 in 1 : vector<8x128xbf16>, vector<8x128xbf16> -> vector<8x256xbf16>
    %c0_32 = arith.constant 0 : index
    %c0_33 = arith.constant 0 : index
    %123 = vector.load %arg1[%c0_32, %c0_33] : memref<256x512xbf16, #tpu.memory_space<vmem>>, vector<256x512xbf16>
    %cst_34 = arith.constant dense<0.000000e+00> : vector<8x512xf32>
    %124 = tpu.matmul %122, %123, %cst_34 {dimension_numbers = #tpu.dot_dimension_numbers<[1], [0], [0], [1], [0, 0, 1, 1], [], []>} : vector<8x256xbf16>, vector<256x512xbf16>, vector<8x512xf32> -> vector<8x512xf32>
    %125 = vector.extract_strided_slice %124 {offsets = [0, 0], sizes = [8, 128], strides = [1, 1]} : vector<8x512xf32> to vector<8x128xf32>
    %126 = arith.negf %125 : vector<8x128xf32>
    %127 = math.exp %126 : vector<8x128xf32>
    %cst_35 = arith.constant 1.000000e+00 : f32
    %128 = vector.broadcast %cst_35 : f32 to vector<8x128xf32>
    %129 = arith.addf %128, %127 : vector<8x128xf32>
    %130 = arith.divf %128, %129 : vector<8x128xf32>
    %131 = vector.extract_strided_slice %124 {offsets = [0, 128], sizes = [8, 128], strides = [1, 1]} : vector<8x512xf32> to vector<8x128xf32>
    %132 = arith.negf %131 : vector<8x128xf32>
    %133 = math.exp %132 : vector<8x128xf32>
    %cst_36 = arith.constant 1.000000e+00 : f32
    %134 = vector.broadcast %cst_36 : f32 to vector<8x128xf32>
    %135 = arith.addf %134, %133 : vector<8x128xf32>
    %136 = arith.divf %134, %135 : vector<8x128xf32>
    %137 = vector.extract_strided_slice %124 {offsets = [0, 256], sizes = [8, 128], strides = [1, 1]} : vector<8x512xf32> to vector<8x128xf32>
    %138 = vector.extract_strided_slice %124 {offsets = [0, 384], sizes = [8, 128], strides = [1, 1]} : vector<8x512xf32> to vector<8x128xf32>
    %139 = arith.mulf %130, %138 : vector<8x128xf32>
    %140 = arith.addf %137, %139 : vector<8x128xf32>
    %141 = math.tanh %140 : vector<8x128xf32>
    %cst_37 = arith.constant 1.000000e+00 : f32
    %142 = vector.broadcast %cst_37 : f32 to vector<8x128xf32>
    %143 = arith.subf %142, %136 : vector<8x128xf32>
    %144 = arith.mulf %143, %141 : vector<8x128xf32>
    %145 = arith.mulf %136, %91 : vector<8x128xf32>
    %146 = arith.addf %144, %145 : vector<8x128xf32>
    %147 = arith.truncf %146 : vector<8x128xf32> to vector<8x128xbf16>
    %c0_38 = arith.constant 0 : index
    %c0_39 = arith.constant 0 : index
    %148 = vector.load %arg2[%c0_38, %c0_39] : memref<128x128xbf16, #tpu.memory_space<vmem>>, vector<128x128xbf16>
    %cst_40 = arith.constant dense<0.000000e+00> : vector<8x128xf32>
    %149 = tpu.matmul %147, %148, %cst_40 {dimension_numbers = #tpu.dot_dimension_numbers<[1], [0], [0], [1], [0, 0, 1, 1], [], []>} : vector<8x128xbf16>, vector<128x128xbf16>, vector<8x128xf32> -> vector<8x128xf32>
    %150 = arith.addf %149, %3 : vector<8x128xf32>
    %cst_41 = arith.constant dense<0xFF800000> : vector<8xf32>
    %151 = vector.multi_reduction <maximumf>, %150, %cst_41 [1] : vector<8x128xf32> to vector<8xf32>
    %152 = vector.shape_cast %151 : vector<8xf32> to vector<8x1xf32>
    %153 = vector.broadcast %152 : vector<8x1xf32> to vector<8x128xf32>
    %154 = arith.cmpf oeq, %150, %153 : vector<8x128xf32>
    %c128_i32_42 = arith.constant 128 : i32
    %155 = vector.broadcast %c128_i32_42 : i32 to vector<8x128xi32>
    %156 = arith.select %154, %0, %155 : vector<8x128xi1>, vector<8x128xi32>
    %cst_43 = arith.constant dense<2147483647> : vector<8xi32>
    %157 = vector.multi_reduction <minsi>, %156, %cst_43 [1] : vector<8x128xi32> to vector<8xi32>
    %158 = vector.shape_cast %157 : vector<8xi32> to vector<8x1xi32>
    %159 = vector.broadcast %152 : vector<8x1xf32> to vector<8x128xf32>
    %160 = arith.subf %150, %159 : vector<8x128xf32>
    %161 = math.exp %160 : vector<8x128xf32>
    %cst_44 = arith.constant dense<0.000000e+00> : vector<8xf32>
    %162 = vector.multi_reduction <add>, %161, %cst_44 [1] : vector<8x128xf32> to vector<8xf32>
    %163 = vector.shape_cast %162 : vector<8xf32> to vector<8x1xf32>
    %164 = math.log %163 : vector<8x1xf32>
    %165 = arith.addf %152, %164 : vector<8x1xf32>
    %166 = vector.broadcast %165 : vector<8x1xf32> to vector<8x128xf32>
    %167 = arith.subf %150, %166 : vector<8x128xf32>
    %c2 = arith.constant 2 : index
    %c0_45 = arith.constant 0 : index
    %c0_46 = arith.constant 0 : index
    %168 = vector.load %arg4[%c2, %c0_45, %c0_46] : memref<10x8x128xf32, #tpu.memory_space<vmem>>, vector<1x8x128xf32>
    %169 = vector.shape_cast %168 : vector<1x8x128xf32> to vector<8x128xf32>
    %170 = vector.shape_cast %167 : vector<8x128xf32> to vector<1x8x128xf32>
    tpu.vector_store %arg4[%c2, %c0_45, %c0_46], %170 {strides = array<i32>} : memref<10x8x128xf32, #tpu.memory_space<vmem>>, vector<1x8x128xf32>,
    %171 = vector.broadcast %158 : vector<8x1xi32> to vector<8x128xi32>
    %172 = arith.cmpi eq, %0, %171 : vector<8x128xi32>
    %173 = arith.extui %172 : vector<8x128xi1> to vector<8x128xi32>
    %174 = arith.sitofp %173 : vector<8x128xi32> to vector<8x128xf32>
    %175 = arith.truncf %174 : vector<8x128xf32> to vector<8x128xbf16>
    %176 = arith.truncf %146 : vector<8x128xf32> to vector<8x128xbf16>
    %177 = tpu.concatenate %175, %176 in 1 : vector<8x128xbf16>, vector<8x128xbf16> -> vector<8x256xbf16>
    %c0_47 = arith.constant 0 : index
    %c0_48 = arith.constant 0 : index
    %178 = vector.load %arg1[%c0_47, %c0_48] : memref<256x512xbf16, #tpu.memory_space<vmem>>, vector<256x512xbf16>
    %cst_49 = arith.constant dense<0.000000e+00> : vector<8x512xf32>
    %179 = tpu.matmul %177, %178, %cst_49 {dimension_numbers = #tpu.dot_dimension_numbers<[1], [0], [0], [1], [0, 0, 1, 1], [], []>} : vector<8x256xbf16>, vector<256x512xbf16>, vector<8x512xf32> -> vector<8x512xf32>
    %180 = vector.extract_strided_slice %179 {offsets = [0, 0], sizes = [8, 128], strides = [1, 1]} : vector<8x512xf32> to vector<8x128xf32>
    %181 = arith.negf %180 : vector<8x128xf32>
    %182 = math.exp %181 : vector<8x128xf32>
    %cst_50 = arith.constant 1.000000e+00 : f32
    %183 = vector.broadcast %cst_50 : f32 to vector<8x128xf32>
    %184 = arith.addf %183, %182 : vector<8x128xf32>
    %185 = arith.divf %183, %184 : vector<8x128xf32>
    %186 = vector.extract_strided_slice %179 {offsets = [0, 128], sizes = [8, 128], strides = [1, 1]} : vector<8x512xf32> to vector<8x128xf32>
    %187 = arith.negf %186 : vector<8x128xf32>
    %188 = math.exp %187 : vector<8x128xf32>
    %cst_51 = arith.constant 1.000000e+00 : f32
    %189 = vector.broadcast %cst_51 : f32 to vector<8x128xf32>
    %190 = arith.addf %189, %188 : vector<8x128xf32>
    %191 = arith.divf %189, %190 : vector<8x128xf32>
    %192 = vector.extract_strided_slice %179 {offsets = [0, 256], sizes = [8, 128], strides = [1, 1]} : vector<8x512xf32> to vector<8x128xf32>
    %193 = vector.extract_strided_slice %179 {offsets = [0, 384], sizes = [8, 128], strides = [1, 1]} : vector<8x512xf32> to vector<8x128xf32>
    %194 = arith.mulf %185, %193 : vector<8x128xf32>
    %195 = arith.addf %192, %194 : vector<8x128xf32>
    %196 = math.tanh %195 : vector<8x128xf32>
    %cst_52 = arith.constant 1.000000e+00 : f32
    %197 = vector.broadcast %cst_52 : f32 to vector<8x128xf32>
    %198 = arith.subf %197, %191 : vector<8x128xf32>
    %199 = arith.mulf %198, %196 : vector<8x128xf32>
    %200 = arith.mulf %191, %146 : vector<8x128xf32>
    %201 = arith.addf %199, %200 : vector<8x128xf32>
    %202 = arith.truncf %201 : vector<8x128xf32> to vector<8x128xbf16>
    %c0_53 = arith.constant 0 : index
    %c0_54 = arith.constant 0 : index
    %203 = vector.load %arg2[%c0_53, %c0_54] : memref<128x128xbf16, #tpu.memory_space<vmem>>, vector<128x128xbf16>
    %cst_55 = arith.constant dense<0.000000e+00> : vector<8x128xf32>
    %204 = tpu.matmul %202, %203, %cst_55 {dimension_numbers = #tpu.dot_dimension_numbers<[1], [0], [0], [1], [0, 0, 1, 1], [], []>} : vector<8x128xbf16>, vector<128x128xbf16>, vector<8x128xf32> -> vector<8x128xf32>
    %205 = arith.addf %204, %3 : vector<8x128xf32>
    %cst_56 = arith.constant dense<0xFF800000> : vector<8xf32>
    %206 = vector.multi_reduction <maximumf>, %205, %cst_56 [1] : vector<8x128xf32> to vector<8xf32>
    %207 = vector.shape_cast %206 : vector<8xf32> to vector<8x1xf32>
    %208 = vector.broadcast %207 : vector<8x1xf32> to vector<8x128xf32>
    %209 = arith.cmpf oeq, %205, %208 : vector<8x128xf32>
    %c128_i32_57 = arith.constant 128 : i32
    %210 = vector.broadcast %c128_i32_57 : i32 to vector<8x128xi32>
    %211 = arith.select %209, %0, %210 : vector<8x128xi1>, vector<8x128xi32>
    %cst_58 = arith.constant dense<2147483647> : vector<8xi32>
    %212 = vector.multi_reduction <minsi>, %211, %cst_58 [1] : vector<8x128xi32> to vector<8xi32>
    %213 = vector.shape_cast %212 : vector<8xi32> to vector<8x1xi32>
    %214 = vector.broadcast %207 : vector<8x1xf32> to vector<8x128xf32>
    %215 = arith.subf %205, %214 : vector<8x128xf32>
    %216 = math.exp %215 : vector<8x128xf32>
    %cst_59 = arith.constant dense<0.000000e+00> : vector<8xf32>
    %217 = vector.multi_reduction <add>, %216, %cst_59 [1] : vector<8x128xf32> to vector<8xf32>
    %218 = vector.shape_cast %217 : vector<8xf32> to vector<8x1xf32>
    %219 = math.log %218 : vector<8x1xf32>
    %220 = arith.addf %207, %219 : vector<8x1xf32>
    %221 = vector.broadcast %220 : vector<8x1xf32> to vector<8x128xf32>
    %222 = arith.subf %205, %221 : vector<8x128xf32>
    %c3 = arith.constant 3 : index
    %c0_60 = arith.constant 0 : index
    %c0_61 = arith.constant 0 : index
    %223 = vector.load %arg4[%c3, %c0_60, %c0_61] : memref<10x8x128xf32, #tpu.memory_space<vmem>>, vector<1x8x128xf32>
    %224 = vector.shape_cast %223 : vector<1x8x128xf32> to vector<8x128xf32>
    %225 = vector.shape_cast %222 : vector<8x128xf32> to vector<1x8x128xf32>
    tpu.vector_store %arg4[%c3, %c0_60, %c0_61], %225 {strides = array<i32>} : memref<10x8x128xf32, #tpu.memory_space<vmem>>, vector<1x8x128xf32>,
    %226 = vector.broadcast %213 : vector<8x1xi32> to vector<8x128xi32>
    %227 = arith.cmpi eq, %0, %226 : vector<8x128xi32>
    %228 = arith.extui %227 : vector<8x128xi1> to vector<8x128xi32>
    %229 = arith.sitofp %228 : vector<8x128xi32> to vector<8x128xf32>
    %230 = arith.truncf %229 : vector<8x128xf32> to vector<8x128xbf16>
    %231 = arith.truncf %201 : vector<8x128xf32> to vector<8x128xbf16>
    %232 = tpu.concatenate %230, %231 in 1 : vector<8x128xbf16>, vector<8x128xbf16> -> vector<8x256xbf16>
    %c0_62 = arith.constant 0 : index
    %c0_63 = arith.constant 0 : index
    %233 = vector.load %arg1[%c0_62, %c0_63] : memref<256x512xbf16, #tpu.memory_space<vmem>>, vector<256x512xbf16>
    %cst_64 = arith.constant dense<0.000000e+00> : vector<8x512xf32>
    %234 = tpu.matmul %232, %233, %cst_64 {dimension_numbers = #tpu.dot_dimension_numbers<[1], [0], [0], [1], [0, 0, 1, 1], [], []>} : vector<8x256xbf16>, vector<256x512xbf16>, vector<8x512xf32> -> vector<8x512xf32>
    %235 = vector.extract_strided_slice %234 {offsets = [0, 0], sizes = [8, 128], strides = [1, 1]} : vector<8x512xf32> to vector<8x128xf32>
    %236 = arith.negf %235 : vector<8x128xf32>
    %237 = math.exp %236 : vector<8x128xf32>
    %cst_65 = arith.constant 1.000000e+00 : f32
    %238 = vector.broadcast %cst_65 : f32 to vector<8x128xf32>
    %239 = arith.addf %238, %237 : vector<8x128xf32>
    %240 = arith.divf %238, %239 : vector<8x128xf32>
    %241 = vector.extract_strided_slice %234 {offsets = [0, 128], sizes = [8, 128], strides = [1, 1]} : vector<8x512xf32> to vector<8x128xf32>
    %242 = arith.negf %241 : vector<8x128xf32>
    %243 = math.exp %242 : vector<8x128xf32>
    %cst_66 = arith.constant 1.000000e+00 : f32
    %244 = vector.broadcast %cst_66 : f32 to vector<8x128xf32>
    %245 = arith.addf %244, %243 : vector<8x128xf32>
    %246 = arith.divf %244, %245 : vector<8x128xf32>
    %247 = vector.extract_strided_slice %234 {offsets = [0, 256], sizes = [8, 128], strides = [1, 1]} : vector<8x512xf32> to vector<8x128xf32>
    %248 = vector.extract_strided_slice %234 {offsets = [0, 384], sizes = [8, 128], strides = [1, 1]} : vector<8x512xf32> to vector<8x128xf32>
    %249 = arith.mulf %240, %248 : vector<8x128xf32>
    %250 = arith.addf %247, %249 : vector<8x128xf32>
    %251 = math.tanh %250 : vector<8x128xf32>
    %cst_67 = arith.constant 1.000000e+00 : f32
    %252 = vector.broadcast %cst_67 : f32 to vector<8x128xf32>
    %253 = arith.subf %252, %246 : vector<8x128xf32>
    %254 = arith.mulf %253, %251 : vector<8x128xf32>
    %255 = arith.mulf %246, %201 : vector<8x128xf32>
    %256 = arith.addf %254, %255 : vector<8x128xf32>
    %257 = arith.truncf %256 : vector<8x128xf32> to vector<8x128xbf16>
    %c0_68 = arith.constant 0 : index
    %c0_69 = arith.constant 0 : index
    %258 = vector.load %arg2[%c0_68, %c0_69] : memref<128x128xbf16, #tpu.memory_space<vmem>>, vector<128x128xbf16>
    %cst_70 = arith.constant dense<0.000000e+00> : vector<8x128xf32>
    %259 = tpu.matmul %257, %258, %cst_70 {dimension_numbers = #tpu.dot_dimension_numbers<[1], [0], [0], [1], [0, 0, 1, 1], [], []>} : vector<8x128xbf16>, vector<128x128xbf16>, vector<8x128xf32> -> vector<8x128xf32>
    %260 = arith.addf %259, %3 : vector<8x128xf32>
    %cst_71 = arith.constant dense<0xFF800000> : vector<8xf32>
    %261 = vector.multi_reduction <maximumf>, %260, %cst_71 [1] : vector<8x128xf32> to vector<8xf32>
    %262 = vector.shape_cast %261 : vector<8xf32> to vector<8x1xf32>
    %263 = vector.broadcast %262 : vector<8x1xf32> to vector<8x128xf32>
    %264 = arith.cmpf oeq, %260, %263 : vector<8x128xf32>
    %c128_i32_72 = arith.constant 128 : i32
    %265 = vector.broadcast %c128_i32_72 : i32 to vector<8x128xi32>
    %266 = arith.select %264, %0, %265 : vector<8x128xi1>, vector<8x128xi32>
    %cst_73 = arith.constant dense<2147483647> : vector<8xi32>
    %267 = vector.multi_reduction <minsi>, %266, %cst_73 [1] : vector<8x128xi32> to vector<8xi32>
    %268 = vector.shape_cast %267 : vector<8xi32> to vector<8x1xi32>
    %269 = vector.broadcast %262 : vector<8x1xf32> to vector<8x128xf32>
    %270 = arith.subf %260, %269 : vector<8x128xf32>
    %271 = math.exp %270 : vector<8x128xf32>
    %cst_74 = arith.constant dense<0.000000e+00> : vector<8xf32>
    %272 = vector.multi_reduction <add>, %271, %cst_74 [1] : vector<8x128xf32> to vector<8xf32>
    %273 = vector.shape_cast %272 : vector<8xf32> to vector<8x1xf32>
    %274 = math.log %273 : vector<8x1xf32>
    %275 = arith.addf %262, %274 : vector<8x1xf32>
    %276 = vector.broadcast %275 : vector<8x1xf32> to vector<8x128xf32>
    %277 = arith.subf %260, %276 : vector<8x128xf32>
    %c4 = arith.constant 4 : index
    %c0_75 = arith.constant 0 : index
    %c0_76 = arith.constant 0 : index
    %278 = vector.load %arg4[%c4, %c0_75, %c0_76] : memref<10x8x128xf32, #tpu.memory_space<vmem>>, vector<1x8x128xf32>
    %279 = vector.shape_cast %278 : vector<1x8x128xf32> to vector<8x128xf32>
    %280 = vector.shape_cast %277 : vector<8x128xf32> to vector<1x8x128xf32>
    tpu.vector_store %arg4[%c4, %c0_75, %c0_76], %280 {strides = array<i32>} : memref<10x8x128xf32, #tpu.memory_space<vmem>>, vector<1x8x128xf32>,
    %281 = vector.broadcast %268 : vector<8x1xi32> to vector<8x128xi32>
    %282 = arith.cmpi eq, %0, %281 : vector<8x128xi32>
    %283 = arith.extui %282 : vector<8x128xi1> to vector<8x128xi32>
    %284 = arith.sitofp %283 : vector<8x128xi32> to vector<8x128xf32>
    %285 = arith.truncf %284 : vector<8x128xf32> to vector<8x128xbf16>
    %286 = arith.truncf %256 : vector<8x128xf32> to vector<8x128xbf16>
    %287 = tpu.concatenate %285, %286 in 1 : vector<8x128xbf16>, vector<8x128xbf16> -> vector<8x256xbf16>
    %c0_77 = arith.constant 0 : index
    %c0_78 = arith.constant 0 : index
    %288 = vector.load %arg1[%c0_77, %c0_78] : memref<256x512xbf16, #tpu.memory_space<vmem>>, vector<256x512xbf16>
    %cst_79 = arith.constant dense<0.000000e+00> : vector<8x512xf32>
    %289 = tpu.matmul %287, %288, %cst_79 {dimension_numbers = #tpu.dot_dimension_numbers<[1], [0], [0], [1], [0, 0, 1, 1], [], []>} : vector<8x256xbf16>, vector<256x512xbf16>, vector<8x512xf32> -> vector<8x512xf32>
    %290 = vector.extract_strided_slice %289 {offsets = [0, 0], sizes = [8, 128], strides = [1, 1]} : vector<8x512xf32> to vector<8x128xf32>
    %291 = arith.negf %290 : vector<8x128xf32>
    %292 = math.exp %291 : vector<8x128xf32>
    %cst_80 = arith.constant 1.000000e+00 : f32
    %293 = vector.broadcast %cst_80 : f32 to vector<8x128xf32>
    %294 = arith.addf %293, %292 : vector<8x128xf32>
    %295 = arith.divf %293, %294 : vector<8x128xf32>
    %296 = vector.extract_strided_slice %289 {offsets = [0, 128], sizes = [8, 128], strides = [1, 1]} : vector<8x512xf32> to vector<8x128xf32>
    %297 = arith.negf %296 : vector<8x128xf32>
    %298 = math.exp %297 : vector<8x128xf32>
    %cst_81 = arith.constant 1.000000e+00 : f32
    %299 = vector.broadcast %cst_81 : f32 to vector<8x128xf32>
    %300 = arith.addf %299, %298 : vector<8x128xf32>
    %301 = arith.divf %299, %300 : vector<8x128xf32>
    %302 = vector.extract_strided_slice %289 {offsets = [0, 256], sizes = [8, 128], strides = [1, 1]} : vector<8x512xf32> to vector<8x128xf32>
    %303 = vector.extract_strided_slice %289 {offsets = [0, 384], sizes = [8, 128], strides = [1, 1]} : vector<8x512xf32> to vector<8x128xf32>
    %304 = arith.mulf %295, %303 : vector<8x128xf32>
    %305 = arith.addf %302, %304 : vector<8x128xf32>
    %306 = math.tanh %305 : vector<8x128xf32>
    %cst_82 = arith.constant 1.000000e+00 : f32
    %307 = vector.broadcast %cst_82 : f32 to vector<8x128xf32>
    %308 = arith.subf %307, %301 : vector<8x128xf32>
    %309 = arith.mulf %308, %306 : vector<8x128xf32>
    %310 = arith.mulf %301, %256 : vector<8x128xf32>
    %311 = arith.addf %309, %310 : vector<8x128xf32>
    %312 = arith.truncf %311 : vector<8x128xf32> to vector<8x128xbf16>
    %c0_83 = arith.constant 0 : index
    %c0_84 = arith.constant 0 : index
    %313 = vector.load %arg2[%c0_83, %c0_84] : memref<128x128xbf16, #tpu.memory_space<vmem>>, vector<128x128xbf16>
    %cst_85 = arith.constant dense<0.000000e+00> : vector<8x128xf32>
    %314 = tpu.matmul %312, %313, %cst_85 {dimension_numbers = #tpu.dot_dimension_numbers<[1], [0], [0], [1], [0, 0, 1, 1], [], []>} : vector<8x128xbf16>, vector<128x128xbf16>, vector<8x128xf32> -> vector<8x128xf32>
    %315 = arith.addf %314, %3 : vector<8x128xf32>
    %cst_86 = arith.constant dense<0xFF800000> : vector<8xf32>
    %316 = vector.multi_reduction <maximumf>, %315, %cst_86 [1] : vector<8x128xf32> to vector<8xf32>
    %317 = vector.shape_cast %316 : vector<8xf32> to vector<8x1xf32>
    %318 = vector.broadcast %317 : vector<8x1xf32> to vector<8x128xf32>
    %319 = arith.cmpf oeq, %315, %318 : vector<8x128xf32>
    %c128_i32_87 = arith.constant 128 : i32
    %320 = vector.broadcast %c128_i32_87 : i32 to vector<8x128xi32>
    %321 = arith.select %319, %0, %320 : vector<8x128xi1>, vector<8x128xi32>
    %cst_88 = arith.constant dense<2147483647> : vector<8xi32>
    %322 = vector.multi_reduction <minsi>, %321, %cst_88 [1] : vector<8x128xi32> to vector<8xi32>
    %323 = vector.shape_cast %322 : vector<8xi32> to vector<8x1xi32>
    %324 = vector.broadcast %317 : vector<8x1xf32> to vector<8x128xf32>
    %325 = arith.subf %315, %324 : vector<8x128xf32>
    %326 = math.exp %325 : vector<8x128xf32>
    %cst_89 = arith.constant dense<0.000000e+00> : vector<8xf32>
    %327 = vector.multi_reduction <add>, %326, %cst_89 [1] : vector<8x128xf32> to vector<8xf32>
    %328 = vector.shape_cast %327 : vector<8xf32> to vector<8x1xf32>
    %329 = math.log %328 : vector<8x1xf32>
    %330 = arith.addf %317, %329 : vector<8x1xf32>
    %331 = vector.broadcast %330 : vector<8x1xf32> to vector<8x128xf32>
    %332 = arith.subf %315, %331 : vector<8x128xf32>
    %c5 = arith.constant 5 : index
    %c0_90 = arith.constant 0 : index
    %c0_91 = arith.constant 0 : index
    %333 = vector.load %arg4[%c5, %c0_90, %c0_91] : memref<10x8x128xf32, #tpu.memory_space<vmem>>, vector<1x8x128xf32>
    %334 = vector.shape_cast %333 : vector<1x8x128xf32> to vector<8x128xf32>
    %335 = vector.shape_cast %332 : vector<8x128xf32> to vector<1x8x128xf32>
    tpu.vector_store %arg4[%c5, %c0_90, %c0_91], %335 {strides = array<i32>} : memref<10x8x128xf32, #tpu.memory_space<vmem>>, vector<1x8x128xf32>,
    %336 = vector.broadcast %323 : vector<8x1xi32> to vector<8x128xi32>
    %337 = arith.cmpi eq, %0, %336 : vector<8x128xi32>
    %338 = arith.extui %337 : vector<8x128xi1> to vector<8x128xi32>
    %339 = arith.sitofp %338 : vector<8x128xi32> to vector<8x128xf32>
    %340 = arith.truncf %339 : vector<8x128xf32> to vector<8x128xbf16>
    %341 = arith.truncf %311 : vector<8x128xf32> to vector<8x128xbf16>
    %342 = tpu.concatenate %340, %341 in 1 : vector<8x128xbf16>, vector<8x128xbf16> -> vector<8x256xbf16>
    %c0_92 = arith.constant 0 : index
    %c0_93 = arith.constant 0 : index
    %343 = vector.load %arg1[%c0_92, %c0_93] : memref<256x512xbf16, #tpu.memory_space<vmem>>, vector<256x512xbf16>
    %cst_94 = arith.constant dense<0.000000e+00> : vector<8x512xf32>
    %344 = tpu.matmul %342, %343, %cst_94 {dimension_numbers = #tpu.dot_dimension_numbers<[1], [0], [0], [1], [0, 0, 1, 1], [], []>} : vector<8x256xbf16>, vector<256x512xbf16>, vector<8x512xf32> -> vector<8x512xf32>
    %345 = vector.extract_strided_slice %344 {offsets = [0, 0], sizes = [8, 128], strides = [1, 1]} : vector<8x512xf32> to vector<8x128xf32>
    %346 = arith.negf %345 : vector<8x128xf32>
    %347 = math.exp %346 : vector<8x128xf32>
    %cst_95 = arith.constant 1.000000e+00 : f32
    %348 = vector.broadcast %cst_95 : f32 to vector<8x128xf32>
    %349 = arith.addf %348, %347 : vector<8x128xf32>
    %350 = arith.divf %348, %349 : vector<8x128xf32>
    %351 = vector.extract_strided_slice %344 {offsets = [0, 128], sizes = [8, 128], strides = [1, 1]} : vector<8x512xf32> to vector<8x128xf32>
    %352 = arith.negf %351 : vector<8x128xf32>
    %353 = math.exp %352 : vector<8x128xf32>
    %cst_96 = arith.constant 1.000000e+00 : f32
    %354 = vector.broadcast %cst_96 : f32 to vector<8x128xf32>
    %355 = arith.addf %354, %353 : vector<8x128xf32>
    %356 = arith.divf %354, %355 : vector<8x128xf32>
    %357 = vector.extract_strided_slice %344 {offsets = [0, 256], sizes = [8, 128], strides = [1, 1]} : vector<8x512xf32> to vector<8x128xf32>
    %358 = vector.extract_strided_slice %344 {offsets = [0, 384], sizes = [8, 128], strides = [1, 1]} : vector<8x512xf32> to vector<8x128xf32>
    %359 = arith.mulf %350, %358 : vector<8x128xf32>
    %360 = arith.addf %357, %359 : vector<8x128xf32>
    %361 = math.tanh %360 : vector<8x128xf32>
    %cst_97 = arith.constant 1.000000e+00 : f32
    %362 = vector.broadcast %cst_97 : f32 to vector<8x128xf32>
    %363 = arith.subf %362, %356 : vector<8x128xf32>
    %364 = arith.mulf %363, %361 : vector<8x128xf32>
    %365 = arith.mulf %356, %311 : vector<8x128xf32>
    %366 = arith.addf %364, %365 : vector<8x128xf32>
    %367 = arith.truncf %366 : vector<8x128xf32> to vector<8x128xbf16>
    %c0_98 = arith.constant 0 : index
    %c0_99 = arith.constant 0 : index
    %368 = vector.load %arg2[%c0_98, %c0_99] : memref<128x128xbf16, #tpu.memory_space<vmem>>, vector<128x128xbf16>
    %cst_100 = arith.constant dense<0.000000e+00> : vector<8x128xf32>
    %369 = tpu.matmul %367, %368, %cst_100 {dimension_numbers = #tpu.dot_dimension_numbers<[1], [0], [0], [1], [0, 0, 1, 1], [], []>} : vector<8x128xbf16>, vector<128x128xbf16>, vector<8x128xf32> -> vector<8x128xf32>
    %370 = arith.addf %369, %3 : vector<8x128xf32>
    %cst_101 = arith.constant dense<0xFF800000> : vector<8xf32>
    %371 = vector.multi_reduction <maximumf>, %370, %cst_101 [1] : vector<8x128xf32> to vector<8xf32>
    %372 = vector.shape_cast %371 : vector<8xf32> to vector<8x1xf32>
    %373 = vector.broadcast %372 : vector<8x1xf32> to vector<8x128xf32>
    %374 = arith.cmpf oeq, %370, %373 : vector<8x128xf32>
    %c128_i32_102 = arith.constant 128 : i32
    %375 = vector.broadcast %c128_i32_102 : i32 to vector<8x128xi32>
    %376 = arith.select %374, %0, %375 : vector<8x128xi1>, vector<8x128xi32>
    %cst_103 = arith.constant dense<2147483647> : vector<8xi32>
    %377 = vector.multi_reduction <minsi>, %376, %cst_103 [1] : vector<8x128xi32> to vector<8xi32>
    %378 = vector.shape_cast %377 : vector<8xi32> to vector<8x1xi32>
    %379 = vector.broadcast %372 : vector<8x1xf32> to vector<8x128xf32>
    %380 = arith.subf %370, %379 : vector<8x128xf32>
    %381 = math.exp %380 : vector<8x128xf32>
    %cst_104 = arith.constant dense<0.000000e+00> : vector<8xf32>
    %382 = vector.multi_reduction <add>, %381, %cst_104 [1] : vector<8x128xf32> to vector<8xf32>
    %383 = vector.shape_cast %382 : vector<8xf32> to vector<8x1xf32>
    %384 = math.log %383 : vector<8x1xf32>
    %385 = arith.addf %372, %384 : vector<8x1xf32>
    %386 = vector.broadcast %385 : vector<8x1xf32> to vector<8x128xf32>
    %387 = arith.subf %370, %386 : vector<8x128xf32>
    %c6 = arith.constant 6 : index
    %c0_105 = arith.constant 0 : index
    %c0_106 = arith.constant 0 : index
    %388 = vector.load %arg4[%c6, %c0_105, %c0_106] : memref<10x8x128xf32, #tpu.memory_space<vmem>>, vector<1x8x128xf32>
    %389 = vector.shape_cast %388 : vector<1x8x128xf32> to vector<8x128xf32>
    %390 = vector.shape_cast %387 : vector<8x128xf32> to vector<1x8x128xf32>
    tpu.vector_store %arg4[%c6, %c0_105, %c0_106], %390 {strides = array<i32>} : memref<10x8x128xf32, #tpu.memory_space<vmem>>, vector<1x8x128xf32>,
    %391 = vector.broadcast %378 : vector<8x1xi32> to vector<8x128xi32>
    %392 = arith.cmpi eq, %0, %391 : vector<8x128xi32>
    %393 = arith.extui %392 : vector<8x128xi1> to vector<8x128xi32>
    %394 = arith.sitofp %393 : vector<8x128xi32> to vector<8x128xf32>
    %395 = arith.truncf %394 : vector<8x128xf32> to vector<8x128xbf16>
    %396 = arith.truncf %366 : vector<8x128xf32> to vector<8x128xbf16>
    %397 = tpu.concatenate %395, %396 in 1 : vector<8x128xbf16>, vector<8x128xbf16> -> vector<8x256xbf16>
    %c0_107 = arith.constant 0 : index
    %c0_108 = arith.constant 0 : index
    %398 = vector.load %arg1[%c0_107, %c0_108] : memref<256x512xbf16, #tpu.memory_space<vmem>>, vector<256x512xbf16>
    %cst_109 = arith.constant dense<0.000000e+00> : vector<8x512xf32>
    %399 = tpu.matmul %397, %398, %cst_109 {dimension_numbers = #tpu.dot_dimension_numbers<[1], [0], [0], [1], [0, 0, 1, 1], [], []>} : vector<8x256xbf16>, vector<256x512xbf16>, vector<8x512xf32> -> vector<8x512xf32>
    %400 = vector.extract_strided_slice %399 {offsets = [0, 0], sizes = [8, 128], strides = [1, 1]} : vector<8x512xf32> to vector<8x128xf32>
    %401 = arith.negf %400 : vector<8x128xf32>
    %402 = math.exp %401 : vector<8x128xf32>
    %cst_110 = arith.constant 1.000000e+00 : f32
    %403 = vector.broadcast %cst_110 : f32 to vector<8x128xf32>
    %404 = arith.addf %403, %402 : vector<8x128xf32>
    %405 = arith.divf %403, %404 : vector<8x128xf32>
    %406 = vector.extract_strided_slice %399 {offsets = [0, 128], sizes = [8, 128], strides = [1, 1]} : vector<8x512xf32> to vector<8x128xf32>
    %407 = arith.negf %406 : vector<8x128xf32>
    %408 = math.exp %407 : vector<8x128xf32>
    %cst_111 = arith.constant 1.000000e+00 : f32
    %409 = vector.broadcast %cst_111 : f32 to vector<8x128xf32>
    %410 = arith.addf %409, %408 : vector<8x128xf32>
    %411 = arith.divf %409, %410 : vector<8x128xf32>
    %412 = vector.extract_strided_slice %399 {offsets = [0, 256], sizes = [8, 128], strides = [1, 1]} : vector<8x512xf32> to vector<8x128xf32>
    %413 = vector.extract_strided_slice %399 {offsets = [0, 384], sizes = [8, 128], strides = [1, 1]} : vector<8x512xf32> to vector<8x128xf32>
    %414 = arith.mulf %405, %413 : vector<8x128xf32>
    %415 = arith.addf %412, %414 : vector<8x128xf32>
    %416 = math.tanh %415 : vector<8x128xf32>
    %cst_112 = arith.constant 1.000000e+00 : f32
    %417 = vector.broadcast %cst_112 : f32 to vector<8x128xf32>
    %418 = arith.subf %417, %411 : vector<8x128xf32>
    %419 = arith.mulf %418, %416 : vector<8x128xf32>
    %420 = arith.mulf %411, %366 : vector<8x128xf32>
    %421 = arith.addf %419, %420 : vector<8x128xf32>
    %422 = arith.truncf %421 : vector<8x128xf32> to vector<8x128xbf16>
    %c0_113 = arith.constant 0 : index
    %c0_114 = arith.constant 0 : index
    %423 = vector.load %arg2[%c0_113, %c0_114] : memref<128x128xbf16, #tpu.memory_space<vmem>>, vector<128x128xbf16>
    %cst_115 = arith.constant dense<0.000000e+00> : vector<8x128xf32>
    %424 = tpu.matmul %422, %423, %cst_115 {dimension_numbers = #tpu.dot_dimension_numbers<[1], [0], [0], [1], [0, 0, 1, 1], [], []>} : vector<8x128xbf16>, vector<128x128xbf16>, vector<8x128xf32> -> vector<8x128xf32>
    %425 = arith.addf %424, %3 : vector<8x128xf32>
    %cst_116 = arith.constant dense<0xFF800000> : vector<8xf32>
    %426 = vector.multi_reduction <maximumf>, %425, %cst_116 [1] : vector<8x128xf32> to vector<8xf32>
    %427 = vector.shape_cast %426 : vector<8xf32> to vector<8x1xf32>
    %428 = vector.broadcast %427 : vector<8x1xf32> to vector<8x128xf32>
    %429 = arith.cmpf oeq, %425, %428 : vector<8x128xf32>
    %c128_i32_117 = arith.constant 128 : i32
    %430 = vector.broadcast %c128_i32_117 : i32 to vector<8x128xi32>
    %431 = arith.select %429, %0, %430 : vector<8x128xi1>, vector<8x128xi32>
    %cst_118 = arith.constant dense<2147483647> : vector<8xi32>
    %432 = vector.multi_reduction <minsi>, %431, %cst_118 [1] : vector<8x128xi32> to vector<8xi32>
    %433 = vector.shape_cast %432 : vector<8xi32> to vector<8x1xi32>
    %434 = vector.broadcast %427 : vector<8x1xf32> to vector<8x128xf32>
    %435 = arith.subf %425, %434 : vector<8x128xf32>
    %436 = math.exp %435 : vector<8x128xf32>
    %cst_119 = arith.constant dense<0.000000e+00> : vector<8xf32>
    %437 = vector.multi_reduction <add>, %436, %cst_119 [1] : vector<8x128xf32> to vector<8xf32>
    %438 = vector.shape_cast %437 : vector<8xf32> to vector<8x1xf32>
    %439 = math.log %438 : vector<8x1xf32>
    %440 = arith.addf %427, %439 : vector<8x1xf32>
    %441 = vector.broadcast %440 : vector<8x1xf32> to vector<8x128xf32>
    %442 = arith.subf %425, %441 : vector<8x128xf32>
    %c7 = arith.constant 7 : index
    %c0_120 = arith.constant 0 : index
    %c0_121 = arith.constant 0 : index
    %443 = vector.load %arg4[%c7, %c0_120, %c0_121] : memref<10x8x128xf32, #tpu.memory_space<vmem>>, vector<1x8x128xf32>
    %444 = vector.shape_cast %443 : vector<1x8x128xf32> to vector<8x128xf32>
    %445 = vector.shape_cast %442 : vector<8x128xf32> to vector<1x8x128xf32>
    tpu.vector_store %arg4[%c7, %c0_120, %c0_121], %445 {strides = array<i32>} : memref<10x8x128xf32, #tpu.memory_space<vmem>>, vector<1x8x128xf32>,
    %446 = vector.broadcast %433 : vector<8x1xi32> to vector<8x128xi32>
    %447 = arith.cmpi eq, %0, %446 : vector<8x128xi32>
    %448 = arith.extui %447 : vector<8x128xi1> to vector<8x128xi32>
    %449 = arith.sitofp %448 : vector<8x128xi32> to vector<8x128xf32>
    %450 = arith.truncf %449 : vector<8x128xf32> to vector<8x128xbf16>
    %451 = arith.truncf %421 : vector<8x128xf32> to vector<8x128xbf16>
    %452 = tpu.concatenate %450, %451 in 1 : vector<8x128xbf16>, vector<8x128xbf16> -> vector<8x256xbf16>
    %c0_122 = arith.constant 0 : index
    %c0_123 = arith.constant 0 : index
    %453 = vector.load %arg1[%c0_122, %c0_123] : memref<256x512xbf16, #tpu.memory_space<vmem>>, vector<256x512xbf16>
    %cst_124 = arith.constant dense<0.000000e+00> : vector<8x512xf32>
    %454 = tpu.matmul %452, %453, %cst_124 {dimension_numbers = #tpu.dot_dimension_numbers<[1], [0], [0], [1], [0, 0, 1, 1], [], []>} : vector<8x256xbf16>, vector<256x512xbf16>, vector<8x512xf32> -> vector<8x512xf32>
    %455 = vector.extract_strided_slice %454 {offsets = [0, 0], sizes = [8, 128], strides = [1, 1]} : vector<8x512xf32> to vector<8x128xf32>
    %456 = arith.negf %455 : vector<8x128xf32>
    %457 = math.exp %456 : vector<8x128xf32>
    %cst_125 = arith.constant 1.000000e+00 : f32
    %458 = vector.broadcast %cst_125 : f32 to vector<8x128xf32>
    %459 = arith.addf %458, %457 : vector<8x128xf32>
    %460 = arith.divf %458, %459 : vector<8x128xf32>
    %461 = vector.extract_strided_slice %454 {offsets = [0, 128], sizes = [8, 128], strides = [1, 1]} : vector<8x512xf32> to vector<8x128xf32>
    %462 = arith.negf %461 : vector<8x128xf32>
    %463 = math.exp %462 : vector<8x128xf32>
    %cst_126 = arith.constant 1.000000e+00 : f32
    %464 = vector.broadcast %cst_126 : f32 to vector<8x128xf32>
    %465 = arith.addf %464, %463 : vector<8x128xf32>
    %466 = arith.divf %464, %465 : vector<8x128xf32>
    %467 = vector.extract_strided_slice %454 {offsets = [0, 256], sizes = [8, 128], strides = [1, 1]} : vector<8x512xf32> to vector<8x128xf32>
    %468 = vector.extract_strided_slice %454 {offsets = [0, 384], sizes = [8, 128], strides = [1, 1]} : vector<8x512xf32> to vector<8x128xf32>
    %469 = arith.mulf %460, %468 : vector<8x128xf32>
    %470 = arith.addf %467, %469 : vector<8x128xf32>
    %471 = math.tanh %470 : vector<8x128xf32>
    %cst_127 = arith.constant 1.000000e+00 : f32
    %472 = vector.broadcast %cst_127 : f32 to vector<8x128xf32>
    %473 = arith.subf %472, %466 : vector<8x128xf32>
    %474 = arith.mulf %473, %471 : vector<8x128xf32>
    %475 = arith.mulf %466, %421 : vector<8x128xf32>
    %476 = arith.addf %474, %475 : vector<8x128xf32>
    %477 = arith.truncf %476 : vector<8x128xf32> to vector<8x128xbf16>
    %c0_128 = arith.constant 0 : index
    %c0_129 = arith.constant 0 : index
    %478 = vector.load %arg2[%c0_128, %c0_129] : memref<128x128xbf16, #tpu.memory_space<vmem>>, vector<128x128xbf16>
    %cst_130 = arith.constant dense<0.000000e+00> : vector<8x128xf32>
    %479 = tpu.matmul %477, %478, %cst_130 {dimension_numbers = #tpu.dot_dimension_numbers<[1], [0], [0], [1], [0, 0, 1, 1], [], []>} : vector<8x128xbf16>, vector<128x128xbf16>, vector<8x128xf32> -> vector<8x128xf32>
    %480 = arith.addf %479, %3 : vector<8x128xf32>
    %cst_131 = arith.constant dense<0xFF800000> : vector<8xf32>
    %481 = vector.multi_reduction <maximumf>, %480, %cst_131 [1] : vector<8x128xf32> to vector<8xf32>
    %482 = vector.shape_cast %481 : vector<8xf32> to vector<8x1xf32>
    %483 = vector.broadcast %482 : vector<8x1xf32> to vector<8x128xf32>
    %484 = arith.cmpf oeq, %480, %483 : vector<8x128xf32>
    %c128_i32_132 = arith.constant 128 : i32
    %485 = vector.broadcast %c128_i32_132 : i32 to vector<8x128xi32>
    %486 = arith.select %484, %0, %485 : vector<8x128xi1>, vector<8x128xi32>
    %cst_133 = arith.constant dense<2147483647> : vector<8xi32>
    %487 = vector.multi_reduction <minsi>, %486, %cst_133 [1] : vector<8x128xi32> to vector<8xi32>
    %488 = vector.shape_cast %487 : vector<8xi32> to vector<8x1xi32>
    %489 = vector.broadcast %482 : vector<8x1xf32> to vector<8x128xf32>
    %490 = arith.subf %480, %489 : vector<8x128xf32>
    %491 = math.exp %490 : vector<8x128xf32>
    %cst_134 = arith.constant dense<0.000000e+00> : vector<8xf32>
    %492 = vector.multi_reduction <add>, %491, %cst_134 [1] : vector<8x128xf32> to vector<8xf32>
    %493 = vector.shape_cast %492 : vector<8xf32> to vector<8x1xf32>
    %494 = math.log %493 : vector<8x1xf32>
    %495 = arith.addf %482, %494 : vector<8x1xf32>
    %496 = vector.broadcast %495 : vector<8x1xf32> to vector<8x128xf32>
    %497 = arith.subf %480, %496 : vector<8x128xf32>
    %c8 = arith.constant 8 : index
    %c0_135 = arith.constant 0 : index
    %c0_136 = arith.constant 0 : index
    %498 = vector.load %arg4[%c8, %c0_135, %c0_136] : memref<10x8x128xf32, #tpu.memory_space<vmem>>, vector<1x8x128xf32>
    %499 = vector.shape_cast %498 : vector<1x8x128xf32> to vector<8x128xf32>
    %500 = vector.shape_cast %497 : vector<8x128xf32> to vector<1x8x128xf32>
    tpu.vector_store %arg4[%c8, %c0_135, %c0_136], %500 {strides = array<i32>} : memref<10x8x128xf32, #tpu.memory_space<vmem>>, vector<1x8x128xf32>,
    %501 = vector.broadcast %488 : vector<8x1xi32> to vector<8x128xi32>
    %502 = arith.cmpi eq, %0, %501 : vector<8x128xi32>
    %503 = arith.extui %502 : vector<8x128xi1> to vector<8x128xi32>
    %504 = arith.sitofp %503 : vector<8x128xi32> to vector<8x128xf32>
    %505 = arith.truncf %504 : vector<8x128xf32> to vector<8x128xbf16>
    %506 = arith.truncf %476 : vector<8x128xf32> to vector<8x128xbf16>
    %507 = tpu.concatenate %505, %506 in 1 : vector<8x128xbf16>, vector<8x128xbf16> -> vector<8x256xbf16>
    %c0_137 = arith.constant 0 : index
    %c0_138 = arith.constant 0 : index
    %508 = vector.load %arg1[%c0_137, %c0_138] : memref<256x512xbf16, #tpu.memory_space<vmem>>, vector<256x512xbf16>
    %cst_139 = arith.constant dense<0.000000e+00> : vector<8x512xf32>
    %509 = tpu.matmul %507, %508, %cst_139 {dimension_numbers = #tpu.dot_dimension_numbers<[1], [0], [0], [1], [0, 0, 1, 1], [], []>} : vector<8x256xbf16>, vector<256x512xbf16>, vector<8x512xf32> -> vector<8x512xf32>
    %510 = vector.extract_strided_slice %509 {offsets = [0, 0], sizes = [8, 128], strides = [1, 1]} : vector<8x512xf32> to vector<8x128xf32>
    %511 = arith.negf %510 : vector<8x128xf32>
    %512 = math.exp %511 : vector<8x128xf32>
    %cst_140 = arith.constant 1.000000e+00 : f32
    %513 = vector.broadcast %cst_140 : f32 to vector<8x128xf32>
    %514 = arith.addf %513, %512 : vector<8x128xf32>
    %515 = arith.divf %513, %514 : vector<8x128xf32>
    %516 = vector.extract_strided_slice %509 {offsets = [0, 128], sizes = [8, 128], strides = [1, 1]} : vector<8x512xf32> to vector<8x128xf32>
    %517 = arith.negf %516 : vector<8x128xf32>
    %518 = math.exp %517 : vector<8x128xf32>
    %cst_141 = arith.constant 1.000000e+00 : f32
    %519 = vector.broadcast %cst_141 : f32 to vector<8x128xf32>
    %520 = arith.addf %519, %518 : vector<8x128xf32>
    %521 = arith.divf %519, %520 : vector<8x128xf32>
    %522 = vector.extract_strided_slice %509 {offsets = [0, 256], sizes = [8, 128], strides = [1, 1]} : vector<8x512xf32> to vector<8x128xf32>
    %523 = vector.extract_strided_slice %509 {offsets = [0, 384], sizes = [8, 128], strides = [1, 1]} : vector<8x512xf32> to vector<8x128xf32>
    %524 = arith.mulf %515, %523 : vector<8x128xf32>
    %525 = arith.addf %522, %524 : vector<8x128xf32>
    %526 = math.tanh %525 : vector<8x128xf32>
    %cst_142 = arith.constant 1.000000e+00 : f32
    %527 = vector.broadcast %cst_142 : f32 to vector<8x128xf32>
    %528 = arith.subf %527, %521 : vector<8x128xf32>
    %529 = arith.mulf %528, %526 : vector<8x128xf32>
    %530 = arith.mulf %521, %476 : vector<8x128xf32>
    %531 = arith.addf %529, %530 : vector<8x128xf32>
    %532 = arith.truncf %531 : vector<8x128xf32> to vector<8x128xbf16>
    %c0_143 = arith.constant 0 : index
    %c0_144 = arith.constant 0 : index
    %533 = vector.load %arg2[%c0_143, %c0_144] : memref<128x128xbf16, #tpu.memory_space<vmem>>, vector<128x128xbf16>
    %cst_145 = arith.constant dense<0.000000e+00> : vector<8x128xf32>
    %534 = tpu.matmul %532, %533, %cst_145 {dimension_numbers = #tpu.dot_dimension_numbers<[1], [0], [0], [1], [0, 0, 1, 1], [], []>} : vector<8x128xbf16>, vector<128x128xbf16>, vector<8x128xf32> -> vector<8x128xf32>
    %535 = arith.addf %534, %3 : vector<8x128xf32>
    %cst_146 = arith.constant dense<0xFF800000> : vector<8xf32>
    %536 = vector.multi_reduction <maximumf>, %535, %cst_146 [1] : vector<8x128xf32> to vector<8xf32>
    %537 = vector.shape_cast %536 : vector<8xf32> to vector<8x1xf32>
    %538 = vector.broadcast %537 : vector<8x1xf32> to vector<8x128xf32>
    %539 = arith.subf %535, %538 : vector<8x128xf32>
    %540 = math.exp %539 : vector<8x128xf32>
    %cst_147 = arith.constant dense<0.000000e+00> : vector<8xf32>
    %541 = vector.multi_reduction <add>, %540, %cst_147 [1] : vector<8x128xf32> to vector<8xf32>
    %542 = vector.shape_cast %541 : vector<8xf32> to vector<8x1xf32>
    %543 = math.log %542 : vector<8x1xf32>
    %544 = arith.addf %537, %543 : vector<8x1xf32>
    %545 = vector.broadcast %544 : vector<8x1xf32> to vector<8x128xf32>
    %546 = arith.subf %535, %545 : vector<8x128xf32>
    %c9 = arith.constant 9 : index
    %c0_148 = arith.constant 0 : index
    %c0_149 = arith.constant 0 : index
    %547 = vector.load %arg4[%c9, %c0_148, %c0_149] : memref<10x8x128xf32, #tpu.memory_space<vmem>>, vector<1x8x128xf32>
    %548 = vector.shape_cast %547 : vector<1x8x128xf32> to vector<8x128xf32>
    %549 = vector.shape_cast %546 : vector<8x128xf32> to vector<1x8x128xf32>
    tpu.vector_store %arg4[%c9, %c0_148, %c0_149], %549 {strides = array<i32>} : memref<10x8x128xf32, #tpu.memory_space<vmem>>, vector<1x8x128xf32>,
    %c0_150 = arith.constant 0 : index
    %c0_151 = arith.constant 0 : index
    %550 = vector.load %arg5[%c0_150, %c0_151] : memref<8x128xf32, #tpu.memory_space<vmem>>, vector<8x128xf32>
    tpu.vector_store %arg5[%c0_150, %c0_151], %531 {strides = array<i32>} : memref<8x128xf32, #tpu.memory_space<vmem>>, vector<8x128xf32>,
    return
  }
}

</mosaic_0001>

<bundles_post_ra>
// kernel: tpu_custom_call.1
= control target key start
LH: loop header
LB: loop body
LE: loop exit
PB: predicated region body
PF: predicated region fallthrough
CT: control target
= control target key end

     0   :  { %11 = vsyncpa [#allocation3], 0  ;;  %s9776_s0 = inlined_call_operand.hbm [shape: f32[8,128], index: 0, kind: input, shape index: {}]   ;;  %s9777_s1 = inlined_call_operand.hbm [shape: bf16[256,512], index: 1, kind: input, shape index: {}]   ;;  %s9778_s2 = inlined_call_operand.hbm [shape: bf16[128,128], index: 2, kind: input, shape index: {}]   ;;  %s9779_s3 = inlined_call_operand.vmem [shape: f32[1,128], index: 3, kind: input, shape index: {}]   ;;  %s9780_s4 = inlined_call_operand.hbm [shape: f32[10,8,128], index: 4, kind: output, shape index: {0}]   ;;  %s9781_s5 = inlined_call_operand.hbm [shape: f32[8,128], index: 5, kind: output, shape index: {1}]  }
   0x1   :  { %12 = vsyncpa [#allocation6], 0 }
   0x2   :  { %13 = vsyncpa [#allocation4], 0 }
   0x3   :  { %14 = vsyncpa [#allocation10], 0  ;;  %s8251_s18 = smov [#allocation5]  }
   0x4   :  { %s30_s19 = sshll.u32 %s8251_s18, 4  ;;  %s31_s19 = int_to_ptr.vmem [resolvable:$true] %s30_s19 }
   0x5   :  { %s8151_s20 = scalar_lea.vmem %s31_s19, 8192  ;;  %p8156_p1 = scmp.lt.s32.totalorder %s31_s19, %s31_s19 }
   0x6   :  { %p8152_p0 = scmp.ne.s32.totalorder %s31_s19, %s8151_s20  ;;  %p8157_p2 = scmp.lt.s32.totalorder %s8151_s20, %s8151_s20 }
   0x8   :  { %p8158_p3 = por %p8157_p2, %p8156_p1 }
   0xa   :  { %p8159_p4 = pnand %p8158_p3, %p8152_p0 }
   0xc   :  { %8162 = shalt.err (!%p8159_p4)
}
   0xd   :  { %s8252_s21 = smov 256   ;;  %s8253_s22 = smov 16  }
   0xe   :  { %36 = dma.hbm_to_vmem [thread:$0]  %s9777_s1, 8192, %s31_s19, [#allocation6], %s8252_s21, %s8252_s21, %s8253_s22  }
   0xf   :  { %s8254_s25 = smov [#allocation2]   ;;  %s8255_s27 = smov [#allocation7]  }
  0x10   :  { %s21_s26 = sshll.u32 %s8254_s25, 4  ;;  %s42_s28 = sshll.u32 %s8255_s27, 4  ;;  %s22_s26 = int_to_ptr.vmem [resolvable:$true] %s21_s26  ;;  %s43_s28 = int_to_ptr.vmem [resolvable:$true] %s42_s28 }
  0x11   :  { %s8171_s29 = scalar_lea.vmem %s22_s26, 128  ;;  %p8176_p6 = scmp.lt.s32.totalorder %s22_s26, %s22_s26 }
  0x12   :  { %p8172_p5 = scmp.ne.s32.totalorder %s22_s26, %s8171_s29  ;;  %p8177_p7 = scmp.lt.s32.totalorder %s8171_s29, %s8171_s29 }
  0x14   :  { %p8178_p8 = por %p8177_p7, %p8176_p6 }
  0x16   :  { %p8179_p9 = pnand %p8178_p8, %p8172_p5 }
  0x18   :  { %8182 = shalt.err (!%p8179_p9)
}
  0x19   :  { %24 = dma.hbm_to_vmem [thread:$0]  %s9776_s0, 128, %s22_s26, [#allocation3]  }
  0x1a   :  { %s8191_s7 = scalar_lea.vmem %s43_s28, 1024  ;;  %p8196_p11 = scmp.lt.s32.totalorder %s43_s28, %s43_s28 }
  0x1b   :  { %p8192_p10 = scmp.ne.s32.totalorder %s43_s28, %s8191_s7  ;;  %p8197_p12 = scmp.lt.s32.totalorder %s8191_s7, %s8191_s7 }
  0x1d   :  { %p8198_p13 = por %p8197_p12, %p8196_p11 }
  0x1f   :  { %p8199_p0 = pnand %p8198_p13, %p8192_p10 }
  0x21   :  { %8202 = shalt.err (!%p8199_p0)
}
  0x22   :  { %s8256_s1 = smov 64   ;;  %s8257_s8 = smov 4  }
  0x23   :  { %48 = dma.hbm_to_vmem [thread:$0]  %s9778_s2, 1024, %s43_s28, [#allocation6], %s8256_s1, %s8256_s1, %s8257_s8  }
  0x24   :  { %8243 = dma.done.wait [#allocation3], 128  }
  0x25   :  { %8244 = vsyncadd [#allocation3], 4294967168 }
  0x26   :  { %8245 = dma.done.wait [#allocation6], 9216  }
  0x27   :  { %8246 = vsyncadd [#allocation6], 4294958080  ;;  %v8304_v0 = vld [vmem:[#allocation5 + $0xe4] ss:$16 sps:$4 sm:$0xff]   ;;  %v8306_v1 = vld [vmem:[#allocation5 + $0xe0] ss:$16 sps:$4 sm:$0xff]   ;;  %v61_v39 = vlaneseq }
  0x28   :  { %460 = vmatprep.subr.bf16.mxu0 %v8304_v0  ;;  %v8309_v2 = vld [vmem:[#allocation5 + $0xc4] ss:$16 sps:$4 sm:$0xff]   ;;  %v8312_v3 = vld [vmem:[#allocation5 + $0xc0] ss:$16 sps:$4 sm:$0xff]   ;;  %v7433_v7 = vld [vmem:[#allocation5 + $0xec] ss:$16 sps:$4 sm:$0xff]  }
  0x29   :  { %461 = vmatpush1.bf16.msra.mxu0 %v8306_v1  ;;  %v8315_v4 = vld [vmem:[#allocation5 + $0xa4] ss:$16 sps:$4 sm:$0xff]   ;;  %v8318_v5 = vld [vmem:[#allocation5 + $0xa0] ss:$16 sps:$4 sm:$0xff]   ;;  %v7436_v8 = vld [vmem:[#allocation5 + $0xe8] ss:$16 sps:$4 sm:$0xff]   ;;  %501 = vmatprep.subr.bf16.mxu1 %v7433_v7 }
  0x2a   :  { %462 = vmatprep.subr.bf16.mxu0 %v8309_v2  ;;  %v8321_v6 = vld [vmem:[#allocation5 + $0x84] ss:$16 sps:$4 sm:$0xff]   ;;  %v8324_v9 = vld [vmem:[#allocation5 + $0x80] ss:$16 sps:$4 sm:$0xff]   ;;  %502 = vmatpush1.bf16.msra.mxu1 %v7436_v8  ;;  %v7439_v11 = vld [vmem:[#allocation5 + $0xcc] ss:$16 sps:$4 sm:$0xff]  }
  0x2b   :  { %v8327_v10 = vld [vmem:[#allocation5 + $0x64] ss:$16 sps:$4 sm:$0xff]   ;;  %v7442_v12 = vld [vmem:[#allocation5 + $0xc8] ss:$16 sps:$4 sm:$0xff]   ;;  %503 = vmatprep.subr.bf16.mxu1 %v7439_v11  ;;  %v8330_v13 = vld [vmem:[#allocation5 + $0x60] ss:$16 sps:$4 sm:$0xff]  }
  0x2c   :  { %v8332_v14 = vld [vmem:[#allocation5 + $0x44] ss:$16 sps:$4 sm:$0xff]   ;;  %v7445_v15 = vld [vmem:[#allocation5 + $0xac] ss:$16 sps:$4 sm:$0xff]   ;;  %v7448_v16 = vld [vmem:[#allocation5 + $0xa8] ss:$16 sps:$4 sm:$0xff]  }
  0x2d   :  { %463 = vmatpush1.bf16.msra.mxu0 %v8312_v3  ;;  %v7451_v17 = vld [vmem:[#allocation5 + $0x8c] ss:$16 sps:$4 sm:$0xff]   ;;  %v8336_v18 = vld [vmem:[#allocation5 + $0x40] ss:$16 sps:$4 sm:$0xff]   ;;  %v8339_v19 = vld [vmem:[#allocation5 + $0x24] ss:$16 sps:$4 sm:$0xff]  }
  0x2e   :  { %464 = vmatprep.subr.bf16.mxu0 %v8315_v4  ;;  %504 = vmatpush1.bf16.msra.mxu1 %v7442_v12  ;;  %v7454_v20 = vld [vmem:[#allocation5 + $0x88] ss:$16 sps:$4 sm:$0xff]   ;;  %v7457_v21 = vld [vmem:[#allocation5 + $0x6c] ss:$16 sps:$4 sm:$0xff]   ;;  %v8342_v22 = vld [vmem:[#allocation5 + $0x20] ss:$16 sps:$4 sm:$0xff]  }
  0x2f   :  { %505 = vmatprep.subr.bf16.mxu1 %v7445_v15  ;;  %v8344_v23 = vld [vmem:[#allocation5 + $0x4] ss:$16 sps:$4 sm:$0xff]   ;;  %v7460_v24 = vld [vmem:[#allocation5 + $0x68] ss:$16 sps:$4 sm:$0xff]   ;;  %v7463_v25 = vld [vmem:[#allocation5 + $0x4c] ss:$16 sps:$4 sm:$0xff]  }
  0x30   :  { %v8348_v26 = vld [vmem:[#allocation5] ss:$16 sps:$4 sm:$0xff]   ;;  %v8351_v27 = vld [vmem:[#allocation5 + $0x1e4] ss:$16 sps:$4 sm:$0xff]   ;;  %v7466_v28 = vld [vmem:[#allocation5 + $0x48] ss:$16 sps:$4 sm:$0xff]  }
  0x31   :  { %465 = vmatpush1.bf16.msra.mxu0 %v8318_v5  ;;  %v7469_v29 = vld [vmem:[#allocation5 + $0x2c] ss:$16 sps:$4 sm:$0xff]   ;;  %v8354_v30 = vld [vmem:[#allocation5 + $0x1e0] ss:$16 sps:$4 sm:$0xff]   ;;  %v8356_v31 = vld [vmem:[#allocation5 + $0x1c4] ss:$16 sps:$4 sm:$0xff]  }
  0x32   :  { %466 = vmatprep.subr.bf16.mxu0 %v8321_v6  ;;  %506 = vmatpush1.bf16.msra.mxu1 %v7448_v16  ;;  %v7472_v32 = vld [vmem:[#allocation5 + $0x28] ss:$16 sps:$4 sm:$0xff]   ;;  %v7475_v33 = vld [vmem:[#allocation5 + $0xc] ss:$16 sps:$4 sm:$0xff]   ;;  %v8359_v34 = vld [vmem:[#allocation5 + $0x1c0] ss:$16 sps:$4 sm:$0xff]  }
  0x33   :  { %507 = vmatprep.subr.bf16.mxu1 %v7451_v17  ;;  %v70_v35 = vld [vmem:[#allocation2] sm:$0xff]  ;;  %v8362_v36 = vld [vmem:[#allocation5 + $0x1a4] ss:$16 sps:$4 sm:$0xff]   ;;  %v8365_v41 = vld [vmem:[#allocation5 + $0x1a0] ss:$16 sps:$4 sm:$0xff]   ;;  %v8371_v44 = vand.u32 127, %v61_v39 }
  0x34   :  { %v75_v37 = vpack.c.bf16 %v70_v35, %v70_v35  ;;  %v7478_v38 = vld [vmem:[#allocation5 + $0x8] ss:$16 sps:$4 sm:$0xff]   ;;  %v7481_v40 = vld [vmem:[#allocation5 + $0x1ec] ss:$16 sps:$4 sm:$0xff]   ;;  %v8368_v42 = vld [vmem:[#allocation5 + $0x184] ss:$16 sps:$4 sm:$0xff]  }
  0x35   :  { %467 = vmatpush1.bf16.msra.mxu0 %v8324_v9  ;;  %v7484_v43 = vld [vmem:[#allocation5 + $0x1e8] ss:$16 sps:$4 sm:$0xff]   ;;  %v8373_v45 = vld [vmem:[#allocation5 + $0x180] ss:$16 sps:$4 sm:$0xff]   ;;  %v7487_v46 = vld [vmem:[#allocation5 + $0x1cc] ss:$16 sps:$4 sm:$0xff]  }
  0x36   :  { %468 = vmatprep.subr.bf16.mxu0 %v8327_v10  ;;  %508 = vmatpush1.bf16.msra.mxu1 %v7454_v20  ;;  %v8375_v47 = vld [vmem:[#allocation5 + $0x164] ss:$16 sps:$4 sm:$0xff]   ;;  %v7490_v48 = vld [vmem:[#allocation5 + $0x1c8] ss:$16 sps:$4 sm:$0xff]   ;;  %v7491_v49 = vld [vmem:[#allocation5 + $0x1ac] ss:$16 sps:$4 sm:$0xff]  }
  0x37   :  { %509 = vmatprep.subr.bf16.mxu1 %v7457_v21  ;;  %492 = vmatprep.mubr.bf16.mxu0 %v75_v37  ;;  %vm71_vm0 = vcmp.eq.s32.totalorder %v8371_v44, 0  ;;  %v8380_v50 = vld [vmem:[#allocation5 + $0x160] ss:$16 sps:$4 sm:$0xff]   ;;  %v8382_v51 = vld [vmem:[#allocation5 + $0x144] ss:$16 sps:$4 sm:$0xff]   ;;  %vm8260_vm2 = vmmov 0  }
  0x38   :  { %533 = vmatprep.mubr.bf16.mxu1 %v75_v37  ;;  %v7493_v52 = vld [vmem:[#allocation5 + $0x1a8] ss:$16 sps:$4 sm:$0xff]   ;;  %v7494_v53 = vld [vmem:[#allocation5 + $0x18c] ss:$16 sps:$4 sm:$0xff]   ;;  %v8386_v54 = vld [vmem:[#allocation5 + $0x140] ss:$16 sps:$4 sm:$0xff]  }
  0x39   :  { %469 = vmatpush1.bf16.msra.mxu0 %v8330_v13  ;;  %v7479_v55 = vld [vmem:[#allocation5 + $0x124] ss:$16 sps:$4 sm:$0xff]   ;;  %v7496_v56 = vld [vmem:[#allocation5 + $0x188] ss:$16 sps:$4 sm:$0xff]   ;;  %v7497_v57 = vld [vmem:[#allocation5 + $0x16c] ss:$16 sps:$4 sm:$0xff]  }
  0x3a   :  { %470 = vmatprep.subr.bf16.mxu0 %v8332_v14  ;;  %510 = vmatpush1.bf16.msra.mxu1 %v7460_v24  ;;  %v7483_v58 = vld [vmem:[#allocation5 + $0x120] ss:$16 sps:$4 sm:$0xff]   ;;  %v7485_v59 = vld [vmem:[#allocation5 + $0x104] ss:$16 sps:$4 sm:$0xff]   ;;  %v7499_v60 = vld [vmem:[#allocation5 + $0x168] ss:$16 sps:$4 sm:$0xff]  }
  0x3b   :  { %511 = vmatprep.subr.bf16.mxu1 %v7463_v25  ;;  %vm8394_vm1 = vmpackc.low %vm71_vm0, %vm71_vm0  ;;  %v7500_v62 = vld [vmem:[#allocation5 + $0x14c] ss:$16 sps:$4 sm:$0xff]   ;;  %v7489_v63 = vld [vmem:[#allocation5 + $0x100] ss:$16 sps:$4 sm:$0xff]   ;;  %v9782_v15 = vmov 1.0|1.0  }
  0x3c   :  { %v8398_v7 = vld [vmem:[#allocation5 + $0x148] ss:$16 sps:$4 sm:$0xff]   ;;  %v8400_v8 = vld [vmem:[#allocation5 + $0x12c] ss:$16 sps:$4 sm:$0xff]  }
  0x3d   :  { %471 = vmatpush1.bf16.msra.mxu0 %v8336_v18  ;;  %v8402_v11 = vld [vmem:[#allocation5 + $0x128] ss:$16 sps:$4 sm:$0xff]   ;;  %v8404_v12 = vld [vmem:[#allocation5 + $0x10c] ss:$16 sps:$4 sm:$0xff]  }
  0x3e   :  { %472 = vmatprep.subr.bf16.mxu0 %v8339_v19  ;;  %512 = vmatpush1.bf16.msra.mxu1 %v7466_v28  ;;  %v8411_v16 = vld [vmem:[#allocation5 + $0x108] ss:$16 sps:$4 sm:$0xff]   ;;  %v8134_v61 = vld [vmem:[#allocation5 + $0x1ac] ss:$16 sps:$4 sm:$0xff]  }
  0x3f   :  { %513 = vmatprep.subr.bf16.mxu1 %v7469_v29  ;;  %v8114_v37 = vld [vmem:[#allocation2] sm:$0xff] }
  0x41   :  { %473 = vmatpush1.bf16.msra.mxu0 %v8342_v22 }
  0x42   :  { %474 = vmatprep.subr.bf16.mxu0 %v8344_v23  ;;  %514 = vmatpush1.bf16.msra.mxu1 %v7472_v32 }
  0x43   :  { %515 = vmatprep.subr.bf16.mxu1 %v7475_v33 }
  0x45   :  { %475 = vmatpush1.bf16.msra.mxu0 %v8348_v26 }
  0x46   :  { %476 = vmatprep.subr.bf16.mxu0 %v8351_v27  ;;  %516 = vmatpush1.bf16.msra.mxu1 %v7478_v38 }
  0x47   :  { %517 = vmatprep.subr.bf16.mxu1 %v7481_v40 }
  0x49   :  { %477 = vmatpush2.bf16.msra.mxu0 %v8354_v30 }
  0x4a   :  { %478 = vmatprep.subr.bf16.mxu0 %v8356_v31  ;;  %518 = vmatpush2.bf16.msra.mxu1 %v7484_v43  ;;  %v8117_v43 = vld [vmem:[#allocation5 + $0xc8] ss:$16 sps:$4 sm:$0xff]  }
  0x4b   :  { %519 = vmatprep.subr.bf16.mxu1 %v7487_v46  ;;  %v8119_v46 = vld [vmem:[#allocation5 + $0xa8] ss:$16 sps:$4 sm:$0xff]  }
  0x4d   :  { %479 = vmatpush2.bf16.msra.mxu0 %v8359_v34 }
  0x4e   :  { %480 = vmatprep.subr.bf16.mxu0 %v8362_v36  ;;  %520 = vmatpush2.bf16.msra.mxu1 %v7490_v48  ;;  %v8121_v48 = vld [vmem:[#allocation5 + $0x88] ss:$16 sps:$4 sm:$0xff]  }
  0x4f   :  { %521 = vmatprep.subr.bf16.mxu1 %v7491_v49  ;;  %v8122_v49 = vld [vmem:[#allocation5 + $0x6c] ss:$16 sps:$4 sm:$0xff]  }
  0x51   :  { %481 = vmatpush2.bf16.msra.mxu0 %v8365_v41 }
  0x52   :  { %482 = vmatprep.subr.bf16.mxu0 %v8368_v42  ;;  %522 = vmatpush2.bf16.msra.mxu1 %v7493_v52  ;;  %v8125_v52 = vld [vmem:[#allocation5 + $0x48] ss:$16 sps:$4 sm:$0xff]  }
  0x53   :  { %523 = vmatprep.subr.bf16.mxu1 %v7494_v53  ;;  %v8126_v53 = vld [vmem:[#allocation5 + $0x2c] ss:$16 sps:$4 sm:$0xff]  }
  0x55   :  { %483 = vmatpush2.bf16.msra.mxu0 %v8373_v45 }
  0x56   :  { %484 = vmatprep.subr.bf16.mxu0 %v8375_v47  ;;  %524 = vmatpush2.bf16.msra.mxu1 %v7496_v56  ;;  %v8129_v56 = vld [vmem:[#allocation5 + $0x8] ss:$16 sps:$4 sm:$0xff]  }
  0x57   :  { %525 = vmatprep.subr.bf16.mxu1 %v7497_v57  ;;  %v8130_v57 = vld [vmem:[#allocation5 + $0x1ec] ss:$16 sps:$4 sm:$0xff]  }
  0x59   :  { %485 = vmatpush2.bf16.msra.mxu0 %v8380_v50 }
  0x5a   :  { %486 = vmatprep.subr.bf16.mxu0 %v8382_v51  ;;  %526 = vmatpush2.bf16.msra.mxu1 %v7499_v60  ;;  %v8133_v60 = vld [vmem:[#allocation5 + $0x1c8] ss:$16 sps:$4 sm:$0xff]  }
  0x5b   :  { %527 = vmatprep.subr.bf16.mxu1 %v7500_v62  ;;  %v8135_v62 = vld [vmem:[#allocation5 + $0x1a8] ss:$16 sps:$4 sm:$0xff]  }
  0x5d   :  { %487 = vmatpush2.bf16.msra.mxu0 %v8386_v54 }
  0x5e   :  { %488 = vmatprep.subr.bf16.mxu0 %v7479_v55  ;;  %528 = vmatpush2.bf16.msra.mxu1 %v8398_v7 }
  0x5f   :  { %529 = vmatprep.subr.bf16.mxu1 %v8400_v8 }
  0x61   :  { %489 = vmatpush2.bf16.msra.mxu0 %v7483_v58 }
  0x62   :  { %490 = vmatprep.subr.bf16.mxu0 %v7485_v59  ;;  %530 = vmatpush2.bf16.msra.mxu1 %v8402_v11 }
  0x63   :  { %531 = vmatprep.subr.bf16.mxu1 %v8404_v12 }
  0x65   :  { %491 = vmatpush2.bf16.msra.mxu0 %v7489_v63 }
  0x66   :  { %532 = vmatpush2.bf16.msra.mxu1 %v8411_v16 }
  0x67   :  { %1082 = vmatprep.subr.bf16.mxu1 %v8304_v0  ;;  %v9784_v0 = vmov 0.0  }
  0x68   :  { %6385 = vmatmul.mubr.msk.bf16.vlgmr.msra.gmra.mxu0 %vm8394_vm1, %v9782_v15  ;;  %7199 = vmatprep.subr.bf16.mxu0 %v9784_v0 }
  0x69   :  { %6387 = vmatmul.mubr.msk.bf16.vlgmr.msra.gmra.mxu1 %vm8394_vm1, %v9782_v15  ;;  %7215 = vmatprep.mubr.msk.bf16.mxu0 %vm8260_vm2, %v9784_v0 }
  0x6a   :  { %1083 = vmatpush1.bf16.msra.mxu1 %v8306_v1  ;;  %v7509_v1 = vld [vmem:[#allocation7 + $0x38] sm:$0xff]  }
  0x6b   :  { %1084 = vmatprep.subr.bf16.mxu1 %v8309_v2  ;;  %7200 = vmatpush3.bf16.msra.mxu0 %v7509_v1  ;;  %v7510_v2 = vld [vmem:[#allocation7 + $0x30] sm:$0xff]   ;;  %v8137_v1 = vld [vmem:[#allocation5 + $0x188] ss:$16 sps:$4 sm:$0xff]  }
  0x6c   :  { %7201 = vmatprep.subr.bf16.mxu0 %v9784_v0 }
  0x6e   :  { %1085 = vmatpush1.bf16.msra.mxu1 %v8312_v3  ;;  %v7511_v3 = vld [vmem:[#allocation7 + $0x28] sm:$0xff]  }
  0x6f   :  { %1086 = vmatprep.subr.bf16.mxu1 %v8315_v4  ;;  %7202 = vmatpush3.bf16.msra.mxu0 %v7510_v2  ;;  %v7512_v4 = vld [vmem:[#allocation7 + $0x20] sm:$0xff]   ;;  %v8138_v2 = vld [vmem:[#allocation5 + $0x16c] ss:$16 sps:$4 sm:$0xff]  }
  0x70   :  { %7203 = vmatprep.subr.bf16.mxu0 %v9784_v0 }
  0x72   :  { %1087 = vmatpush1.bf16.msra.mxu1 %v8318_v5  ;;  %v7513_v5 = vld [vmem:[#allocation7 + $0x18] sm:$0xff]  }
  0x73   :  { %1088 = vmatprep.subr.bf16.mxu1 %v8321_v6  ;;  %7204 = vmatpush3.bf16.msra.mxu0 %v7511_v3  ;;  %v7514_v6 = vld [vmem:[#allocation7 + $0x10] sm:$0xff]   ;;  %v8139_v3 = vld [vmem:[#allocation5 + $0x168] ss:$16 sps:$4 sm:$0xff]  }
  0x74   :  { %7205 = vmatprep.subr.bf16.mxu0 %v9784_v0 }
  0x76   :  { %1089 = vmatpush1.bf16.msra.mxu1 %v8324_v9  ;;  %v7515_v9 = vld [vmem:[#allocation7 + $0x8] sm:$0xff]  }
  0x77   :  { %1090 = vmatprep.subr.bf16.mxu1 %v8327_v10  ;;  %7206 = vmatpush3.bf16.msra.mxu0 %v7512_v4  ;;  %v7516_v10 = vld [vmem:[#allocation7] sm:$0xff]   ;;  %v8140_v4 = vld [vmem:[#allocation5 + $0x14c] ss:$16 sps:$4 sm:$0xff]  }
  0x78   :  { %7207 = vmatprep.subr.bf16.mxu0 %v9784_v0 }
  0x7a   :  { %1091 = vmatpush1.bf16.msra.mxu1 %v8330_v13  ;;  %v8113_v13 = vld [vmem:[#allocation5 + $0xec] ss:$16 sps:$4 sm:$0xff]  }
  0x7b   :  { %1092 = vmatprep.subr.bf16.mxu1 %v8332_v14  ;;  %7208 = vmatpush3.bf16.msra.mxu0 %v7513_v5  ;;  %v8470_v5 = vld [vmem:[%s9779_s3] ss:$0 sm:$0xff] }
  0x7c   :  { %7209 = vmatprep.subr.bf16.mxu0 %v9784_v0  ;;  %9864 = vst [vmem:[#allocation15_spill] sm:$0xff] %v8470_v5 }
  0x7e   :  { %1093 = vmatpush1.bf16.msra.mxu1 %v8336_v18 }
  0x7f   :  { %1094 = vmatprep.subr.bf16.mxu1 %v8339_v19  ;;  %7210 = vmatpush3.bf16.msra.mxu0 %v7514_v6 }
  0x80   :  { %7211 = vmatprep.subr.bf16.mxu0 %v9784_v0 }
  0x82   :  { %1095 = vmatpush1.bf16.msra.mxu1 %v8342_v22 }
  0x83   :  { %1096 = vmatprep.subr.bf16.mxu1 %v8344_v23  ;;  %7212 = vmatpush3.bf16.msra.mxu0 %v7515_v9 }
  0x84   :  { %7213 = vmatprep.subr.bf16.mxu0 %v9784_v0 }
  0x86   :  { %1097 = vmatpush1.bf16.msra.mxu1 %v8348_v26 }
  0x87   :  { %1098 = vmatprep.subr.bf16.mxu1 %v8351_v27  ;;  %7214 = vmatpush3.bf16.msra.mxu0 %v7516_v10 }
  0x88   :  { %1123 = vmatprep.subr.bf16.mxu0 %v8113_v13 }
  0x8a   :  { %1099 = vmatpush2.bf16.msra.mxu1 %v8354_v30 }
  0x8b   :  { %1100 = vmatprep.subr.bf16.mxu1 %v8356_v31 }
  0x8e   :  { %1101 = vmatpush2.bf16.msra.mxu1 %v8359_v34 }
  0x8f   :  { %1102 = vmatprep.subr.bf16.mxu1 %v8362_v36 }
  0x92   :  { %1103 = vmatpush2.bf16.msra.mxu1 %v8365_v41  ;;  %v8115_v41 = vld [vmem:[#allocation5 + $0xe8] ss:$16 sps:$4 sm:$0xff]  }
  0x93   :  { %1104 = vmatprep.subr.bf16.mxu1 %v8368_v42  ;;  %v8116_v42 = vld [vmem:[#allocation5 + $0xcc] ss:$16 sps:$4 sm:$0xff]  }
  0x96   :  { %1105 = vmatpush2.bf16.msra.mxu1 %v8373_v45  ;;  %v8118_v45 = vld [vmem:[#allocation5 + $0xac] ss:$16 sps:$4 sm:$0xff]  }
  0x97   :  { %1106 = vmatprep.subr.bf16.mxu1 %v8375_v47  ;;  %v8120_v47 = vld [vmem:[#allocation5 + $0x8c] ss:$16 sps:$4 sm:$0xff]  }
  0x9a   :  { %1107 = vmatpush2.bf16.msra.mxu1 %v8380_v50  ;;  %v8123_v50 = vld [vmem:[#allocation5 + $0x68] ss:$16 sps:$4 sm:$0xff]  }
  0x9b   :  { %1108 = vmatprep.subr.bf16.mxu1 %v8382_v51  ;;  %v8124_v51 = vld [vmem:[#allocation5 + $0x4c] ss:$16 sps:$4 sm:$0xff]  }
  0x9e   :  { %1109 = vmatpush2.bf16.msra.mxu1 %v8386_v54  ;;  %v8127_v54 = vld [vmem:[#allocation5 + $0x28] ss:$16 sps:$4 sm:$0xff]  }
  0x9f   :  { %1110 = vmatprep.subr.bf16.mxu1 %v7479_v55  ;;  %v8128_v55 = vld [vmem:[#allocation5 + $0xc] ss:$16 sps:$4 sm:$0xff]  }
  0xa2   :  { %1111 = vmatpush2.bf16.msra.mxu1 %v7483_v58  ;;  %v8131_v58 = vld [vmem:[#allocation5 + $0x1e8] ss:$16 sps:$4 sm:$0xff]  }
  0xa3   :  { %1112 = vmatprep.subr.bf16.mxu1 %v7485_v59  ;;  %v8132_v59 = vld [vmem:[#allocation5 + $0x1cc] ss:$16 sps:$4 sm:$0xff]  }
  0xa6   :  { %1113 = vmatpush2.bf16.msra.mxu1 %v7489_v63  ;;  %v8136_v63 = vld [vmem:[#allocation5 + $0x18c] ss:$16 sps:$4 sm:$0xff]  }
  0xa7   :  { %7219 = vmatprep.subr.bf16.mxu1 %v9784_v0 }
 0x128   :  { %v494_v14 = vpop.f32.mrf.mxu0 }
 0x129   :  { %v6388_v17 = vmul.f32 -1.442695, %v494_v14  ;;  %v535_v22 = vpop.f32.mrf.mxu1 }
 0x12a   :  { %v496_v18 = vpop.f32.mrf.mxu0 }
 0x12b   :  { %7973 = vpow2.f32 %v6388_v17  ;;  %v6389_v21 = vmul.f32 -1.442695, %v496_v18  ;;  %v537_v23 = vpop.f32.mrf.mxu1 }
 0x12c   :  { %v498_v19 = vpop.f32.mrf.mxu0 }
 0x12d   :  { %7975 = vpow2.f32 %v6389_v21  ;;  %v539_v24 = vpop.f32.mrf.mxu1 }
 0x12e   :  { %v499_v20 = vpop.f32.mrf.mxu0 }
 0x12f   :  { %v540_v25 = vpop.f32.mrf.mxu1 }
 0x130   :  { %v7517_v25 = vld [vmem:[#allocation7 + $0x38] sm:$0xff]  }
 0x138   :  { %v7974_v26 = vpop.eup %7973 }
 0x139   :  { %v545_v27 = vadd.f32 1.0, %v7974_v26  ;;  %v7518_v26 = vld [vmem:[#allocation7 + $0x30] sm:$0xff]  }
 0x13a   :  { %v7976_v28 = vpop.eup %7975 }
 0x13b   :  { %7977 = vrcp.f32 %v545_v27  ;;  %v551_v29 = vadd.f32 1.0, %v7976_v28  ;;  %v7519_v27 = vld [vmem:[#allocation7 + $0x28] sm:$0xff]   ;;  %v7520_v28 = vld [vmem:[#allocation7 + $0x20] sm:$0xff]  }
 0x13d   :  { %7979 = vrcp.f32 %v551_v29  ;;  %v7521_v29 = vld [vmem:[#allocation7 + $0x18] sm:$0xff]  }
 0x148   :  { %v7978_v30 = vpop.eup %7977 }
 0x149   :  { %v554_v31 = vmul.f32 %v7978_v30, %v537_v23  ;;  %v7522_v30 = vld [vmem:[#allocation7 + $0x10] sm:$0xff]  }
 0x14a   :  { %v7980_v33 = vpop.eup %7979 }
 0x14b   :  { %v555_v32 = vadd.f32 %v554_v31, %v535_v22  ;;  %v557_v34 = vsub.f32 1.0, %v7980_v33  ;;  %v559_v38 = vmul.f32 %v8114_v37, %v7980_v33  ;;  %v7523_v31 = vld [vmem:[#allocation7 + $0x8] sm:$0xff]  }
 0x14d   :  { %7981 = vtanh.f32 %v555_v32  ;;  %v7524_v32 = vld [vmem:[#allocation7] sm:$0xff]  }
 0x15a   :  { %v7982_v35 = vpop.eup %7981 }
 0x15b   :  { %v558_v36 = vmul.f32 %v7982_v35, %v557_v34 }
 0x15d   :  { %v8458_v39 = vadd.f32 %v559_v38, %v558_v36 }
 0x15f   :  { %v561_v40 = vpack.c.bf16 %v8458_v39, %v8458_v39 }
 0x161   :  { %7216 = vmatmul.mubr.bf16.vlgmr.msra.gmra.mxu0 %v561_v40  ;;  %1114 = vmatprep.mubr.bf16.mxu1 %v561_v40 }
 0x162   :  { %1155 = vmatprep.mubr.bf16.mxu0 %v561_v40  ;;  %1124 = vmatpush1.bf16.msra.mxu0 %v8115_v41 }
 0x163   :  { %1125 = vmatprep.subr.bf16.mxu0 %v8116_v42 }
 0x166   :  { %1126 = vmatpush1.bf16.msra.mxu0 %v8117_v43 }
 0x167   :  { %1127 = vmatprep.subr.bf16.mxu0 %v8118_v45 }
 0x16a   :  { %1128 = vmatpush1.bf16.msra.mxu0 %v8119_v46 }
 0x16b   :  { %1129 = vmatprep.subr.bf16.mxu0 %v8120_v47 }
 0x16e   :  { %1130 = vmatpush1.bf16.msra.mxu0 %v8121_v48 }
 0x16f   :  { %1131 = vmatprep.subr.bf16.mxu0 %v8122_v49 }
 0x172   :  { %1132 = vmatpush1.bf16.msra.mxu0 %v8123_v50 }
 0x173   :  { %1133 = vmatprep.subr.bf16.mxu0 %v8124_v51 }
 0x176   :  { %1134 = vmatpush1.bf16.msra.mxu0 %v8125_v52 }
 0x177   :  { %1135 = vmatprep.subr.bf16.mxu0 %v8126_v53 }
 0x17a   :  { %1136 = vmatpush1.bf16.msra.mxu0 %v8127_v54 }
 0x17b   :  { %1137 = vmatprep.subr.bf16.mxu0 %v8128_v55 }
 0x17e   :  { %1138 = vmatpush1.bf16.msra.mxu0 %v8129_v56 }
 0x17f   :  { %1139 = vmatprep.subr.bf16.mxu0 %v8130_v57 }
 0x182   :  { %1140 = vmatpush2.bf16.msra.mxu0 %v8131_v58 }
 0x183   :  { %1141 = vmatprep.subr.bf16.mxu0 %v8132_v59 }
 0x186   :  { %1142 = vmatpush2.bf16.msra.mxu0 %v8133_v60 }
 0x187   :  { %1143 = vmatprep.subr.bf16.mxu0 %v8134_v61 }
 0x18a   :  { %1144 = vmatpush2.bf16.msra.mxu0 %v8135_v62 }
 0x18b   :  { %1145 = vmatprep.subr.bf16.mxu0 %v8136_v63 }
 0x18e   :  { %1146 = vmatpush2.bf16.msra.mxu0 %v8137_v1 }
 0x18f   :  { %1147 = vmatprep.subr.bf16.mxu0 %v8138_v2 }
 0x192   :  { %1148 = vmatpush2.bf16.msra.mxu0 %v8139_v3 }
 0x193   :  { %1149 = vmatprep.subr.bf16.mxu0 %v8140_v4  ;;  %v8513_v4 = vld [vmem:[#allocation5 + $0xe0] ss:$16 sps:$4 sm:$0xff]  }
 0x196   :  { %1150 = vmatpush2.bf16.msra.mxu0 %v8398_v7 }
 0x197   :  { %1151 = vmatprep.subr.bf16.mxu0 %v8400_v8 }
 0x19a   :  { %1152 = vmatpush2.bf16.msra.mxu0 %v8402_v11 }
 0x19b   :  { %1153 = vmatprep.subr.bf16.mxu0 %v8404_v12 }
 0x19e   :  { %1154 = vmatpush2.bf16.msra.mxu0 %v8411_v16 }
 0x221   :  { %v660_v6 = vpop.f32.mrf.mxu0 }
 0x222   :  { %v8473_v9 = vadd.f32 %v8470_v5, %v660_v6  ;;  %v8515_v6 = vld [vmem:[#allocation5 + $0xe4] ss:$16 sps:$4 sm:$0xff]  }
 0x223   :  { %v7217_v10 = vpop.f32.mrf.mxu0  ;;  %1705 = vmatprep.subr.bf16.mxu0 %v8515_v6 }
 0x224   :  { %9865 = vst [vmem:[#allocation16_spill] sm:$0xff] %v8473_v9  ;;  %666 = vmax.xlane.f32.xlu0 %v8473_v9  ;;  %v8517_v10 = vld [vmem:[#allocation5 + $0xe8] ss:$16 sps:$4 sm:$0xff]  }
 0x225   :  { %v663_v7 = vpop.f32.mrf.mxu0 }
 0x226   :  { %v8519_v7 = vld [vmem:[#allocation5 + $0xec] ss:$16 sps:$4 sm:$0xff]  }
 0x227   :  { %v7218_v8 = vpop.f32.mrf.mxu0 }
 0x228   :  { %v8521_v8 = vld [vmem:[#allocation5 + $0xc4] ss:$16 sps:$4 sm:$0xff]  }
 0x2ad   :  { %v8476_v13 = vpop.xlane.xlu0 %666 }
 0x2ae   :  { %9866 = vst [vmem:[#allocation17_spill] sm:$0xff] %v8476_v13  ;;  %vm668_vm3 = vcmp.eq.f32.partialorder %v8473_v9, %v8476_v13  ;;  %v8681_v9 = vld [vmem:[#allocation5 + $0x12c] ss:$16 sps:$4 sm:$0xff]   ;;  %v7609_v13 = vld [vmem:[#allocation5 + $0x120] ss:$16 sps:$4 sm:$0xff]  }
 0x2af   :  { %v669_v11 = vsel %vm668_vm3, %v8371_v44, 128  ;;  %9877 = vst [vmem:[#allocation28_spill] sm:$0xff] %v8681_v9 }
 0x2b0   :  { %v671_v12 = vshra.s32 %v669_v11, 16  ;;  %v670_v14 = vand.u32 65535, %v669_v11  ;;  %v8524_v11 = vld [vmem:[#allocation5 + $0xcc] ss:$16 sps:$4 sm:$0xff]  }
 0x2b2   :  { %v673_v16 = vcvt.s32.f32 %v671_v12  ;;  %v672_v18 = vcvt.s32.f32 %v670_v14  ;;  %v8528_v12 = vld [vmem:[#allocation5 + $0xc0] ss:$16 sps:$4 sm:$0xff]   ;;  %v8534_v14 = vld [vmem:[#allocation5 + $0xa4] ss:$16 sps:$4 sm:$0xff]  }
 0x2b4   :  { %674 = vmin.xlane.f32.xlu0 %v673_v16 }
 0x33d   :  { %v675_v17 = vpop.xlane.xlu0 %674 }
 0x33e   :  { %vm676_vm4 = vcmp.eq.f32.partialorder %v673_v16, %v675_v17  ;;  %v681_v20 = vcvt.f32.s32 %v675_v17  ;;  %v8532_v16 = vld [vmem:[#allocation5 + $0xc8] ss:$16 sps:$4 sm:$0xff]   ;;  %v8537_v17 = vld [vmem:[#allocation5 + $0xac] ss:$16 sps:$4 sm:$0xff]  }
 0x33f   :  { %v677_v19 = vsel %vm676_vm4, %v672_v18, inf  ;;  %v8540_v18 = vld [vmem:[#allocation5 + $0xa0] ss:$16 sps:$4 sm:$0xff]  }
 0x340   :  { %678 = vmin.xlane.f32.xlu1 %v677_v19  ;;  %v682_v22 = vshll.u32 %v681_v20, 16  ;;  %v8544_v19 = vld [vmem:[#allocation5 + $0xa8] ss:$16 sps:$4 sm:$0xff]   ;;  %v8546_v20 = vld [vmem:[#allocation5 + $0x84] ss:$16 sps:$4 sm:$0xff]  }
 0x3c9   :  { %v679_v21 = vpop.xlane.xlu1 %678 }
 0x3ca   :  { %v680_v23 = vcvt.f32.s32 %v679_v21  ;;  %v8549_v21 = vld [vmem:[#allocation5 + $0x8c] ss:$16 sps:$4 sm:$0xff]  }
 0x3cc   :  { %v683_v24 = vadd.s32 %v682_v22, %v680_v23  ;;  %v8552_v22 = vld [vmem:[#allocation5 + $0x80] ss:$16 sps:$4 sm:$0xff]   ;;  %v8556_v23 = vld [vmem:[#allocation5 + $0x88] ss:$16 sps:$4 sm:$0xff]  }
 0x3ce   :  { %vm694_vm5 = vcmp.eq.s32.totalorder %v8371_v44, %v683_v24  ;;  %v8558_v24 = vld [vmem:[#allocation5 + $0x64] ss:$16 sps:$4 sm:$0xff]  }
 0x3cf   :  { %vm6463_vm6 = vmpackc.low %vm694_vm5, %vm694_vm5 }
 0x3d0   :  { %6464 = vmatmul.mubr.msk.bf16.vlgmr.msra.gmra.mxu1 %vm6463_vm6, %v9782_v15  ;;  %6466 = vmatmul.mubr.msk.bf16.vlgmr.msra.gmra.mxu0 %vm6463_vm6, %v9782_v15  ;;  %v8669_v15 = vld [vmem:[#allocation5 + $0x14c] ss:$16 sps:$4 sm:$0xff]  }
 0x3d1   :  { %7235 = vmatprep.mubr.msk.bf16.mxu1 %vm8260_vm2, %v9784_v0  ;;  %7220 = vmatpush3.bf16.msra.mxu1 %v7517_v25  ;;  %v8561_v25 = vld [vmem:[#allocation5 + $0x6c] ss:$16 sps:$4 sm:$0xff]   ;;  %9875 = vst [vmem:[#allocation26_spill] sm:$0xff] %v8669_v15 }
 0x3d2   :  { %7221 = vmatprep.subr.bf16.mxu1 %v9784_v0  ;;  %1706 = vmatpush1.bf16.msra.mxu0 %v8513_v4 }
 0x3d3   :  { %1707 = vmatprep.subr.bf16.mxu0 %v8521_v8 }
 0x3d5   :  { %7222 = vmatpush3.bf16.msra.mxu1 %v7518_v26  ;;  %v8564_v26 = vld [vmem:[#allocation5 + $0x60] ss:$16 sps:$4 sm:$0xff]  }
 0x3d6   :  { %7223 = vmatprep.subr.bf16.mxu1 %v9784_v0  ;;  %1708 = vmatpush1.bf16.msra.mxu0 %v8528_v12 }
 0x3d7   :  { %1709 = vmatprep.subr.bf16.mxu0 %v8534_v14 }
 0x3d9   :  { %7224 = vmatpush3.bf16.msra.mxu1 %v7519_v27  ;;  %v8568_v27 = vld [vmem:[#allocation5 + $0x68] ss:$16 sps:$4 sm:$0xff]  }
 0x3da   :  { %7225 = vmatprep.subr.bf16.mxu1 %v9784_v0  ;;  %1710 = vmatpush1.bf16.msra.mxu0 %v8540_v18 }
 0x3db   :  { %1711 = vmatprep.subr.bf16.mxu0 %v8546_v20 }
 0x3dd   :  { %7226 = vmatpush3.bf16.msra.mxu1 %v7520_v28  ;;  %v8570_v28 = vld [vmem:[#allocation5 + $0x44] ss:$16 sps:$4 sm:$0xff]  }
 0x3de   :  { %7227 = vmatprep.subr.bf16.mxu1 %v9784_v0  ;;  %1712 = vmatpush1.bf16.msra.mxu0 %v8552_v22 }
 0x3df   :  { %1713 = vmatprep.subr.bf16.mxu0 %v8558_v24 }
 0x3e1   :  { %7228 = vmatpush3.bf16.msra.mxu1 %v7521_v29  ;;  %v8573_v29 = vld [vmem:[#allocation5 + $0x4c] ss:$16 sps:$4 sm:$0xff]  }
 0x3e2   :  { %7229 = vmatprep.subr.bf16.mxu1 %v9784_v0  ;;  %1714 = vmatpush1.bf16.msra.mxu0 %v8564_v26 }
 0x3e3   :  { %1715 = vmatprep.subr.bf16.mxu0 %v8570_v28 }
 0x3e5   :  { %7230 = vmatpush3.bf16.msra.mxu1 %v7522_v30  ;;  %v8576_v30 = vld [vmem:[#allocation5 + $0x40] ss:$16 sps:$4 sm:$0xff]  }
 0x3e6   :  { %7231 = vmatprep.subr.bf16.mxu1 %v9784_v0  ;;  %1716 = vmatpush1.bf16.msra.mxu0 %v8576_v30 }
 0x3e9   :  { %7232 = vmatpush3.bf16.msra.mxu1 %v7523_v31  ;;  %v8580_v31 = vld [vmem:[#allocation5 + $0x48] ss:$16 sps:$4 sm:$0xff]  }
 0x3ea   :  { %7233 = vmatprep.subr.bf16.mxu1 %v9784_v0  ;;  %v8672_v0 = vld [vmem:[#allocation5 + $0x140] ss:$16 sps:$4 sm:$0xff]  }
 0x3ed   :  { %7234 = vmatpush3.bf16.msra.mxu1 %v7524_v32  ;;  %v8582_v32 = vld [vmem:[#allocation5 + $0x24] ss:$16 sps:$4 sm:$0xff]  }
 0x3ee   :  { %1746 = vmatprep.subr.bf16.mxu1 %v8519_v7  ;;  %1717 = vmatprep.subr.bf16.mxu0 %v8582_v32 }
 0x490   :  { %v1116_v33 = vpop.f32.mrf.mxu1  ;;  %v1157_v34 = vpop.f32.mrf.mxu0 }
 0x491   :  { %v6467_v35 = vmul.f32 -1.442695, %v1116_v33  ;;  %v8585_v33 = vld [vmem:[#allocation5 + $0x2c] ss:$16 sps:$4 sm:$0xff]  }
 0x492   :  { %v1118_v36 = vpop.f32.mrf.mxu1  ;;  %v1159_v37 = vpop.f32.mrf.mxu0 }
 0x493   :  { %7983 = vpow2.f32 %v6467_v35  ;;  %v6468_v43 = vmul.f32 -1.442695, %v1118_v36  ;;  %v8592_v35 = vld [vmem:[#allocation5 + $0x28] ss:$16 sps:$4 sm:$0xff]   ;;  %v8594_v36 = vld [vmem:[#allocation5 + $0x4] ss:$16 sps:$4 sm:$0xff]  }
 0x494   :  { %v1120_v38 = vpop.f32.mrf.mxu1  ;;  %v1161_v40 = vpop.f32.mrf.mxu0 }
 0x495   :  { %7985 = vpow2.f32 %v6468_v43  ;;  %v8600_v38 = vld [vmem:[#allocation5] ss:$16 sps:$4 sm:$0xff]   ;;  %v8604_v40 = vld [vmem:[#allocation5 + $0x8] ss:$16 sps:$4 sm:$0xff]  }
 0x496   :  { %v1121_v41 = vpop.f32.mrf.mxu1  ;;  %v1162_v42 = vpop.f32.mrf.mxu0  ;;  %v8612_v43 = vld [vmem:[#allocation5 + $0x1e0] ss:$16 sps:$4 sm:$0xff]  }
 0x497   :  { %v8606_v41 = vld [vmem:[#allocation5 + $0x1e4] ss:$16 sps:$4 sm:$0xff]   ;;  %v8609_v42 = vld [vmem:[#allocation5 + $0x1ec] ss:$16 sps:$4 sm:$0xff]  }
 0x4a0   :  { %v7984_v45 = vpop.eup %7983 }
 0x4a1   :  { %v1167_v46 = vadd.f32 1.0, %v7984_v45  ;;  %v8616_v45 = vld [vmem:[#allocation5 + $0x1e8] ss:$16 sps:$4 sm:$0xff]  }
 0x4a2   :  { %v7986_v47 = vpop.eup %7985 }
 0x4a3   :  { %7987 = vrcp.f32 %v1167_v46  ;;  %v1173_v48 = vadd.f32 1.0, %v7986_v47  ;;  %v8618_v46 = vld [vmem:[#allocation5 + $0x1c4] ss:$16 sps:$4 sm:$0xff]   ;;  %v8621_v47 = vld [vmem:[#allocation5 + $0x1cc] ss:$16 sps:$4 sm:$0xff]  }
 0x4a5   :  { %7989 = vrcp.f32 %v1173_v48  ;;  %v8624_v48 = vld [vmem:[#allocation5 + $0x1c0] ss:$16 sps:$4 sm:$0xff]  }
 0x4b0   :  { %v7988_v49 = vpop.eup %7987 }
 0x4b1   :  { %v1176_v50 = vmul.f32 %v7988_v49, %v1159_v37  ;;  %v8597_v37 = vld [vmem:[#allocation5 + $0xc] ss:$16 sps:$4 sm:$0xff]   ;;  %v8628_v49 = vld [vmem:[#allocation5 + $0x1c8] ss:$16 sps:$4 sm:$0xff]  }
 0x4b2   :  { %v7990_v52 = vpop.eup %7989 }
 0x4b3   :  { %v1177_v51 = vadd.f32 %v1176_v50, %v1157_v34  ;;  %v1179_v53 = vsub.f32 1.0, %v7990_v52  ;;  %v1181_v56 = vmul.f32 %v7990_v52, %v8458_v39  ;;  %v8588_v34 = vld [vmem:[#allocation5 + $0x20] ss:$16 sps:$4 sm:$0xff]   ;;  %v8630_v50 = vld [vmem:[#allocation5 + $0x1a4] ss:$16 sps:$4 sm:$0xff]  }
 0x4b4   :  { %1718 = vmatpush1.bf16.msra.mxu0 %v8588_v34  ;;  %v8636_v52 = vld [vmem:[#allocation5 + $0x1a0] ss:$16 sps:$4 sm:$0xff]  }
 0x4b5   :  { %7991 = vtanh.f32 %v1177_v51  ;;  %1719 = vmatprep.subr.bf16.mxu0 %v8594_v36  ;;  %v8633_v51 = vld [vmem:[#allocation5 + $0x1ac] ss:$16 sps:$4 sm:$0xff]  }
 0x4b6   :  { %9869 = vst [vmem:[#allocation20_spill] sm:$0xff] %v8633_v51 }
 0x4b8   :  { %1720 = vmatpush1.bf16.msra.mxu0 %v8600_v38 }
 0x4b9   :  { %1721 = vmatprep.subr.bf16.mxu0 %v8606_v41 }
 0x4bc   :  { %1722 = vmatpush2.bf16.msra.mxu0 %v8612_v43 }
 0x4bd   :  { %1723 = vmatprep.subr.bf16.mxu0 %v8618_v46 }
 0x4c0   :  { %1724 = vmatpush2.bf16.msra.mxu0 %v8624_v48 }
 0x4c1   :  { %1725 = vmatprep.subr.bf16.mxu0 %v8630_v50 }
 0x4c2   :  { %v7992_v54 = vpop.eup %7991 }
 0x4c3   :  { %v1180_v55 = vmul.f32 %v7992_v54, %v1179_v53  ;;  %v8640_v53 = vld [vmem:[#allocation5 + $0x1a8] ss:$16 sps:$4 sm:$0xff]   ;;  %v8642_v54 = vld [vmem:[#allocation5 + $0x184] ss:$16 sps:$4 sm:$0xff]  }
 0x4c4   :  { %9870 = vst [vmem:[#allocation21_spill] sm:$0xff] %v8640_v53  ;;  %1726 = vmatpush2.bf16.msra.mxu0 %v8636_v52 }
 0x4c5   :  { %v8494_v57 = vadd.f32 %v1181_v56, %v1180_v55  ;;  %v8645_v55 = vld [vmem:[#allocation5 + $0x18c] ss:$16 sps:$4 sm:$0xff]   ;;  %v8648_v56 = vld [vmem:[#allocation5 + $0x180] ss:$16 sps:$4 sm:$0xff]   ;;  %1727 = vmatprep.subr.bf16.mxu0 %v8642_v54 }
 0x4c6   :  { %9871 = vst [vmem:[#allocation22_spill] sm:$0xff] %v8645_v55 }
 0x4c7   :  { %v1183_v58 = vpack.c.bf16 %v8494_v57, %v8494_v57 }
 0x4c8   :  { %1728 = vmatpush2.bf16.msra.mxu0 %v8648_v56 }
 0x4c9   :  { %7236 = vmatmul.mubr.bf16.vlgmr.msra.gmra.mxu1 %v1183_v58  ;;  %1737 = vmatprep.mubr.bf16.mxu0 %v1183_v58 }
 0x4ca   :  { %1778 = vmatprep.mubr.bf16.mxu1 %v1183_v58  ;;  %1747 = vmatpush1.bf16.msra.mxu1 %v8517_v10  ;;  %v8652_v58 = vld [vmem:[#allocation5 + $0x188] ss:$16 sps:$4 sm:$0xff]  }
 0x4cb   :  { %1748 = vmatprep.subr.bf16.mxu1 %v8524_v11  ;;  %9872 = vst [vmem:[#allocation23_spill] sm:$0xff] %v8652_v58 }
 0x4ce   :  { %1749 = vmatpush1.bf16.msra.mxu1 %v8532_v16 }
 0x4cf   :  { %1750 = vmatprep.subr.bf16.mxu1 %v8537_v17 }
 0x4d2   :  { %1751 = vmatpush1.bf16.msra.mxu1 %v8544_v19 }
 0x4d3   :  { %1752 = vmatprep.subr.bf16.mxu1 %v8549_v21 }
 0x4d6   :  { %1753 = vmatpush1.bf16.msra.mxu1 %v8556_v23 }
 0x4d7   :  { %1754 = vmatprep.subr.bf16.mxu1 %v8561_v25 }
 0x4da   :  { %1755 = vmatpush1.bf16.msra.mxu1 %v8568_v27 }
 0x4db   :  { %1756 = vmatprep.subr.bf16.mxu1 %v8573_v29 }
 0x4de   :  { %1757 = vmatpush1.bf16.msra.mxu1 %v8580_v31 }
 0x4df   :  { %1758 = vmatprep.subr.bf16.mxu1 %v8585_v33 }
 0x4e2   :  { %1759 = vmatpush1.bf16.msra.mxu1 %v8592_v35 }
 0x4e3   :  { %1760 = vmatprep.subr.bf16.mxu1 %v8597_v37 }
 0x4e6   :  { %1761 = vmatpush1.bf16.msra.mxu1 %v8604_v40 }
 0x4e7   :  { %1762 = vmatprep.subr.bf16.mxu1 %v8609_v42 }
 0x4ea   :  { %1763 = vmatpush2.bf16.msra.mxu1 %v8616_v45 }
 0x4eb   :  { %1764 = vmatprep.subr.bf16.mxu1 %v8621_v47 }
 0x4ee   :  { %1765 = vmatpush2.bf16.msra.mxu1 %v8628_v49 }
 0x4ef   :  { %1766 = vmatprep.subr.bf16.mxu1 %v8633_v51  ;;  %v8694_v51 = vld [vmem:[#allocation5 + $0x108] ss:$16 sps:$4 sm:$0xff]  }
 0x4f2   :  { %1767 = vmatpush2.bf16.msra.mxu1 %v8640_v53  ;;  %v8692_v53 = vld [vmem:[#allocation5 + $0x10c] ss:$16 sps:$4 sm:$0xff]  }
 0x4f3   :  { %1768 = vmatprep.subr.bf16.mxu1 %v8645_v55  ;;  %v7617_v55 = vld [vmem:[#allocation5 + $0x104] ss:$16 sps:$4 sm:$0xff]  }
 0x4f6   :  { %1769 = vmatpush2.bf16.msra.mxu1 %v8652_v58 }
 0x589   :  { %v1282_v59 = vpop.f32.mrf.mxu1 }
 0x58a   :  { %v8499_v60 = vadd.f32 %v8470_v5, %v1282_v59  ;;  %v8654_v59 = vld [vmem:[#allocation5 + $0x164] ss:$16 sps:$4 sm:$0xff]   ;;  %v8686_v5 = vld [vmem:[#allocation5 + $0x128] ss:$16 sps:$4 sm:$0xff]  }
 0x58b   :  { %v7237_v61 = vpop.f32.mrf.mxu1  ;;  %1729 = vmatprep.subr.bf16.mxu0 %v8654_v59  ;;  %9878 = vst [vmem:[#allocation29_spill] sm:$0xff] %v8686_v5 }
 0x58c   :  { %9867 = vst [vmem:[#allocation18_spill] sm:$0xff] %v8499_v60  ;;  %1288 = vmax.xlane.f32.xlu1 %v8499_v60  ;;  %v8657_v61 = vld [vmem:[#allocation5 + $0x16c] ss:$16 sps:$4 sm:$0xff]  }
 0x58d   :  { %v1285_v62 = vpop.f32.mrf.mxu1  ;;  %9873 = vst [vmem:[#allocation24_spill] sm:$0xff] %v8657_v61  ;;  %1770 = vmatprep.subr.bf16.mxu1 %v8657_v61 }
 0x58e   :  { %v8660_v62 = vld [vmem:[#allocation5 + $0x160] ss:$16 sps:$4 sm:$0xff]  }
 0x58f   :  { %v7238_v63 = vpop.f32.mrf.mxu1  ;;  %1730 = vmatpush2.bf16.msra.mxu0 %v8660_v62 }
 0x590   :  { %v8664_v63 = vld [vmem:[#allocation5 + $0x168] ss:$16 sps:$4 sm:$0xff]  }
 0x591   :  { %9874 = vst [vmem:[#allocation25_spill] sm:$0xff] %v8664_v63  ;;  %1771 = vmatpush2.bf16.msra.mxu1 %v8664_v63 }
 0x592   :  { %1772 = vmatprep.subr.bf16.mxu1 %v8669_v15 }
 0x615   :  { %v8502_v1 = vpop.xlane.xlu1 %1288 }
 0x616   :  { %9868 = vst [vmem:[#allocation19_spill] sm:$0xff] %v8502_v1  ;;  %vm1290_vm7 = vcmp.eq.f32.partialorder %v8499_v60, %v8502_v1  ;;  %v8676_v60 = vld [vmem:[#allocation5 + $0x148] ss:$16 sps:$4 sm:$0xff]   ;;  %v8678_v1 = vld [vmem:[#allocation5 + $0x124] ss:$16 sps:$4 sm:$0xff]  }
 0x617   :  { %v8507_v39 = vsel %vm1290_vm7, %v8371_v44, 128  ;;  %9876 = vst [vmem:[#allocation27_spill] sm:$0xff] %v8676_v60  ;;  %1773 = vmatpush2.bf16.msra.mxu1 %v8676_v60  ;;  %v7615_v60 = vld [vmem:[#allocation5 + $0x100] ss:$16 sps:$4 sm:$0xff]  }
 0x618   :  { %v1293_v2 = vshra.s32 %v8507_v39, 16  ;;  %1774 = vmatprep.subr.bf16.mxu1 %v8681_v9  ;;  %v1292_v63 = vand.u32 65535, %v8507_v39  ;;  %v9880_v9 = vmov 1.0|1.0  }
 0x61a   :  { %v8510_v3 = vcvt.s32.f32 %v1293_v2  ;;  %v8666_v2 = vld [vmem:[#allocation5 + $0x144] ss:$16 sps:$4 sm:$0xff]   ;;  %v1294_v15 = vcvt.s32.f32 %v1292_v63 }
 0x61b   :  { %1731 = vmatprep.subr.bf16.mxu0 %v8666_v2  ;;  %1775 = vmatpush2.bf16.msra.mxu1 %v8686_v5  ;;  %v9879_v5 = vmov 0.0  }
 0x61c   :  { %1296 = vmin.xlane.f32.xlu0 %v8510_v3  ;;  %1732 = vmatpush2.bf16.msra.mxu0 %v8672_v0 }
 0x61d   :  { %1733 = vmatprep.subr.bf16.mxu0 %v8678_v1  ;;  %1776 = vmatprep.subr.bf16.mxu1 %v8692_v53 }
 0x61f   :  { %1777 = vmatpush2.bf16.msra.mxu1 %v8694_v51 }
 0x620   :  { %1734 = vmatpush2.bf16.msra.mxu0 %v7609_v13  ;;  %2328 = vmatprep.subr.bf16.mxu1 %v8515_v6  ;;  %v7622_v6 = vld [vmem:[#allocation7 + $0x30] sm:$0xff]  }
 0x621   :  { %1735 = vmatprep.subr.bf16.mxu0 %v7617_v55 }
 0x624   :  { %1736 = vmatpush2.bf16.msra.mxu0 %v7615_v60 }
 0x625   :  { %7239 = vmatprep.subr.bf16.mxu0 %v9879_v5 }
 0x6a5   :  { %v1297_v61 = vpop.xlane.xlu0 %1296 }
 0x6a6   :  { %vm1298_vm8 = vcmp.eq.f32.partialorder %v8510_v3, %v1297_v61  ;;  %v1303_v39 = vcvt.f32.s32 %v1297_v61 }
 0x6a7   :  { %v1299_v58 = vsel %vm1298_vm8, %v1294_v15, inf }
 0x6a8   :  { %1300 = vmin.xlane.f32.xlu1 %v1299_v58  ;;  %v1304_v15 = vshll.u32 %v1303_v39, 16 }
 0x731   :  { %v1301_v3 = vpop.xlane.xlu1 %1300 }
 0x732   :  { %v1302_v58 = vcvt.f32.s32 %v1301_v3 }
 0x734   :  { %v1305_v63 = vadd.s32 %v1304_v15, %v1302_v58 }
 0x736   :  { %vm1317_vm9 = vcmp.eq.s32.totalorder %v8371_v44, %v1305_v63 }
 0x737   :  { %vm6542_vm10 = vmpackc.low %vm1317_vm9, %vm1317_vm9 }
 0x738   :  { %6543 = vmatmul.mubr.msk.bf16.vlgmr.msra.gmra.mxu0 %vm6542_vm10, %v9880_v9  ;;  %6545 = vmatmul.mubr.msk.bf16.vlgmr.msra.gmra.mxu1 %vm6542_vm10, %v9880_v9 }
 0x739   :  { %7255 = vmatprep.mubr.msk.bf16.mxu0 %vm8260_vm2, %v9879_v5  ;;  %2329 = vmatpush1.bf16.msra.mxu1 %v8513_v4  ;;  %v7621_v4 = vld [vmem:[#allocation7 + $0x38] sm:$0xff]  }
 0x73a   :  { %2330 = vmatprep.subr.bf16.mxu1 %v8521_v8  ;;  %7240 = vmatpush3.bf16.msra.mxu0 %v7621_v4  ;;  %v7623_v8 = vld [vmem:[#allocation7 + $0x28] sm:$0xff]   ;;  %v7629_v4 = vld [vmem:[#allocation7 + $0x38] sm:$0xff]  }
 0x73b   :  { %7241 = vmatprep.subr.bf16.mxu0 %v9879_v5 }
 0x73d   :  { %2331 = vmatpush1.bf16.msra.mxu1 %v8528_v12  ;;  %v7628_v12 = vld [vmem:[#allocation7] sm:$0xff]  }
 0x73e   :  { %2332 = vmatprep.subr.bf16.mxu1 %v8534_v14  ;;  %7242 = vmatpush3.bf16.msra.mxu0 %v7622_v6  ;;  %v7630_v6 = vld [vmem:[#allocation7 + $0x30] sm:$0xff]  }
 0x73f   :  { %7243 = vmatprep.subr.bf16.mxu0 %v9879_v5 }
 0x741   :  { %2333 = vmatpush1.bf16.msra.mxu1 %v8540_v18 }
 0x742   :  { %2334 = vmatprep.subr.bf16.mxu1 %v8546_v20  ;;  %7244 = vmatpush3.bf16.msra.mxu0 %v7623_v8  ;;  %v7631_v8 = vld [vmem:[#allocation7 + $0x28] sm:$0xff]  }
 0x743   :  { %7245 = vmatprep.subr.bf16.mxu0 %v9879_v5 }
 0x745   :  { %2335 = vmatpush1.bf16.msra.mxu1 %v8552_v22 }
 0x746   :  { %2336 = vmatprep.subr.bf16.mxu1 %v8558_v24 }
 0x749   :  { %2337 = vmatpush1.bf16.msra.mxu1 %v8564_v26 }
 0x74a   :  { %2338 = vmatprep.subr.bf16.mxu1 %v8570_v28 }
 0x74d   :  { %2339 = vmatpush1.bf16.msra.mxu1 %v8576_v30 }
 0x74e   :  { %2340 = vmatprep.subr.bf16.mxu1 %v8582_v32 }
 0x751   :  { %2341 = vmatpush1.bf16.msra.mxu1 %v8588_v34 }
 0x752   :  { %2342 = vmatprep.subr.bf16.mxu1 %v8594_v36 }
 0x755   :  { %2343 = vmatpush1.bf16.msra.mxu1 %v8600_v38 }
 0x756   :  { %2344 = vmatprep.subr.bf16.mxu1 %v8606_v41 }
 0x759   :  { %2345 = vmatpush2.bf16.msra.mxu1 %v8612_v43 }
 0x75a   :  { %2346 = vmatprep.subr.bf16.mxu1 %v8618_v46 }
 0x75d   :  { %2347 = vmatpush2.bf16.msra.mxu1 %v8624_v48 }
 0x75e   :  { %2348 = vmatprep.subr.bf16.mxu1 %v8630_v50 }
 0x761   :  { %2349 = vmatpush2.bf16.msra.mxu1 %v8636_v52 }
 0x762   :  { %2350 = vmatprep.subr.bf16.mxu1 %v8642_v54 }
 0x765   :  { %2351 = vmatpush2.bf16.msra.mxu1 %v8648_v56 }
 0x766   :  { %2352 = vmatprep.subr.bf16.mxu1 %v8654_v59 }
 0x769   :  { %2353 = vmatpush2.bf16.msra.mxu1 %v8660_v62 }
 0x76a   :  { %2354 = vmatprep.subr.bf16.mxu1 %v8666_v2 }
 0x76d   :  { %2355 = vmatpush2.bf16.msra.mxu1 %v8672_v0  ;;  %v7624_v0 = vld [vmem:[#allocation7 + $0x20] sm:$0xff]  }
 0x76e   :  { %2356 = vmatprep.subr.bf16.mxu1 %v8678_v1  ;;  %7246 = vmatpush3.bf16.msra.mxu0 %v7624_v0  ;;  %v7625_v1 = vld [vmem:[#allocation7 + $0x18] sm:$0xff]   ;;  %v7632_v0 = vld [vmem:[#allocation7 + $0x20] sm:$0xff]  }
 0x76f   :  { %7247 = vmatprep.subr.bf16.mxu0 %v9879_v5 }
 0x771   :  { %2357 = vmatpush2.bf16.msra.mxu1 %v7609_v13  ;;  %v7626_v13 = vld [vmem:[#allocation7 + $0x10] sm:$0xff]  }
 0x772   :  { %2358 = vmatprep.subr.bf16.mxu1 %v7617_v55  ;;  %7248 = vmatpush3.bf16.msra.mxu0 %v7625_v1  ;;  %v7633_v1 = vld [vmem:[#allocation7 + $0x18] sm:$0xff]  }
 0x773   :  { %7249 = vmatprep.subr.bf16.mxu0 %v9879_v5 }
 0x775   :  { %2359 = vmatpush2.bf16.msra.mxu1 %v7615_v60  ;;  %v7627_v60 = vld [vmem:[#allocation7 + $0x8] sm:$0xff]  }
 0x776   :  { %7259 = vmatprep.subr.bf16.mxu1 %v9879_v5  ;;  %7250 = vmatpush3.bf16.msra.mxu0 %v7626_v13  ;;  %v7634_v13 = vld [vmem:[#allocation7 + $0x10] sm:$0xff]  }
 0x777   :  { %7251 = vmatprep.subr.bf16.mxu0 %v9879_v5 }
 0x77a   :  { %7252 = vmatpush3.bf16.msra.mxu0 %v7627_v60  ;;  %v7635_v60 = vld [vmem:[#allocation7 + $0x8] sm:$0xff]  }
 0x77b   :  { %7253 = vmatprep.subr.bf16.mxu0 %v9879_v5 }
 0x77e   :  { %7254 = vmatpush3.bf16.msra.mxu0 %v7628_v12  ;;  %v7636_v12 = vld [vmem:[#allocation7] sm:$0xff]  }
 0x77f   :  { %2369 = vmatprep.subr.bf16.mxu0 %v8519_v7 }
 0x7f8   :  { %v1739_v14 = vpop.f32.mrf.mxu0  ;;  %v1780_v18 = vpop.f32.mrf.mxu1 }
 0x7f9   :  { %v6546_v20 = vmul.f32 -1.442695, %v1739_v14 }
 0x7fa   :  { %v1741_v22 = vpop.f32.mrf.mxu0  ;;  %v1782_v24 = vpop.f32.mrf.mxu1 }
 0x7fb   :  { %7993 = vpow2.f32 %v6546_v20  ;;  %v6547_v34 = vmul.f32 -1.442695, %v1741_v22 }
 0x7fc   :  { %v1743_v26 = vpop.f32.mrf.mxu0  ;;  %v1784_v28 = vpop.f32.mrf.mxu1 }
 0x7fd   :  { %7995 = vpow2.f32 %v6547_v34 }
 0x7fe   :  { %v1744_v30 = vpop.f32.mrf.mxu0  ;;  %v1785_v32 = vpop.f32.mrf.mxu1 }
 0x808   :  { %v7994_v36 = vpop.eup %7993 }
 0x809   :  { %v1790_v38 = vadd.f32 1.0, %v7994_v36 }
 0x80a   :  { %v7996_v41 = vpop.eup %7995 }
 0x80b   :  { %7997 = vrcp.f32 %v1790_v38  ;;  %v1796_v43 = vadd.f32 1.0, %v7996_v41 }
 0x80d   :  { %7999 = vrcp.f32 %v1796_v43 }
 0x818   :  { %v7998_v46 = vpop.eup %7997 }
 0x819   :  { %v1799_v7 = vmul.f32 %v7998_v46, %v1782_v24 }
 0x81a   :  { %v8000_v50 = vpop.eup %7999 }
 0x81b   :  { %v1800_v48 = vadd.f32 %v1799_v7, %v1780_v18  ;;  %v1802_v52 = vsub.f32 1.0, %v8000_v50  ;;  %v1804_v56 = vmul.f32 %v8000_v50, %v8494_v57  ;;  %v9881_v57 = vld [vmem:[#allocation20_spill] sm:$0xff] }
 0x81d   :  { %8001 = vtanh.f32 %v1800_v48 }
 0x82a   :  { %v8002_v54 = vpop.eup %8001 }
 0x82b   :  { %v1803_v55 = vmul.f32 %v8002_v54, %v1802_v52 }
 0x82d   :  { %v8743_v59 = vadd.f32 %v1804_v56, %v1803_v55 }
 0x82f   :  { %v1806_v61 = vpack.c.bf16 %v8743_v59, %v8743_v59 }
 0x831   :  { %7256 = vmatmul.mubr.bf16.vlgmr.msra.gmra.mxu0 %v1806_v61  ;;  %2360 = vmatprep.mubr.bf16.mxu1 %v1806_v61 }
 0x832   :  { %2401 = vmatprep.mubr.bf16.mxu0 %v1806_v61  ;;  %2370 = vmatpush1.bf16.msra.mxu0 %v8517_v10  ;;  %v9882_v10 = vld [vmem:[#allocation21_spill] sm:$0xff] }
 0x833   :  { %2371 = vmatprep.subr.bf16.mxu0 %v8524_v11  ;;  %v9883_v11 = vld [vmem:[#allocation22_spill] sm:$0xff] }
 0x836   :  { %2372 = vmatpush1.bf16.msra.mxu0 %v8532_v16  ;;  %v9884_v16 = vld [vmem:[#allocation23_spill] sm:$0xff] }
 0x837   :  { %2373 = vmatprep.subr.bf16.mxu0 %v8537_v17  ;;  %v9885_v17 = vld [vmem:[#allocation24_spill] sm:$0xff] }
 0x83a   :  { %2374 = vmatpush1.bf16.msra.mxu0 %v8544_v19  ;;  %v9886_v19 = vld [vmem:[#allocation25_spill] sm:$0xff] }
 0x83b   :  { %2375 = vmatprep.subr.bf16.mxu0 %v8549_v21  ;;  %v9887_v21 = vld [vmem:[#allocation26_spill] sm:$0xff] }
 0x83e   :  { %2376 = vmatpush1.bf16.msra.mxu0 %v8556_v23  ;;  %v9888_v23 = vld [vmem:[#allocation27_spill] sm:$0xff] }
 0x83f   :  { %2377 = vmatprep.subr.bf16.mxu0 %v8561_v25  ;;  %v9889_v25 = vld [vmem:[#allocation28_spill] sm:$0xff] }
 0x842   :  { %2378 = vmatpush1.bf16.msra.mxu0 %v8568_v27  ;;  %v9890_v27 = vld [vmem:[#allocation29_spill] sm:$0xff] }
 0x843   :  { %2379 = vmatprep.subr.bf16.mxu0 %v8573_v29 }
 0x846   :  { %2380 = vmatpush1.bf16.msra.mxu0 %v8580_v31  ;;  %v9891_v31 = vld [vmem:[#allocation15_spill] sm:$0xff] }
 0x847   :  { %2381 = vmatprep.subr.bf16.mxu0 %v8585_v33 }
 0x84a   :  { %2382 = vmatpush1.bf16.msra.mxu0 %v8592_v35 }
 0x84b   :  { %2383 = vmatprep.subr.bf16.mxu0 %v8597_v37 }
 0x84e   :  { %2384 = vmatpush1.bf16.msra.mxu0 %v8604_v40 }
 0x84f   :  { %2385 = vmatprep.subr.bf16.mxu0 %v8609_v42 }
 0x852   :  { %2386 = vmatpush2.bf16.msra.mxu0 %v8616_v45 }
 0x853   :  { %2387 = vmatprep.subr.bf16.mxu0 %v8621_v47 }
 0x856   :  { %2388 = vmatpush2.bf16.msra.mxu0 %v8628_v49 }
 0x857   :  { %2389 = vmatprep.subr.bf16.mxu0 %v9881_v57 }
 0x85a   :  { %2390 = vmatpush2.bf16.msra.mxu0 %v9882_v10 }
 0x85b   :  { %2391 = vmatprep.subr.bf16.mxu0 %v9883_v11 }
 0x85e   :  { %2392 = vmatpush2.bf16.msra.mxu0 %v9884_v16 }
 0x85f   :  { %2393 = vmatprep.subr.bf16.mxu0 %v9885_v17 }
 0x862   :  { %2394 = vmatpush2.bf16.msra.mxu0 %v9886_v19 }
 0x863   :  { %2395 = vmatprep.subr.bf16.mxu0 %v9887_v21 }
 0x866   :  { %2396 = vmatpush2.bf16.msra.mxu0 %v9888_v23 }
 0x867   :  { %2397 = vmatprep.subr.bf16.mxu0 %v9889_v25 }
 0x86a   :  { %2398 = vmatpush2.bf16.msra.mxu0 %v9890_v27  ;;  %v8819_v27 = vld [vmem:[#allocation5 + $0xe0] ss:$16 sps:$4 sm:$0xff]  }
 0x86b   :  { %2399 = vmatprep.subr.bf16.mxu0 %v8692_v53 }
 0x86e   :  { %2400 = vmatpush2.bf16.msra.mxu0 %v8694_v51 }
 0x8f1   :  { %v1905_v29 = vpop.f32.mrf.mxu0 }
 0x8f2   :  { %v8779_v33 = vadd.f32 %v9891_v31, %v1905_v29  ;;  %v8821_v29 = vld [vmem:[#allocation5 + $0xe4] ss:$16 sps:$4 sm:$0xff]  }
 0x8f3   :  { %v7257_v35 = vpop.f32.mrf.mxu0  ;;  %2951 = vmatprep.subr.bf16.mxu0 %v8821_v29 }
 0x8f4   :  { %9892 = vst [vmem:[#allocation20_spill] sm:$0xff] %v8779_v33  ;;  %1911 = vmax.xlane.f32.xlu0 %v8779_v33  ;;  %v8825_v35 = vld [vmem:[#allocation5 + $0xec] ss:$16 sps:$4 sm:$0xff]  }
 0x8f5   :  { %v1908_v37 = vpop.f32.mrf.mxu0 }
 0x8f6   :  { %v8827_v37 = vld [vmem:[#allocation5 + $0xc4] ss:$16 sps:$4 sm:$0xff]  }
 0x8f7   :  { %v7258_v40 = vpop.f32.mrf.mxu0 }
 0x8f8   :  { %v8830_v40 = vld [vmem:[#allocation5 + $0xcc] ss:$16 sps:$4 sm:$0xff]  }
 0x97d   :  { %v8782_v42 = vpop.xlane.xlu0 %1911 }
 0x97e   :  { %9893 = vst [vmem:[#allocation21_spill] sm:$0xff] %v8782_v42  ;;  %vm1913_vm11 = vcmp.eq.f32.partialorder %v8779_v33, %v8782_v42  ;;  %v8984_v33 = vld [vmem:[#allocation5 + $0x124] ss:$16 sps:$4 sm:$0xff]   ;;  %v8987_v42 = vld [vmem:[#allocation5 + $0x12c] ss:$16 sps:$4 sm:$0xff]  }
 0x97f   :  { %v1914_v45 = vsel %vm1913_vm11, %v8371_v44, 128 }
 0x980   :  { %v1916_v47 = vshra.s32 %v1914_v45, 16  ;;  %v1915_v51 = vand.u32 65535, %v1914_v45  ;;  %v8834_v45 = vld [vmem:[#allocation5 + $0xc0] ss:$16 sps:$4 sm:$0xff]  }
 0x982   :  { %v1918_v49 = vcvt.s32.f32 %v1916_v47  ;;  %v1917_v62 = vcvt.s32.f32 %v1915_v51  ;;  %v8838_v47 = vld [vmem:[#allocation5 + $0xc8] ss:$16 sps:$4 sm:$0xff]   ;;  %v8843_v51 = vld [vmem:[#allocation5 + $0xac] ss:$16 sps:$4 sm:$0xff]  }
 0x984   :  { %1919 = vmin.xlane.f32.xlu1 %v1918_v49 }
 0xa0d   :  { %v1920_v53 = vpop.xlane.xlu1 %1919 }
 0xa0e   :  { %vm1921_vm12 = vcmp.eq.f32.partialorder %v1918_v49, %v1920_v53  ;;  %v1926_v39 = vcvt.f32.s32 %v1920_v53  ;;  %v8840_v49 = vld [vmem:[#allocation5 + $0xa4] ss:$16 sps:$4 sm:$0xff]   ;;  %v8846_v53 = vld [vmem:[#allocation5 + $0xa0] ss:$16 sps:$4 sm:$0xff]  }
 0xa0f   :  { %v1922_v2 = vsel %vm1921_vm12, %v1917_v62, inf  ;;  %v8850_v62 = vld [vmem:[#allocation5 + $0xa8] ss:$16 sps:$4 sm:$0xff]  }
 0xa10   :  { %1923 = vmin.xlane.f32.xlu0 %v1922_v2  ;;  %v1927_v15 = vshll.u32 %v1926_v39, 16  ;;  %v8852_v2 = vld [vmem:[#allocation5 + $0x84] ss:$16 sps:$4 sm:$0xff]   ;;  %v8855_v39 = vld [vmem:[#allocation5 + $0x8c] ss:$16 sps:$4 sm:$0xff]  }
 0xa99   :  { %v1924_v3 = vpop.xlane.xlu0 %1923 }
 0xa9a   :  { %v1925_v58 = vcvt.f32.s32 %v1924_v3  ;;  %v8858_v3 = vld [vmem:[#allocation5 + $0x80] ss:$16 sps:$4 sm:$0xff]  }
 0xa9c   :  { %v1928_v63 = vadd.s32 %v1927_v15, %v1925_v58  ;;  %v8862_v15 = vld [vmem:[#allocation5 + $0x88] ss:$16 sps:$4 sm:$0xff]   ;;  %v8864_v58 = vld [vmem:[#allocation5 + $0x64] ss:$16 sps:$4 sm:$0xff]  }
 0xa9e   :  { %vm1940_vm13 = vcmp.eq.s32.totalorder %v8371_v44, %v1928_v63  ;;  %v8867_v63 = vld [vmem:[#allocation5 + $0x6c] ss:$16 sps:$4 sm:$0xff]  }
 0xa9f   :  { %vm6621_vm14 = vmpackc.low %vm1940_vm13, %vm1940_vm13 }
 0xaa0   :  { %6622 = vmatmul.mubr.msk.bf16.vlgmr.msra.gmra.mxu1 %vm6621_vm14, %v9880_v9  ;;  %6624 = vmatmul.mubr.msk.bf16.vlgmr.msra.gmra.mxu0 %vm6621_vm14, %v9880_v9 }
 0xaa1   :  { %7275 = vmatprep.mubr.msk.bf16.mxu1 %vm8260_vm2, %v9879_v5  ;;  %7260 = vmatpush3.bf16.msra.mxu1 %v7629_v4  ;;  %v8870_v4 = vld [vmem:[#allocation5 + $0x60] ss:$16 sps:$4 sm:$0xff]  }
 0xaa2   :  { %7261 = vmatprep.subr.bf16.mxu1 %v9879_v5  ;;  %2952 = vmatpush1.bf16.msra.mxu0 %v8819_v27 }
 0xaa3   :  { %2953 = vmatprep.subr.bf16.mxu0 %v8827_v37 }
 0xaa5   :  { %7262 = vmatpush3.bf16.msra.mxu1 %v7630_v6  ;;  %v8874_v6 = vld [vmem:[#allocation5 + $0x68] ss:$16 sps:$4 sm:$0xff]  }
 0xaa6   :  { %7263 = vmatprep.subr.bf16.mxu1 %v9879_v5  ;;  %2954 = vmatpush1.bf16.msra.mxu0 %v8834_v45 }
 0xaa7   :  { %2955 = vmatprep.subr.bf16.mxu0 %v8840_v49 }
 0xaa9   :  { %7264 = vmatpush3.bf16.msra.mxu1 %v7631_v8  ;;  %v8876_v8 = vld [vmem:[#allocation5 + $0x44] ss:$16 sps:$4 sm:$0xff]  }
 0xaaa   :  { %7265 = vmatprep.subr.bf16.mxu1 %v9879_v5  ;;  %2956 = vmatpush1.bf16.msra.mxu0 %v8846_v53 }
 0xaab   :  { %2957 = vmatprep.subr.bf16.mxu0 %v8852_v2 }
 0xaad   :  { %7266 = vmatpush3.bf16.msra.mxu1 %v7632_v0  ;;  %v8879_v0 = vld [vmem:[#allocation5 + $0x4c] ss:$16 sps:$4 sm:$0xff]  }
 0xaae   :  { %7267 = vmatprep.subr.bf16.mxu1 %v9879_v5  ;;  %2958 = vmatpush1.bf16.msra.mxu0 %v8858_v3 }
 0xaaf   :  { %2959 = vmatprep.subr.bf16.mxu0 %v8864_v58 }
 0xab1   :  { %7268 = vmatpush3.bf16.msra.mxu1 %v7633_v1  ;;  %v8882_v1 = vld [vmem:[#allocation5 + $0x40] ss:$16 sps:$4 sm:$0xff]  }
 0xab2   :  { %7269 = vmatprep.subr.bf16.mxu1 %v9879_v5  ;;  %2960 = vmatpush1.bf16.msra.mxu0 %v8870_v4 }
 0xab3   :  { %2961 = vmatprep.subr.bf16.mxu0 %v8876_v8 }
 0xab5   :  { %7270 = vmatpush3.bf16.msra.mxu1 %v7634_v13  ;;  %v8886_v13 = vld [vmem:[#allocation5 + $0x48] ss:$16 sps:$4 sm:$0xff]  }
 0xab6   :  { %7271 = vmatprep.subr.bf16.mxu1 %v9879_v5  ;;  %2962 = vmatpush1.bf16.msra.mxu0 %v8882_v1 }
 0xab9   :  { %7272 = vmatpush3.bf16.msra.mxu1 %v7635_v60  ;;  %v8888_v60 = vld [vmem:[#allocation5 + $0x24] ss:$16 sps:$4 sm:$0xff]  }
 0xaba   :  { %7273 = vmatprep.subr.bf16.mxu1 %v9879_v5  ;;  %2963 = vmatprep.subr.bf16.mxu0 %v8888_v60 }
 0xabd   :  { %7274 = vmatpush3.bf16.msra.mxu1 %v7636_v12  ;;  %v8891_v12 = vld [vmem:[#allocation5 + $0x2c] ss:$16 sps:$4 sm:$0xff]  }
 0xabe   :  { %2992 = vmatprep.subr.bf16.mxu1 %v8825_v35 }
 0xb60   :  { %v2362_v14 = vpop.f32.mrf.mxu1  ;;  %v2403_v18 = vpop.f32.mrf.mxu0 }
 0xb61   :  { %v6625_v20 = vmul.f32 -1.442695, %v2362_v14  ;;  %v8894_v14 = vld [vmem:[#allocation5 + $0x20] ss:$16 sps:$4 sm:$0xff]  }
 0xb62   :  { %v2364_v22 = vpop.f32.mrf.mxu1  ;;  %v2405_v24 = vpop.f32.mrf.mxu0  ;;  %2964 = vmatpush1.bf16.msra.mxu0 %v8894_v14 }
 0xb63   :  { %8003 = vpow2.f32 %v6625_v20  ;;  %v6626_v34 = vmul.f32 -1.442695, %v2364_v22  ;;  %v8900_v20 = vld [vmem:[#allocation5 + $0x4] ss:$16 sps:$4 sm:$0xff]   ;;  %v8903_v22 = vld [vmem:[#allocation5 + $0xc] ss:$16 sps:$4 sm:$0xff]  }
 0xb64   :  { %v2366_v26 = vpop.f32.mrf.mxu1  ;;  %v2407_v28 = vpop.f32.mrf.mxu0  ;;  %2965 = vmatprep.subr.bf16.mxu0 %v8900_v20 }
 0xb65   :  { %8005 = vpow2.f32 %v6626_v34  ;;  %v8910_v26 = vld [vmem:[#allocation5 + $0x8] ss:$16 sps:$4 sm:$0xff]   ;;  %v8912_v28 = vld [vmem:[#allocation5 + $0x1e4] ss:$16 sps:$4 sm:$0xff]  }
 0xb66   :  { %v2367_v30 = vpop.f32.mrf.mxu1  ;;  %v2408_v32 = vpop.f32.mrf.mxu0  ;;  %v8922_v34 = vld [vmem:[#allocation5 + $0x1e8] ss:$16 sps:$4 sm:$0xff]  }
 0xb67   :  { %v8915_v30 = vld [vmem:[#allocation5 + $0x1ec] ss:$16 sps:$4 sm:$0xff]   ;;  %v8918_v32 = vld [vmem:[#allocation5 + $0x1e0] ss:$16 sps:$4 sm:$0xff]  }
 0xb70   :  { %v8004_v36 = vpop.eup %8003 }
 0xb71   :  { %v2413_v38 = vadd.f32 1.0, %v8004_v36  ;;  %v8924_v36 = vld [vmem:[#allocation5 + $0x1c4] ss:$16 sps:$4 sm:$0xff]  }
 0xb72   :  { %v8006_v41 = vpop.eup %8005 }
 0xb73   :  { %8007 = vrcp.f32 %v2413_v38  ;;  %v2419_v43 = vadd.f32 1.0, %v8006_v41  ;;  %v8927_v38 = vld [vmem:[#allocation5 + $0x1cc] ss:$16 sps:$4 sm:$0xff]   ;;  %v8930_v41 = vld [vmem:[#allocation5 + $0x1c0] ss:$16 sps:$4 sm:$0xff]  }
 0xb74   :  { %9896 = vst [vmem:[#allocation24_spill] sm:$0xff] %v8927_v38 }
 0xb75   :  { %8009 = vrcp.f32 %v2419_v43  ;;  %v8934_v43 = vld [vmem:[#allocation5 + $0x1c8] ss:$16 sps:$4 sm:$0xff]  }
 0xb76   :  { %9897 = vst [vmem:[#allocation25_spill] sm:$0xff] %v8934_v43 }
 0xb80   :  { %v8008_v46 = vpop.eup %8007 }
 0xb81   :  { %v2422_v7 = vmul.f32 %v8008_v46, %v2405_v24  ;;  %v8906_v24 = vld [vmem:[#allocation5] ss:$16 sps:$4 sm:$0xff]   ;;  %v8936_v46 = vld [vmem:[#allocation5 + $0x1a4] ss:$16 sps:$4 sm:$0xff]  }
 0xb82   :  { %v8010_v50 = vpop.eup %8009  ;;  %2966 = vmatpush1.bf16.msra.mxu0 %v8906_v24 }
 0xb83   :  { %v2423_v48 = vadd.f32 %v2422_v7, %v2403_v18  ;;  %v2425_v52 = vsub.f32 1.0, %v8010_v50  ;;  %v2427_v56 = vmul.f32 %v8010_v50, %v8743_v59  ;;  %v8898_v18 = vld [vmem:[#allocation5 + $0x28] ss:$16 sps:$4 sm:$0xff]   ;;  %2967 = vmatprep.subr.bf16.mxu0 %v8912_v28  ;;  %v8939_v7 = vld [vmem:[#allocation5 + $0x1ac] ss:$16 sps:$4 sm:$0xff]  }
 0xb84   :  { %9898 = vst [vmem:[#allocation26_spill] sm:$0xff] %v8939_v7  ;;  %v8946_v50 = vld [vmem:[#allocation5 + $0x1a8] ss:$16 sps:$4 sm:$0xff]  }
 0xb85   :  { %8011 = vtanh.f32 %v2423_v48  ;;  %v8942_v48 = vld [vmem:[#allocation5 + $0x1a0] ss:$16 sps:$4 sm:$0xff]   ;;  %9899 = vst [vmem:[#allocation27_spill] sm:$0xff] %v8946_v50 }
 0xb86   :  { %2968 = vmatpush2.bf16.msra.mxu0 %v8918_v32 }
 0xb87   :  { %2969 = vmatprep.subr.bf16.mxu0 %v8924_v36 }
 0xb8a   :  { %2970 = vmatpush2.bf16.msra.mxu0 %v8930_v41 }
 0xb8b   :  { %2971 = vmatprep.subr.bf16.mxu0 %v8936_v46 }
 0xb8e   :  { %2972 = vmatpush2.bf16.msra.mxu0 %v8942_v48 }
 0xb92   :  { %v8012_v54 = vpop.eup %8011 }
 0xb93   :  { %v2426_v55 = vmul.f32 %v8012_v54, %v2425_v52  ;;  %v8948_v52 = vld [vmem:[#allocation5 + $0x184] ss:$16 sps:$4 sm:$0xff]   ;;  %v8951_v54 = vld [vmem:[#allocation5 + $0x18c] ss:$16 sps:$4 sm:$0xff]  }
 0xb94   :  { %9900 = vst [vmem:[#allocation28_spill] sm:$0xff] %v8951_v54  ;;  %2973 = vmatprep.subr.bf16.mxu0 %v8948_v52 }
 0xb95   :  { %v8800_v61 = vadd.f32 %v2427_v56, %v2426_v55  ;;  %v8954_v55 = vld [vmem:[#allocation5 + $0x180] ss:$16 sps:$4 sm:$0xff]   ;;  %v8958_v56 = vld [vmem:[#allocation5 + $0x188] ss:$16 sps:$4 sm:$0xff]  }
 0xb96   :  { %9901 = vst [vmem:[#allocation29_spill] sm:$0xff] %v8958_v56  ;;  %2974 = vmatpush2.bf16.msra.mxu0 %v8954_v55 }
 0xb97   :  { %v2429_v57 = vpack.c.bf16 %v8800_v61, %v8800_v61 }
 0xb99   :  { %7276 = vmatmul.mubr.bf16.vlgmr.msra.gmra.mxu1 %v2429_v57  ;;  %2983 = vmatprep.mubr.bf16.mxu0 %v2429_v57 }
 0xb9a   :  { %3024 = vmatprep.mubr.bf16.mxu1 %v2429_v57  ;;  %v8960_v57 = vld [vmem:[#allocation5 + $0x164] ss:$16 sps:$4 sm:$0xff]  }
 0xb9b   :  { %2975 = vmatprep.subr.bf16.mxu0 %v8960_v57 }
 0xc59   :  { %v2528_v10 = vpop.f32.mrf.mxu1 }
 0xc5a   :  { %v8805_v11 = vadd.f32 %v9891_v31, %v2528_v10  ;;  %v8823_v31 = vld [vmem:[#allocation5 + $0xe8] ss:$16 sps:$4 sm:$0xff]   ;;  %v8963_v10 = vld [vmem:[#allocation5 + $0x16c] ss:$16 sps:$4 sm:$0xff]  }
 0xc5b   :  { %v7277_v16 = vpop.f32.mrf.mxu1  ;;  %2993 = vmatpush1.bf16.msra.mxu1 %v8823_v31  ;;  %9902 = vst [vmem:[#allocation15_spill] sm:$0xff] %v8963_v10 }
 0xc5c   :  { %9894 = vst [vmem:[#allocation22_spill] sm:$0xff] %v8805_v11  ;;  %2534 = vmax.xlane.f32.xlu1 %v8805_v11  ;;  %2994 = vmatprep.subr.bf16.mxu1 %v8830_v40  ;;  %v8966_v16 = vld [vmem:[#allocation5 + $0x160] ss:$16 sps:$4 sm:$0xff]  }
 0xc5d   :  { %v2531_v17 = vpop.f32.mrf.mxu1  ;;  %2976 = vmatpush2.bf16.msra.mxu0 %v8966_v16 }
 0xc5e   :  { %v8970_v17 = vld [vmem:[#allocation5 + $0x168] ss:$16 sps:$4 sm:$0xff]  }
 0xc5f   :  { %v7278_v19 = vpop.f32.mrf.mxu1  ;;  %2995 = vmatpush1.bf16.msra.mxu1 %v8838_v47  ;;  %9903 = vst [vmem:[#allocation30_spill] sm:$0xff] %v8970_v17 }
 0xc60   :  { %2996 = vmatprep.subr.bf16.mxu1 %v8843_v51  ;;  %v8972_v19 = vld [vmem:[#allocation5 + $0x144] ss:$16 sps:$4 sm:$0xff]  }
 0xc61   :  { %2977 = vmatprep.subr.bf16.mxu0 %v8972_v19 }
 0xc63   :  { %2997 = vmatpush1.bf16.msra.mxu1 %v8850_v62 }
 0xc64   :  { %2998 = vmatprep.subr.bf16.mxu1 %v8855_v39 }
 0xc67   :  { %2999 = vmatpush1.bf16.msra.mxu1 %v8862_v15 }
 0xc68   :  { %3000 = vmatprep.subr.bf16.mxu1 %v8867_v63 }
 0xc6b   :  { %3001 = vmatpush1.bf16.msra.mxu1 %v8874_v6 }
 0xc6c   :  { %3002 = vmatprep.subr.bf16.mxu1 %v8879_v0 }
 0xc6f   :  { %3003 = vmatpush1.bf16.msra.mxu1 %v8886_v13 }
 0xc70   :  { %3004 = vmatprep.subr.bf16.mxu1 %v8891_v12 }
 0xc73   :  { %3005 = vmatpush1.bf16.msra.mxu1 %v8898_v18 }
 0xc74   :  { %3006 = vmatprep.subr.bf16.mxu1 %v8903_v22 }
 0xc77   :  { %3007 = vmatpush1.bf16.msra.mxu1 %v8910_v26 }
 0xc78   :  { %3008 = vmatprep.subr.bf16.mxu1 %v8915_v30 }
 0xc7b   :  { %3009 = vmatpush2.bf16.msra.mxu1 %v8922_v34 }
 0xc7c   :  { %3010 = vmatprep.subr.bf16.mxu1 %v8927_v38  ;;  %v9000_v38 = vld [vmem:[#allocation5 + $0x108] ss:$16 sps:$4 sm:$0xff]  }
 0xc7f   :  { %3011 = vmatpush2.bf16.msra.mxu1 %v8934_v43  ;;  %v8998_v43 = vld [vmem:[#allocation5 + $0x10c] ss:$16 sps:$4 sm:$0xff]  }
 0xc80   :  { %3012 = vmatprep.subr.bf16.mxu1 %v8939_v7  ;;  %v7729_v7 = vld [vmem:[#allocation5 + $0x104] ss:$16 sps:$4 sm:$0xff]  }
 0xc83   :  { %3013 = vmatpush2.bf16.msra.mxu1 %v8946_v50 }
 0xc84   :  { %3014 = vmatprep.subr.bf16.mxu1 %v8951_v54 }
 0xc87   :  { %3015 = vmatpush2.bf16.msra.mxu1 %v8958_v56  ;;  %v8992_v56 = vld [vmem:[#allocation5 + $0x128] ss:$16 sps:$4 sm:$0xff]  }
 0xc88   :  { %3016 = vmatprep.subr.bf16.mxu1 %v8963_v10  ;;  %v7721_v10 = vld [vmem:[#allocation5 + $0x120] ss:$16 sps:$4 sm:$0xff]  }
 0xc8b   :  { %3017 = vmatpush2.bf16.msra.mxu1 %v8970_v17 }
 0xce5   :  { %v8808_v21 = vpop.xlane.xlu1 %2534 }
 0xce6   :  { %9895 = vst [vmem:[#allocation23_spill] sm:$0xff] %v8808_v21  ;;  %vm2536_vm15 = vcmp.eq.f32.partialorder %v8805_v11, %v8808_v21  ;;  %v8978_v11 = vld [vmem:[#allocation5 + $0x140] ss:$16 sps:$4 sm:$0xff]   ;;  %v8982_v21 = vld [vmem:[#allocation5 + $0x148] ss:$16 sps:$4 sm:$0xff]  }
 0xce7   :  { %v8813_v59 = vsel %vm2536_vm15, %v8371_v44, 128  ;;  %9905 = vst [vmem:[#allocation32_spill] sm:$0xff] %v8982_v21  ;;  %2978 = vmatpush2.bf16.msra.mxu0 %v8978_v11 }
 0xce8   :  { %v2539_v23 = vshra.s32 %v8813_v59, 16  ;;  %2979 = vmatprep.subr.bf16.mxu0 %v8984_v33  ;;  %v2538_v17 = vand.u32 65535, %v8813_v59 }
 0xcea   :  { %v8816_v25 = vcvt.s32.f32 %v2539_v23  ;;  %v8975_v23 = vld [vmem:[#allocation5 + $0x14c] ss:$16 sps:$4 sm:$0xff]  }
 0xceb   :  { %9904 = vst [vmem:[#allocation31_spill] sm:$0xff] %v8975_v23  ;;  %3018 = vmatprep.subr.bf16.mxu1 %v8975_v23  ;;  %2980 = vmatpush2.bf16.msra.mxu0 %v7721_v10  ;;  %v2540_v23 = vcvt.s32.f32 %v2538_v17 }
 0xcec   :  { %2542 = vmin.xlane.f32.xlu0 %v8816_v25  ;;  %3019 = vmatpush2.bf16.msra.mxu1 %v8982_v21  ;;  %v7727_v21 = vld [vmem:[#allocation5 + $0x100] ss:$16 sps:$4 sm:$0xff]  }
 0xced   :  { %3020 = vmatprep.subr.bf16.mxu1 %v8987_v42  ;;  %2981 = vmatprep.subr.bf16.mxu0 %v7729_v7 }
 0xcef   :  { %2982 = vmatpush2.bf16.msra.mxu0 %v7727_v21 }
 0xcf0   :  { %3021 = vmatpush2.bf16.msra.mxu1 %v8992_v56  ;;  %7279 = vmatprep.subr.bf16.mxu0 %v9879_v5 }
 0xcf1   :  { %3022 = vmatprep.subr.bf16.mxu1 %v8998_v43 }
 0xcf4   :  { %3023 = vmatpush2.bf16.msra.mxu1 %v9000_v38 }
 0xcf5   :  { %3574 = vmatprep.subr.bf16.mxu1 %v8821_v29  ;;  %v7734_v29 = vld [vmem:[#allocation7 + $0x30] sm:$0xff]  }
 0xd75   :  { %v2543_v54 = vpop.xlane.xlu0 %2542 }
 0xd76   :  { %vm2544_vm0 = vcmp.eq.f32.partialorder %v8816_v25, %v2543_v54  ;;  %v2549_v59 = vcvt.f32.s32 %v2543_v54 }
 0xd77   :  { %v2545_v50 = vsel %vm2544_vm0, %v2540_v23, inf }
 0xd78   :  { %2546 = vmin.xlane.f32.xlu1 %v2545_v50  ;;  %v2550_v17 = vshll.u32 %v2549_v59, 16 }
 0xe01   :  { %v2547_v25 = vpop.xlane.xlu1 %2546 }
 0xe02   :  { %v2548_v50 = vcvt.f32.s32 %v2547_v25 }
 0xe04   :  { %v2551_v23 = vadd.s32 %v2550_v17, %v2548_v50 }
 0xe06   :  { %vm2563_vm1 = vcmp.eq.s32.totalorder %v8371_v44, %v2551_v23 }
 0xe07   :  { %vm6700_vm3 = vmpackc.low %vm2563_vm1, %vm2563_vm1 }
 0xe08   :  { %6701 = vmatmul.mubr.msk.bf16.vlgmr.msra.gmra.mxu0 %vm6700_vm3, %v9880_v9  ;;  %6703 = vmatmul.mubr.msk.bf16.vlgmr.msra.gmra.mxu1 %vm6700_vm3, %v9880_v9 }
 0xe09   :  { %7295 = vmatprep.mubr.msk.bf16.mxu0 %vm8260_vm2, %v9879_v5  ;;  %3575 = vmatpush1.bf16.msra.mxu1 %v8819_v27  ;;  %v7733_v27 = vld [vmem:[#allocation7 + $0x38] sm:$0xff]  }
 0xe0a   :  { %3576 = vmatprep.subr.bf16.mxu1 %v8827_v37  ;;  %7280 = vmatpush3.bf16.msra.mxu0 %v7733_v27  ;;  %v7735_v37 = vld [vmem:[#allocation7 + $0x28] sm:$0xff]   ;;  %v7741_v27 = vld [vmem:[#allocation7 + $0x38] sm:$0xff]  }
 0xe0b   :  { %7281 = vmatprep.subr.bf16.mxu0 %v9879_v5 }
 0xe0d   :  { %3577 = vmatpush1.bf16.msra.mxu1 %v8834_v45  ;;  %v7739_v45 = vld [vmem:[#allocation7 + $0x8] sm:$0xff]  }
 0xe0e   :  { %3578 = vmatprep.subr.bf16.mxu1 %v8840_v49  ;;  %7282 = vmatpush3.bf16.msra.mxu0 %v7734_v29  ;;  %v7740_v49 = vld [vmem:[#allocation7] sm:$0xff]   ;;  %v7742_v29 = vld [vmem:[#allocation7 + $0x30] sm:$0xff]  }
 0xe0f   :  { %7283 = vmatprep.subr.bf16.mxu0 %v9879_v5 }
 0xe11   :  { %3579 = vmatpush1.bf16.msra.mxu1 %v8846_v53 }
 0xe12   :  { %3580 = vmatprep.subr.bf16.mxu1 %v8852_v2  ;;  %7284 = vmatpush3.bf16.msra.mxu0 %v7735_v37  ;;  %v7743_v37 = vld [vmem:[#allocation7 + $0x28] sm:$0xff]  }
 0xe13   :  { %7285 = vmatprep.subr.bf16.mxu0 %v9879_v5 }
 0xe15   :  { %3581 = vmatpush1.bf16.msra.mxu1 %v8858_v3 }
 0xe16   :  { %3582 = vmatprep.subr.bf16.mxu1 %v8864_v58 }
 0xe19   :  { %3583 = vmatpush1.bf16.msra.mxu1 %v8870_v4 }
 0xe1a   :  { %3584 = vmatprep.subr.bf16.mxu1 %v8876_v8 }
 0xe1d   :  { %3585 = vmatpush1.bf16.msra.mxu1 %v8882_v1 }
 0xe1e   :  { %3586 = vmatprep.subr.bf16.mxu1 %v8888_v60 }
 0xe21   :  { %3587 = vmatpush1.bf16.msra.mxu1 %v8894_v14 }
 0xe22   :  { %3588 = vmatprep.subr.bf16.mxu1 %v8900_v20 }
 0xe25   :  { %3589 = vmatpush1.bf16.msra.mxu1 %v8906_v24 }
 0xe26   :  { %3590 = vmatprep.subr.bf16.mxu1 %v8912_v28 }
 0xe29   :  { %3591 = vmatpush2.bf16.msra.mxu1 %v8918_v32 }
 0xe2a   :  { %3592 = vmatprep.subr.bf16.mxu1 %v8924_v36 }
 0xe2d   :  { %3593 = vmatpush2.bf16.msra.mxu1 %v8930_v41 }
 0xe2e   :  { %3594 = vmatprep.subr.bf16.mxu1 %v8936_v46 }
 0xe31   :  { %3595 = vmatpush2.bf16.msra.mxu1 %v8942_v48 }
 0xe32   :  { %3596 = vmatprep.subr.bf16.mxu1 %v8948_v52 }
 0xe35   :  { %3597 = vmatpush2.bf16.msra.mxu1 %v8954_v55 }
 0xe36   :  { %3598 = vmatprep.subr.bf16.mxu1 %v8960_v57 }
 0xe39   :  { %3599 = vmatpush2.bf16.msra.mxu1 %v8966_v16 }
 0xe3a   :  { %3600 = vmatprep.subr.bf16.mxu1 %v8972_v19 }
 0xe3d   :  { %3601 = vmatpush2.bf16.msra.mxu1 %v8978_v11  ;;  %v7736_v11 = vld [vmem:[#allocation7 + $0x20] sm:$0xff]  }
 0xe3e   :  { %3602 = vmatprep.subr.bf16.mxu1 %v8984_v33  ;;  %7286 = vmatpush3.bf16.msra.mxu0 %v7736_v11  ;;  %v7737_v33 = vld [vmem:[#allocation7 + $0x18] sm:$0xff]   ;;  %v7744_v11 = vld [vmem:[#allocation7 + $0x20] sm:$0xff]  }
 0xe3f   :  { %7287 = vmatprep.subr.bf16.mxu0 %v9879_v5 }
 0xe41   :  { %3603 = vmatpush2.bf16.msra.mxu1 %v7721_v10 }
 0xe42   :  { %3604 = vmatprep.subr.bf16.mxu1 %v7729_v7  ;;  %7288 = vmatpush3.bf16.msra.mxu0 %v7737_v33  ;;  %v7745_v33 = vld [vmem:[#allocation7 + $0x18] sm:$0xff]  }
 0xe43   :  { %7289 = vmatprep.subr.bf16.mxu0 %v9879_v5 }
 0xe45   :  { %3605 = vmatpush2.bf16.msra.mxu1 %v7727_v21  ;;  %v7738_v21 = vld [vmem:[#allocation7 + $0x10] sm:$0xff]  }
 0xe46   :  { %7299 = vmatprep.subr.bf16.mxu1 %v9879_v5  ;;  %7290 = vmatpush3.bf16.msra.mxu0 %v7738_v21  ;;  %v7746_v21 = vld [vmem:[#allocation7 + $0x10] sm:$0xff]  }
 0xe47   :  { %7291 = vmatprep.subr.bf16.mxu0 %v9879_v5 }
 0xe4a   :  { %7292 = vmatpush3.bf16.msra.mxu0 %v7739_v45  ;;  %v7747_v45 = vld [vmem:[#allocation7 + $0x8] sm:$0xff]  }
 0xe4b   :  { %7293 = vmatprep.subr.bf16.mxu0 %v9879_v5 }
 0xe4e   :  { %7294 = vmatpush3.bf16.msra.mxu0 %v7740_v49  ;;  %v7748_v49 = vld [vmem:[#allocation7] sm:$0xff]  }
 0xe4f   :  { %3615 = vmatprep.subr.bf16.mxu0 %v8825_v35 }
 0xec8   :  { %v2985_v53 = vpop.f32.mrf.mxu0  ;;  %v3026_v2 = vpop.f32.mrf.mxu1 }
 0xec9   :  { %v6704_v3 = vmul.f32 -1.442695, %v2985_v53 }
 0xeca   :  { %v2987_v58 = vpop.f32.mrf.mxu0  ;;  %v3028_v4 = vpop.f32.mrf.mxu1 }
 0xecb   :  { %8013 = vpow2.f32 %v6704_v3  ;;  %v6705_v20 = vmul.f32 -1.442695, %v2987_v58 }
 0xecc   :  { %v2989_v8 = vpop.f32.mrf.mxu0  ;;  %v3030_v1 = vpop.f32.mrf.mxu1 }
 0xecd   :  { %8015 = vpow2.f32 %v6705_v20 }
 0xece   :  { %v2990_v60 = vpop.f32.mrf.mxu0  ;;  %v3031_v14 = vpop.f32.mrf.mxu1 }
 0xed8   :  { %v8014_v24 = vpop.eup %8013 }
 0xed9   :  { %v3036_v28 = vadd.f32 1.0, %v8014_v24 }
 0xeda   :  { %v8016_v32 = vpop.eup %8015 }
 0xedb   :  { %8017 = vrcp.f32 %v3036_v28  ;;  %v3042_v36 = vadd.f32 1.0, %v8016_v32 }
 0xedd   :  { %8019 = vrcp.f32 %v3042_v36 }
 0xee8   :  { %v8018_v41 = vpop.eup %8017 }
 0xee9   :  { %v3045_v35 = vmul.f32 %v8018_v41, %v3028_v4 }
 0xeea   :  { %v8020_v7 = vpop.eup %8019 }
 0xeeb   :  { %v3046_v46 = vadd.f32 %v3045_v35, %v3026_v2  ;;  %v3048_v48 = vsub.f32 1.0, %v8020_v7  ;;  %v3050_v55 = vmul.f32 %v8020_v7, %v8800_v61  ;;  %v9906_v61 = vld [vmem:[#allocation24_spill] sm:$0xff] }
 0xeed   :  { %8021 = vtanh.f32 %v3046_v46 }
 0xefa   :  { %v8022_v52 = vpop.eup %8021 }
 0xefb   :  { %v3049_v54 = vmul.f32 %v8022_v52, %v3048_v48 }
 0xefd   :  { %v9049_v57 = vadd.f32 %v3050_v55, %v3049_v54 }
 0xeff   :  { %v3052_v10 = vpack.c.bf16 %v9049_v57, %v9049_v57 }
 0xf01   :  { %7296 = vmatmul.mubr.bf16.vlgmr.msra.gmra.mxu0 %v3052_v10  ;;  %3606 = vmatprep.mubr.bf16.mxu1 %v3052_v10 }
 0xf02   :  { %3647 = vmatprep.mubr.bf16.mxu0 %v3052_v10  ;;  %3616 = vmatpush1.bf16.msra.mxu0 %v8823_v31  ;;  %v9907_v31 = vld [vmem:[#allocation25_spill] sm:$0xff] }
 0xf03   :  { %3617 = vmatprep.subr.bf16.mxu0 %v8830_v40  ;;  %v9908_v40 = vld [vmem:[#allocation26_spill] sm:$0xff] }
 0xf06   :  { %3618 = vmatpush1.bf16.msra.mxu0 %v8838_v47  ;;  %v9909_v47 = vld [vmem:[#allocation27_spill] sm:$0xff] }
 0xf07   :  { %3619 = vmatprep.subr.bf16.mxu0 %v8843_v51  ;;  %v9910_v51 = vld [vmem:[#allocation28_spill] sm:$0xff] }
 0xf0a   :  { %3620 = vmatpush1.bf16.msra.mxu0 %v8850_v62  ;;  %v9911_v62 = vld [vmem:[#allocation29_spill] sm:$0xff] }
 0xf0b   :  { %3621 = vmatprep.subr.bf16.mxu0 %v8855_v39  ;;  %v9912_v39 = vld [vmem:[#allocation15_spill] sm:$0xff] }
 0xf0e   :  { %3622 = vmatpush1.bf16.msra.mxu0 %v8862_v15  ;;  %v9913_v15 = vld [vmem:[#allocation30_spill] sm:$0xff] }
 0xf0f   :  { %3623 = vmatprep.subr.bf16.mxu0 %v8867_v63  ;;  %v9914_v63 = vld [vmem:[#allocation31_spill] sm:$0xff] }
 0xf12   :  { %3624 = vmatpush1.bf16.msra.mxu0 %v8874_v6  ;;  %v9915_v6 = vld [vmem:[#allocation32_spill] sm:$0xff] }
 0xf13   :  { %3625 = vmatprep.subr.bf16.mxu0 %v8879_v0 }
 0xf16   :  { %3626 = vmatpush1.bf16.msra.mxu0 %v8886_v13  ;;  %v9087_v13 = vld [vmem:[%s9779_s3] ss:$0 sm:$0xff] }
 0xf17   :  { %3627 = vmatprep.subr.bf16.mxu0 %v8891_v12  ;;  %9916 = vst [vmem:[#allocation24_spill] sm:$0xff] %v9087_v13 }
 0xf1a   :  { %3628 = vmatpush1.bf16.msra.mxu0 %v8898_v18 }
 0xf1b   :  { %3629 = vmatprep.subr.bf16.mxu0 %v8903_v22 }
 0xf1e   :  { %3630 = vmatpush1.bf16.msra.mxu0 %v8910_v26 }
 0xf1f   :  { %3631 = vmatprep.subr.bf16.mxu0 %v8915_v30 }
 0xf22   :  { %3632 = vmatpush2.bf16.msra.mxu0 %v8922_v34 }
 0xf23   :  { %3633 = vmatprep.subr.bf16.mxu0 %v9906_v61 }
 0xf26   :  { %3634 = vmatpush2.bf16.msra.mxu0 %v9907_v31 }
 0xf27   :  { %3635 = vmatprep.subr.bf16.mxu0 %v9908_v40 }
 0xf2a   :  { %3636 = vmatpush2.bf16.msra.mxu0 %v9909_v47 }
 0xf2b   :  { %3637 = vmatprep.subr.bf16.mxu0 %v9910_v51 }
 0xf2e   :  { %3638 = vmatpush2.bf16.msra.mxu0 %v9911_v62 }
 0xf2f   :  { %3639 = vmatprep.subr.bf16.mxu0 %v9912_v39 }
 0xf32   :  { %3640 = vmatpush2.bf16.msra.mxu0 %v9913_v15 }
 0xf33   :  { %3641 = vmatprep.subr.bf16.mxu0 %v9914_v63 }
 0xf36   :  { %3642 = vmatpush2.bf16.msra.mxu0 %v9915_v6  ;;  %v9130_v6 = vld [vmem:[#allocation5 + $0xe0] ss:$16 sps:$4 sm:$0xff]  }
 0xf37   :  { %3643 = vmatprep.subr.bf16.mxu0 %v8987_v42 }
 0xf3a   :  { %3644 = vmatpush2.bf16.msra.mxu0 %v8992_v56 }
 0xf3b   :  { %3645 = vmatprep.subr.bf16.mxu0 %v8998_v43 }
 0xf3e   :  { %3646 = vmatpush2.bf16.msra.mxu0 %v9000_v38 }
 0xfc1   :  { %v3151_v0 = vpop.f32.mrf.mxu0 }
 0xfc2   :  { %v9090_v12 = vadd.f32 %v9087_v13, %v3151_v0  ;;  %v9132_v0 = vld [vmem:[#allocation5 + $0xe4] ss:$16 sps:$4 sm:$0xff]  }
 0xfc3   :  { %v7297_v18 = vpop.f32.mrf.mxu0  ;;  %4197 = vmatprep.subr.bf16.mxu0 %v9132_v0 }
 0xfc4   :  { %9917 = vst [vmem:[#allocation25_spill] sm:$0xff] %v9090_v12  ;;  %3157 = vmax.xlane.f32.xlu0 %v9090_v12  ;;  %v9134_v18 = vld [vmem:[#allocation5 + $0xe8] ss:$16 sps:$4 sm:$0xff]  }
 0xfc5   :  { %v3154_v22 = vpop.f32.mrf.mxu0 }
 0xfc6   :  { %v9136_v22 = vld [vmem:[#allocation5 + $0xec] ss:$16 sps:$4 sm:$0xff]  }
 0xfc7   :  { %v7298_v42 = vpop.f32.mrf.mxu0 }
 0xfc8   :  { %v9138_v42 = vld [vmem:[#allocation5 + $0xc4] ss:$16 sps:$4 sm:$0xff]  }
0x104d   :  { %v9093_v26 = vpop.xlane.xlu0 %3157 }
0x104e   :  { %9918 = vst [vmem:[#allocation26_spill] sm:$0xff] %v9093_v26  ;;  %vm3159_vm4 = vcmp.eq.f32.partialorder %v9090_v12, %v9093_v26  ;;  %v9293_v12 = vld [vmem:[#allocation5 + $0x148] ss:$16 sps:$4 sm:$0xff]   ;;  %v9295_v26 = vld [vmem:[#allocation5 + $0x124] ss:$16 sps:$4 sm:$0xff]  }
0x104f   :  { %v3160_v30 = vsel %vm3159_vm4, %v8371_v44, 128  ;;  %9930 = vst [vmem:[#allocation37_spill] sm:$0xff] %v9293_v12 }
0x1050   :  { %v3162_v34 = vshra.s32 %v3160_v30, 16  ;;  %v3161_v43 = vand.u32 65535, %v3160_v30  ;;  %v9141_v30 = vld [vmem:[#allocation5 + $0xcc] ss:$16 sps:$4 sm:$0xff]  }
0x1052   :  { %v3164_v38 = vcvt.s32.f32 %v3162_v34  ;;  %v3163_v16 = vcvt.s32.f32 %v3161_v43  ;;  %v9145_v34 = vld [vmem:[#allocation5 + $0xc0] ss:$16 sps:$4 sm:$0xff]   ;;  %v9151_v43 = vld [vmem:[#allocation5 + $0xa4] ss:$16 sps:$4 sm:$0xff]  }
0x1054   :  { %3165 = vmin.xlane.f32.xlu1 %v3164_v38 }
0x10dd   :  { %v3166_v56 = vpop.xlane.xlu1 %3165 }
0x10de   :  { %vm3167_vm5 = vcmp.eq.f32.partialorder %v3164_v38, %v3166_v56  ;;  %v3172_v59 = vcvt.f32.s32 %v3166_v56  ;;  %v9149_v38 = vld [vmem:[#allocation5 + $0xc8] ss:$16 sps:$4 sm:$0xff]   ;;  %v9154_v56 = vld [vmem:[#allocation5 + $0xac] ss:$16 sps:$4 sm:$0xff]  }
0x10df   :  { %v3168_v19 = vsel %vm3167_vm5, %v3163_v16, inf  ;;  %v9157_v16 = vld [vmem:[#allocation5 + $0xa0] ss:$16 sps:$4 sm:$0xff]  }
0x10e0   :  { %3169 = vmin.xlane.f32.xlu0 %v3168_v19  ;;  %v3173_v17 = vshll.u32 %v3172_v59, 16  ;;  %v9161_v19 = vld [vmem:[#allocation5 + $0xa8] ss:$16 sps:$4 sm:$0xff]   ;;  %v9163_v59 = vld [vmem:[#allocation5 + $0x84] ss:$16 sps:$4 sm:$0xff]  }
0x1169   :  { %v3170_v25 = vpop.xlane.xlu0 %3169 }
0x116a   :  { %v3171_v50 = vcvt.f32.s32 %v3170_v25  ;;  %v9166_v25 = vld [vmem:[#allocation5 + $0x8c] ss:$16 sps:$4 sm:$0xff]  }
0x116c   :  { %v3174_v23 = vadd.s32 %v3173_v17, %v3171_v50  ;;  %v9169_v17 = vld [vmem:[#allocation5 + $0x80] ss:$16 sps:$4 sm:$0xff]   ;;  %v9173_v50 = vld [vmem:[#allocation5 + $0x88] ss:$16 sps:$4 sm:$0xff]  }
0x116e   :  { %vm3186_vm6 = vcmp.eq.s32.totalorder %v8371_v44, %v3174_v23  ;;  %v9175_v23 = vld [vmem:[#allocation5 + $0x64] ss:$16 sps:$4 sm:$0xff]  }
0x116f   :  { %vm6779_vm7 = vmpackc.low %vm3186_vm6, %vm3186_vm6 }
0x1170   :  { %6780 = vmatmul.mubr.msk.bf16.vlgmr.msra.gmra.mxu1 %vm6779_vm7, %v9880_v9  ;;  %6782 = vmatmul.mubr.msk.bf16.vlgmr.msra.gmra.mxu0 %vm6779_vm7, %v9880_v9 }
0x1171   :  { %7315 = vmatprep.mubr.msk.bf16.mxu1 %vm8260_vm2, %v9879_v5  ;;  %7300 = vmatpush3.bf16.msra.mxu1 %v7741_v27  ;;  %v9178_v27 = vld [vmem:[#allocation5 + $0x6c] ss:$16 sps:$4 sm:$0xff]  }
0x1172   :  { %7301 = vmatprep.subr.bf16.mxu1 %v9879_v5  ;;  %4198 = vmatpush1.bf16.msra.mxu0 %v9130_v6 }
0x1173   :  { %4199 = vmatprep.subr.bf16.mxu0 %v9138_v42 }
0x1175   :  { %7302 = vmatpush3.bf16.msra.mxu1 %v7742_v29  ;;  %v9181_v29 = vld [vmem:[#allocation5 + $0x60] ss:$16 sps:$4 sm:$0xff]  }
0x1176   :  { %7303 = vmatprep.subr.bf16.mxu1 %v9879_v5  ;;  %4200 = vmatpush1.bf16.msra.mxu0 %v9145_v34 }
0x1177   :  { %4201 = vmatprep.subr.bf16.mxu0 %v9151_v43 }
0x1179   :  { %7304 = vmatpush3.bf16.msra.mxu1 %v7743_v37  ;;  %v9185_v37 = vld [vmem:[#allocation5 + $0x68] ss:$16 sps:$4 sm:$0xff]  }
0x117a   :  { %7305 = vmatprep.subr.bf16.mxu1 %v9879_v5  ;;  %4202 = vmatpush1.bf16.msra.mxu0 %v9157_v16 }
0x117b   :  { %4203 = vmatprep.subr.bf16.mxu0 %v9163_v59 }
0x117d   :  { %7306 = vmatpush3.bf16.msra.mxu1 %v7744_v11  ;;  %v9187_v11 = vld [vmem:[#allocation5 + $0x44] ss:$16 sps:$4 sm:$0xff]  }
0x117e   :  { %7307 = vmatprep.subr.bf16.mxu1 %v9879_v5  ;;  %4204 = vmatpush1.bf16.msra.mxu0 %v9169_v17 }
0x117f   :  { %4205 = vmatprep.subr.bf16.mxu0 %v9175_v23 }
0x1181   :  { %7308 = vmatpush3.bf16.msra.mxu1 %v7745_v33  ;;  %v9190_v33 = vld [vmem:[#allocation5 + $0x4c] ss:$16 sps:$4 sm:$0xff]  }
0x1182   :  { %7309 = vmatprep.subr.bf16.mxu1 %v9879_v5  ;;  %4206 = vmatpush1.bf16.msra.mxu0 %v9181_v29 }
0x1183   :  { %4207 = vmatprep.subr.bf16.mxu0 %v9187_v11 }
0x1185   :  { %7310 = vmatpush3.bf16.msra.mxu1 %v7746_v21  ;;  %v9193_v21 = vld [vmem:[#allocation5 + $0x40] ss:$16 sps:$4 sm:$0xff]  }
0x1186   :  { %7311 = vmatprep.subr.bf16.mxu1 %v9879_v5  ;;  %4208 = vmatpush1.bf16.msra.mxu0 %v9193_v21 }
0x1189   :  { %7312 = vmatpush3.bf16.msra.mxu1 %v7747_v45  ;;  %v9197_v45 = vld [vmem:[#allocation5 + $0x48] ss:$16 sps:$4 sm:$0xff]  }
0x118a   :  { %7313 = vmatprep.subr.bf16.mxu1 %v9879_v5 }
0x118d   :  { %7314 = vmatpush3.bf16.msra.mxu1 %v7748_v49  ;;  %v9199_v49 = vld [vmem:[#allocation5 + $0x24] ss:$16 sps:$4 sm:$0xff]  }
0x118e   :  { %4238 = vmatprep.subr.bf16.mxu1 %v9136_v22  ;;  %4209 = vmatprep.subr.bf16.mxu0 %v9199_v49 }
0x1230   :  { %v3608_v53 = vpop.f32.mrf.mxu1  ;;  %v3649_v2 = vpop.f32.mrf.mxu0 }
0x1231   :  { %v6783_v3 = vmul.f32 -1.442695, %v3608_v53  ;;  %v9202_v53 = vld [vmem:[#allocation5 + $0x2c] ss:$16 sps:$4 sm:$0xff]  }
0x1232   :  { %v3610_v58 = vpop.f32.mrf.mxu1  ;;  %v3651_v4 = vpop.f32.mrf.mxu0 }
0x1233   :  { %8023 = vpow2.f32 %v6783_v3  ;;  %v6784_v20 = vmul.f32 -1.442695, %v3610_v58  ;;  %v9209_v3 = vld [vmem:[#allocation5 + $0x28] ss:$16 sps:$4 sm:$0xff]   ;;  %v9211_v58 = vld [vmem:[#allocation5 + $0x4] ss:$16 sps:$4 sm:$0xff]  }
0x1234   :  { %v3612_v8 = vpop.f32.mrf.mxu1  ;;  %v3653_v1 = vpop.f32.mrf.mxu0 }
0x1235   :  { %8025 = vpow2.f32 %v6784_v20  ;;  %v9217_v8 = vld [vmem:[#allocation5] ss:$16 sps:$4 sm:$0xff]   ;;  %v9221_v1 = vld [vmem:[#allocation5 + $0x8] ss:$16 sps:$4 sm:$0xff]  }
0x1236   :  { %v3613_v60 = vpop.f32.mrf.mxu1  ;;  %v3654_v14 = vpop.f32.mrf.mxu0  ;;  %v9229_v20 = vld [vmem:[#allocation5 + $0x1e0] ss:$16 sps:$4 sm:$0xff]  }
0x1237   :  { %v9223_v60 = vld [vmem:[#allocation5 + $0x1e4] ss:$16 sps:$4 sm:$0xff]   ;;  %v9226_v14 = vld [vmem:[#allocation5 + $0x1ec] ss:$16 sps:$4 sm:$0xff]  }
0x1240   :  { %v8024_v24 = vpop.eup %8023 }
0x1241   :  { %v3659_v28 = vadd.f32 1.0, %v8024_v24  ;;  %v9233_v24 = vld [vmem:[#allocation5 + $0x1e8] ss:$16 sps:$4 sm:$0xff]  }
0x1242   :  { %v8026_v32 = vpop.eup %8025 }
0x1243   :  { %8027 = vrcp.f32 %v3659_v28  ;;  %v3665_v36 = vadd.f32 1.0, %v8026_v32  ;;  %v9235_v28 = vld [vmem:[#allocation5 + $0x1c4] ss:$16 sps:$4 sm:$0xff]   ;;  %v9238_v32 = vld [vmem:[#allocation5 + $0x1cc] ss:$16 sps:$4 sm:$0xff]  }
0x1244   :  { %9921 = vst [vmem:[#allocation29_spill] sm:$0xff] %v9238_v32 }
0x1245   :  { %8029 = vrcp.f32 %v3665_v36  ;;  %v9241_v36 = vld [vmem:[#allocation5 + $0x1c0] ss:$16 sps:$4 sm:$0xff]  }
0x1250   :  { %v8028_v41 = vpop.eup %8027 }
0x1251   :  { %v3668_v35 = vmul.f32 %v8028_v41, %v3651_v4  ;;  %v9214_v4 = vld [vmem:[#allocation5 + $0xc] ss:$16 sps:$4 sm:$0xff]   ;;  %v9245_v41 = vld [vmem:[#allocation5 + $0x1c8] ss:$16 sps:$4 sm:$0xff]  }
0x1252   :  { %v8030_v7 = vpop.eup %8029  ;;  %9922 = vst [vmem:[#allocation15_spill] sm:$0xff] %v9245_v41 }
0x1253   :  { %v3669_v46 = vadd.f32 %v3668_v35, %v3649_v2  ;;  %v3671_v48 = vsub.f32 1.0, %v8030_v7  ;;  %v3673_v55 = vmul.f32 %v8030_v7, %v9049_v57  ;;  %v9205_v2 = vld [vmem:[#allocation5 + $0x20] ss:$16 sps:$4 sm:$0xff]   ;;  %v9247_v35 = vld [vmem:[#allocation5 + $0x1a4] ss:$16 sps:$4 sm:$0xff]  }
0x1254   :  { %4210 = vmatpush1.bf16.msra.mxu0 %v9205_v2  ;;  %v9253_v7 = vld [vmem:[#allocation5 + $0x1a0] ss:$16 sps:$4 sm:$0xff]  }
0x1255   :  { %8031 = vtanh.f32 %v3669_v46  ;;  %4211 = vmatprep.subr.bf16.mxu0 %v9211_v58  ;;  %v9250_v46 = vld [vmem:[#allocation5 + $0x1ac] ss:$16 sps:$4 sm:$0xff]  }
0x1256   :  { %9923 = vst [vmem:[#allocation30_spill] sm:$0xff] %v9250_v46 }
0x1258   :  { %4212 = vmatpush1.bf16.msra.mxu0 %v9217_v8 }
0x1259   :  { %4213 = vmatprep.subr.bf16.mxu0 %v9223_v60 }
0x125c   :  { %4214 = vmatpush2.bf16.msra.mxu0 %v9229_v20 }
0x125d   :  { %4215 = vmatprep.subr.bf16.mxu0 %v9235_v28 }
0x1260   :  { %4216 = vmatpush2.bf16.msra.mxu0 %v9241_v36 }
0x1261   :  { %4217 = vmatprep.subr.bf16.mxu0 %v9247_v35 }
0x1262   :  { %v8032_v52 = vpop.eup %8031 }
0x1263   :  { %v3672_v54 = vmul.f32 %v8032_v52, %v3671_v48  ;;  %v9257_v48 = vld [vmem:[#allocation5 + $0x1a8] ss:$16 sps:$4 sm:$0xff]   ;;  %v9259_v52 = vld [vmem:[#allocation5 + $0x184] ss:$16 sps:$4 sm:$0xff]  }
0x1264   :  { %9924 = vst [vmem:[#allocation31_spill] sm:$0xff] %v9257_v48  ;;  %4218 = vmatpush2.bf16.msra.mxu0 %v9253_v7 }
0x1265   :  { %v9111_v10 = vadd.f32 %v3673_v55, %v3672_v54  ;;  %v9262_v54 = vld [vmem:[#allocation5 + $0x18c] ss:$16 sps:$4 sm:$0xff]   ;;  %v9265_v55 = vld [vmem:[#allocation5 + $0x180] ss:$16 sps:$4 sm:$0xff]   ;;  %4219 = vmatprep.subr.bf16.mxu0 %v9259_v52 }
0x1266   :  { %9925 = vst [vmem:[#allocation32_spill] sm:$0xff] %v9262_v54 }
0x1267   :  { %v3675_v61 = vpack.c.bf16 %v9111_v10, %v9111_v10 }
0x1268   :  { %4220 = vmatpush2.bf16.msra.mxu0 %v9265_v55 }
0x1269   :  { %7316 = vmatmul.mubr.bf16.vlgmr.msra.gmra.mxu1 %v3675_v61  ;;  %4229 = vmatprep.mubr.bf16.mxu0 %v3675_v61 }
0x126a   :  { %4270 = vmatprep.mubr.bf16.mxu1 %v3675_v61  ;;  %4239 = vmatpush1.bf16.msra.mxu1 %v9134_v18  ;;  %v9269_v61 = vld [vmem:[#allocation5 + $0x188] ss:$16 sps:$4 sm:$0xff]  }
0x126b   :  { %4240 = vmatprep.subr.bf16.mxu1 %v9141_v30  ;;  %9926 = vst [vmem:[#allocation33_spill] sm:$0xff] %v9269_v61 }
0x126e   :  { %4241 = vmatpush1.bf16.msra.mxu1 %v9149_v38 }
0x126f   :  { %4242 = vmatprep.subr.bf16.mxu1 %v9154_v56 }
0x1272   :  { %4243 = vmatpush1.bf16.msra.mxu1 %v9161_v19 }
0x1273   :  { %4244 = vmatprep.subr.bf16.mxu1 %v9166_v25 }
0x1276   :  { %4245 = vmatpush1.bf16.msra.mxu1 %v9173_v50 }
0x1277   :  { %4246 = vmatprep.subr.bf16.mxu1 %v9178_v27 }
0x127a   :  { %4247 = vmatpush1.bf16.msra.mxu1 %v9185_v37 }
0x127b   :  { %4248 = vmatprep.subr.bf16.mxu1 %v9190_v33 }
0x127e   :  { %4249 = vmatpush1.bf16.msra.mxu1 %v9197_v45 }
0x127f   :  { %4250 = vmatprep.subr.bf16.mxu1 %v9202_v53 }
0x1282   :  { %4251 = vmatpush1.bf16.msra.mxu1 %v9209_v3 }
0x1283   :  { %4252 = vmatprep.subr.bf16.mxu1 %v9214_v4 }
0x1286   :  { %4253 = vmatpush1.bf16.msra.mxu1 %v9221_v1 }
0x1287   :  { %4254 = vmatprep.subr.bf16.mxu1 %v9226_v14 }
0x128a   :  { %4255 = vmatpush2.bf16.msra.mxu1 %v9233_v24 }
0x128b   :  { %4256 = vmatprep.subr.bf16.mxu1 %v9238_v32  ;;  %v9311_v32 = vld [vmem:[#allocation5 + $0x108] ss:$16 sps:$4 sm:$0xff]  }
0x128e   :  { %4257 = vmatpush2.bf16.msra.mxu1 %v9245_v41  ;;  %v9309_v41 = vld [vmem:[#allocation5 + $0x10c] ss:$16 sps:$4 sm:$0xff]  }
0x128f   :  { %4258 = vmatprep.subr.bf16.mxu1 %v9250_v46  ;;  %v7841_v46 = vld [vmem:[#allocation5 + $0x104] ss:$16 sps:$4 sm:$0xff]  }
0x1292   :  { %4259 = vmatpush2.bf16.msra.mxu1 %v9257_v48 }
0x1293   :  { %4260 = vmatprep.subr.bf16.mxu1 %v9262_v54 }
0x1296   :  { %4261 = vmatpush2.bf16.msra.mxu1 %v9269_v61  ;;  %v9303_v61 = vld [vmem:[#allocation5 + $0x128] ss:$16 sps:$4 sm:$0xff]  }
0x1329   :  { %v3774_v31 = vpop.f32.mrf.mxu1 }
0x132a   :  { %v9116_v40 = vadd.f32 %v9087_v13, %v3774_v31  ;;  %v9271_v31 = vld [vmem:[#allocation5 + $0x164] ss:$16 sps:$4 sm:$0xff]   ;;  %v9298_v13 = vld [vmem:[#allocation5 + $0x12c] ss:$16 sps:$4 sm:$0xff]  }
0x132b   :  { %v7317_v47 = vpop.f32.mrf.mxu1  ;;  %4221 = vmatprep.subr.bf16.mxu0 %v9271_v31 }
0x132c   :  { %9919 = vst [vmem:[#allocation27_spill] sm:$0xff] %v9116_v40  ;;  %3780 = vmax.xlane.f32.xlu1 %v9116_v40  ;;  %v9274_v47 = vld [vmem:[#allocation5 + $0x16c] ss:$16 sps:$4 sm:$0xff]  }
0x132d   :  { %v3777_v51 = vpop.f32.mrf.mxu1  ;;  %9927 = vst [vmem:[#allocation34_spill] sm:$0xff] %v9274_v47  ;;  %4262 = vmatprep.subr.bf16.mxu1 %v9274_v47  ;;  %v7833_v47 = vld [vmem:[#allocation5 + $0x120] ss:$16 sps:$4 sm:$0xff]  }
0x132e   :  { %v9277_v51 = vld [vmem:[#allocation5 + $0x160] ss:$16 sps:$4 sm:$0xff]  }
0x132f   :  { %v7318_v62 = vpop.f32.mrf.mxu1  ;;  %4222 = vmatpush2.bf16.msra.mxu0 %v9277_v51 }
0x1330   :  { %v9281_v62 = vld [vmem:[#allocation5 + $0x168] ss:$16 sps:$4 sm:$0xff]  }
0x1331   :  { %9928 = vst [vmem:[#allocation35_spill] sm:$0xff] %v9281_v62  ;;  %4263 = vmatpush2.bf16.msra.mxu1 %v9281_v62 }
0x13b5   :  { %v9119_v39 = vpop.xlane.xlu1 %3780 }
0x13b6   :  { %9920 = vst [vmem:[#allocation28_spill] sm:$0xff] %v9119_v39  ;;  %vm3782_vm8 = vcmp.eq.f32.partialorder %v9116_v40, %v9119_v39  ;;  %v9286_v40 = vld [vmem:[#allocation5 + $0x14c] ss:$16 sps:$4 sm:$0xff]   ;;  %v9289_v39 = vld [vmem:[#allocation5 + $0x140] ss:$16 sps:$4 sm:$0xff]  }
0x13b7   :  { %v9124_v57 = vsel %vm3782_vm8, %v8371_v44, 128  ;;  %9929 = vst [vmem:[#allocation36_spill] sm:$0xff] %v9286_v40  ;;  %4264 = vmatprep.subr.bf16.mxu1 %v9286_v40 }
0x13b8   :  { %v3785_v15 = vshra.s32 %v9124_v57, 16  ;;  %4265 = vmatpush2.bf16.msra.mxu1 %v9293_v12  ;;  %v3784_v62 = vand.u32 65535, %v9124_v57  ;;  %v7839_v12 = vld [vmem:[#allocation5 + $0x100] ss:$16 sps:$4 sm:$0xff]  }
0x13b9   :  { %4266 = vmatprep.subr.bf16.mxu1 %v9298_v13 }
0x13ba   :  { %v9127_v63 = vcvt.s32.f32 %v3785_v15  ;;  %v9283_v15 = vld [vmem:[#allocation5 + $0x144] ss:$16 sps:$4 sm:$0xff]   ;;  %v3786_v40 = vcvt.s32.f32 %v3784_v62 }
0x13bb   :  { %4223 = vmatprep.subr.bf16.mxu0 %v9283_v15 }
0x13bc   :  { %3788 = vmin.xlane.f32.xlu0 %v9127_v63  ;;  %4224 = vmatpush2.bf16.msra.mxu0 %v9289_v39 }
0x13bd   :  { %4225 = vmatprep.subr.bf16.mxu0 %v9295_v26  ;;  %4267 = vmatpush2.bf16.msra.mxu1 %v9303_v61 }
0x13be   :  { %4268 = vmatprep.subr.bf16.mxu1 %v9309_v41 }
0x13c0   :  { %4226 = vmatpush2.bf16.msra.mxu0 %v7833_v47 }
0x13c1   :  { %4227 = vmatprep.subr.bf16.mxu0 %v7841_v46  ;;  %4269 = vmatpush2.bf16.msra.mxu1 %v9311_v32 }
0x13c2   :  { %4820 = vmatprep.subr.bf16.mxu1 %v9132_v0  ;;  %v7846_v0 = vld [vmem:[#allocation7 + $0x30] sm:$0xff]  }
0x13c4   :  { %4228 = vmatpush2.bf16.msra.mxu0 %v7839_v12 }
0x13c5   :  { %7319 = vmatprep.subr.bf16.mxu0 %v9879_v5 }
0x1445   :  { %v3789_v54 = vpop.xlane.xlu0 %3788 }
0x1446   :  { %vm3790_vm9 = vcmp.eq.f32.partialorder %v9127_v63, %v3789_v54  ;;  %v3795_v57 = vcvt.f32.s32 %v3789_v54 }
0x1447   :  { %v3791_v48 = vsel %vm3790_vm9, %v3786_v40, inf }
0x1448   :  { %3792 = vmin.xlane.f32.xlu1 %v3791_v48  ;;  %v3796_v40 = vshll.u32 %v3795_v57, 16 }
0x14d1   :  { %v3793_v63 = vpop.xlane.xlu1 %3792 }
0x14d2   :  { %v3794_v48 = vcvt.f32.s32 %v3793_v63 }
0x14d4   :  { %v3797_v62 = vadd.s32 %v3796_v40, %v3794_v48 }
0x14d6   :  { %vm3809_vm10 = vcmp.eq.s32.totalorder %v8371_v44, %v3797_v62 }
0x14d7   :  { %vm6858_vm11 = vmpackc.low %vm3809_vm10, %vm3809_vm10 }
0x14d8   :  { %6859 = vmatmul.mubr.msk.bf16.vlgmr.msra.gmra.mxu0 %vm6858_vm11, %v9880_v9  ;;  %6861 = vmatmul.mubr.msk.bf16.vlgmr.msra.gmra.mxu1 %vm6858_vm11, %v9880_v9 }
0x14d9   :  { %7335 = vmatprep.mubr.msk.bf16.mxu0 %vm8260_vm2, %v9879_v5  ;;  %4821 = vmatpush1.bf16.msra.mxu1 %v9130_v6  ;;  %v7845_v6 = vld [vmem:[#allocation7 + $0x38] sm:$0xff]  }
0x14da   :  { %4822 = vmatprep.subr.bf16.mxu1 %v9138_v42  ;;  %7320 = vmatpush3.bf16.msra.mxu0 %v7845_v6  ;;  %v7847_v42 = vld [vmem:[#allocation7 + $0x28] sm:$0xff]   ;;  %v7853_v6 = vld [vmem:[#allocation7 + $0x38] sm:$0xff]  }
0x14db   :  { %7321 = vmatprep.subr.bf16.mxu0 %v9879_v5 }
0x14dd   :  { %4823 = vmatpush1.bf16.msra.mxu1 %v9145_v34  ;;  %v7851_v34 = vld [vmem:[#allocation7 + $0x8] sm:$0xff]  }
0x14de   :  { %4824 = vmatprep.subr.bf16.mxu1 %v9151_v43  ;;  %7322 = vmatpush3.bf16.msra.mxu0 %v7846_v0  ;;  %v7852_v43 = vld [vmem:[#allocation7] sm:$0xff]   ;;  %v7854_v0 = vld [vmem:[#allocation7 + $0x30] sm:$0xff]  }
0x14df   :  { %7323 = vmatprep.subr.bf16.mxu0 %v9879_v5 }
0x14e1   :  { %4825 = vmatpush1.bf16.msra.mxu1 %v9157_v16 }
0x14e2   :  { %4826 = vmatprep.subr.bf16.mxu1 %v9163_v59  ;;  %7324 = vmatpush3.bf16.msra.mxu0 %v7847_v42  ;;  %v7855_v42 = vld [vmem:[#allocation7 + $0x28] sm:$0xff]  }
0x14e3   :  { %7325 = vmatprep.subr.bf16.mxu0 %v9879_v5 }
0x14e5   :  { %4827 = vmatpush1.bf16.msra.mxu1 %v9169_v17 }
0x14e6   :  { %4828 = vmatprep.subr.bf16.mxu1 %v9175_v23 }
0x14e9   :  { %4829 = vmatpush1.bf16.msra.mxu1 %v9181_v29 }
0x14ea   :  { %4830 = vmatprep.subr.bf16.mxu1 %v9187_v11 }
0x14ed   :  { %4831 = vmatpush1.bf16.msra.mxu1 %v9193_v21 }
0x14ee   :  { %4832 = vmatprep.subr.bf16.mxu1 %v9199_v49 }
0x14f1   :  { %4833 = vmatpush1.bf16.msra.mxu1 %v9205_v2 }
0x14f2   :  { %4834 = vmatprep.subr.bf16.mxu1 %v9211_v58 }
0x14f5   :  { %4835 = vmatpush1.bf16.msra.mxu1 %v9217_v8 }
0x14f6   :  { %4836 = vmatprep.subr.bf16.mxu1 %v9223_v60 }
0x14f9   :  { %4837 = vmatpush2.bf16.msra.mxu1 %v9229_v20 }
0x14fa   :  { %4838 = vmatprep.subr.bf16.mxu1 %v9235_v28 }
0x14fd   :  { %4839 = vmatpush2.bf16.msra.mxu1 %v9241_v36 }
0x14fe   :  { %4840 = vmatprep.subr.bf16.mxu1 %v9247_v35 }
0x1501   :  { %4841 = vmatpush2.bf16.msra.mxu1 %v9253_v7 }
0x1502   :  { %4842 = vmatprep.subr.bf16.mxu1 %v9259_v52 }
0x1505   :  { %4843 = vmatpush2.bf16.msra.mxu1 %v9265_v55 }
0x1506   :  { %4844 = vmatprep.subr.bf16.mxu1 %v9271_v31 }
0x1509   :  { %4845 = vmatpush2.bf16.msra.mxu1 %v9277_v51 }
0x150a   :  { %4846 = vmatprep.subr.bf16.mxu1 %v9283_v15 }
0x150d   :  { %4847 = vmatpush2.bf16.msra.mxu1 %v9289_v39  ;;  %v7848_v39 = vld [vmem:[#allocation7 + $0x20] sm:$0xff]  }
0x150e   :  { %4848 = vmatprep.subr.bf16.mxu1 %v9295_v26  ;;  %7326 = vmatpush3.bf16.msra.mxu0 %v7848_v39  ;;  %v7849_v26 = vld [vmem:[#allocation7 + $0x18] sm:$0xff]   ;;  %v7856_v39 = vld [vmem:[#allocation7 + $0x20] sm:$0xff]  }
0x150f   :  { %7327 = vmatprep.subr.bf16.mxu0 %v9879_v5 }
0x1511   :  { %4849 = vmatpush2.bf16.msra.mxu1 %v7833_v47 }
0x1512   :  { %4850 = vmatprep.subr.bf16.mxu1 %v7841_v46  ;;  %7328 = vmatpush3.bf16.msra.mxu0 %v7849_v26  ;;  %v7857_v26 = vld [vmem:[#allocation7 + $0x18] sm:$0xff]  }
0x1513   :  { %7329 = vmatprep.subr.bf16.mxu0 %v9879_v5 }
0x1515   :  { %4851 = vmatpush2.bf16.msra.mxu1 %v7839_v12  ;;  %v7850_v12 = vld [vmem:[#allocation7 + $0x10] sm:$0xff]  }
0x1516   :  { %7339 = vmatprep.subr.bf16.mxu1 %v9879_v5  ;;  %7330 = vmatpush3.bf16.msra.mxu0 %v7850_v12  ;;  %v7858_v12 = vld [vmem:[#allocation7 + $0x10] sm:$0xff]  }
0x1517   :  { %7331 = vmatprep.subr.bf16.mxu0 %v9879_v5 }
0x151a   :  { %7332 = vmatpush3.bf16.msra.mxu0 %v7851_v34  ;;  %v7859_v34 = vld [vmem:[#allocation7 + $0x8] sm:$0xff]  }
0x151b   :  { %7333 = vmatprep.subr.bf16.mxu0 %v9879_v5 }
0x151e   :  { %7334 = vmatpush3.bf16.msra.mxu0 %v7852_v43  ;;  %v7860_v43 = vld [vmem:[#allocation7] sm:$0xff]  }
0x151f   :  { %4861 = vmatprep.subr.bf16.mxu0 %v9136_v22 }
0x1598   :  { %v4231_v16 = vpop.f32.mrf.mxu0  ;;  %v4272_v59 = vpop.f32.mrf.mxu1 }
0x1599   :  { %v6862_v17 = vmul.f32 -1.442695, %v4231_v16 }
0x159a   :  { %v4233_v23 = vpop.f32.mrf.mxu0  ;;  %v4274_v29 = vpop.f32.mrf.mxu1 }
0x159b   :  { %8033 = vpow2.f32 %v6862_v17  ;;  %v6863_v58 = vmul.f32 -1.442695, %v4233_v23 }
0x159c   :  { %v4235_v11 = vpop.f32.mrf.mxu0  ;;  %v4276_v21 = vpop.f32.mrf.mxu1 }
0x159d   :  { %8035 = vpow2.f32 %v6863_v58 }
0x159e   :  { %v4236_v49 = vpop.f32.mrf.mxu0  ;;  %v4277_v2 = vpop.f32.mrf.mxu1 }
0x15a8   :  { %v8034_v8 = vpop.eup %8033 }
0x15a9   :  { %v4282_v60 = vadd.f32 1.0, %v8034_v8 }
0x15aa   :  { %v8036_v20 = vpop.eup %8035 }
0x15ab   :  { %8037 = vrcp.f32 %v4282_v60  ;;  %v4288_v28 = vadd.f32 1.0, %v8036_v20 }
0x15ad   :  { %8039 = vrcp.f32 %v4288_v28 }
0x15b8   :  { %v8038_v36 = vpop.eup %8037 }
0x15b9   :  { %v4291_v22 = vmul.f32 %v8038_v36, %v4274_v29 }
0x15ba   :  { %v8040_v46 = vpop.eup %8039 }
0x15bb   :  { %v4292_v35 = vadd.f32 %v4291_v22, %v4272_v59  ;;  %v4294_v7 = vsub.f32 1.0, %v8040_v46  ;;  %v4296_v55 = vmul.f32 %v8040_v46, %v9111_v10  ;;  %v9931_v10 = vld [vmem:[#allocation29_spill] sm:$0xff] }
0x15bd   :  { %8041 = vtanh.f32 %v4292_v35 }
0x15ca   :  { %v8042_v52 = vpop.eup %8041 }
0x15cb   :  { %v4295_v54 = vmul.f32 %v8042_v52, %v4294_v7 }
0x15cd   :  { %v9360_v31 = vadd.f32 %v4296_v55, %v4295_v54 }
0x15cf   :  { %v4298_v47 = vpack.c.bf16 %v9360_v31, %v9360_v31 }
0x15d1   :  { %7336 = vmatmul.mubr.bf16.vlgmr.msra.gmra.mxu0 %v4298_v47  ;;  %4852 = vmatprep.mubr.bf16.mxu1 %v4298_v47 }
0x15d2   :  { %4893 = vmatprep.mubr.bf16.mxu0 %v4298_v47  ;;  %4862 = vmatpush1.bf16.msra.mxu0 %v9134_v18  ;;  %v9932_v18 = vld [vmem:[#allocation15_spill] sm:$0xff] }
0x15d3   :  { %4863 = vmatprep.subr.bf16.mxu0 %v9141_v30  ;;  %v9933_v30 = vld [vmem:[#allocation30_spill] sm:$0xff] }
0x15d6   :  { %4864 = vmatpush1.bf16.msra.mxu0 %v9149_v38  ;;  %v9934_v38 = vld [vmem:[#allocation31_spill] sm:$0xff] }
0x15d7   :  { %4865 = vmatprep.subr.bf16.mxu0 %v9154_v56  ;;  %v9935_v56 = vld [vmem:[#allocation32_spill] sm:$0xff] }
0x15da   :  { %4866 = vmatpush1.bf16.msra.mxu0 %v9161_v19  ;;  %v9936_v19 = vld [vmem:[#allocation33_spill] sm:$0xff] }
0x15db   :  { %4867 = vmatprep.subr.bf16.mxu0 %v9166_v25  ;;  %v9937_v25 = vld [vmem:[#allocation34_spill] sm:$0xff] }
0x15de   :  { %4868 = vmatpush1.bf16.msra.mxu0 %v9173_v50  ;;  %v9938_v50 = vld [vmem:[#allocation35_spill] sm:$0xff] }
0x15df   :  { %4869 = vmatprep.subr.bf16.mxu0 %v9178_v27  ;;  %v9939_v27 = vld [vmem:[#allocation36_spill] sm:$0xff] }
0x15e2   :  { %4870 = vmatpush1.bf16.msra.mxu0 %v9185_v37  ;;  %v9940_v37 = vld [vmem:[#allocation37_spill] sm:$0xff] }
0x15e3   :  { %4871 = vmatprep.subr.bf16.mxu0 %v9190_v33 }
0x15e6   :  { %4872 = vmatpush1.bf16.msra.mxu0 %v9197_v45  ;;  %v9941_v45 = vld [vmem:[#allocation24_spill] sm:$0xff] }
0x15e7   :  { %4873 = vmatprep.subr.bf16.mxu0 %v9202_v53 }
0x15ea   :  { %4874 = vmatpush1.bf16.msra.mxu0 %v9209_v3 }
0x15eb   :  { %4875 = vmatprep.subr.bf16.mxu0 %v9214_v4 }
0x15ee   :  { %4876 = vmatpush1.bf16.msra.mxu0 %v9221_v1 }
0x15ef   :  { %4877 = vmatprep.subr.bf16.mxu0 %v9226_v14 }
0x15f2   :  { %4878 = vmatpush2.bf16.msra.mxu0 %v9233_v24 }
0x15f3   :  { %4879 = vmatprep.subr.bf16.mxu0 %v9931_v10 }
0x15f6   :  { %4880 = vmatpush2.bf16.msra.mxu0 %v9932_v18 }
0x15f7   :  { %4881 = vmatprep.subr.bf16.mxu0 %v9933_v30 }
0x15fa   :  { %4882 = vmatpush2.bf16.msra.mxu0 %v9934_v38 }
0x15fb   :  { %4883 = vmatprep.subr.bf16.mxu0 %v9935_v56 }
0x15fe   :  { %4884 = vmatpush2.bf16.msra.mxu0 %v9936_v19 }
0x15ff   :  { %4885 = vmatprep.subr.bf16.mxu0 %v9937_v25 }
0x1602   :  { %4886 = vmatpush2.bf16.msra.mxu0 %v9938_v50 }
0x1603   :  { %4887 = vmatprep.subr.bf16.mxu0 %v9939_v27 }
0x1606   :  { %4888 = vmatpush2.bf16.msra.mxu0 %v9940_v37  ;;  %v9436_v37 = vld [vmem:[#allocation5 + $0xe0] ss:$16 sps:$4 sm:$0xff]  }
0x1607   :  { %4889 = vmatprep.subr.bf16.mxu0 %v9298_v13 }
0x160a   :  { %4890 = vmatpush2.bf16.msra.mxu0 %v9303_v61 }
0x160b   :  { %4891 = vmatprep.subr.bf16.mxu0 %v9309_v41 }
0x160e   :  { %4892 = vmatpush2.bf16.msra.mxu0 %v9311_v32 }
0x1691   :  { %v4397_v33 = vpop.f32.mrf.mxu0 }
0x1692   :  { %v9396_v53 = vadd.f32 %v9941_v45, %v4397_v33  ;;  %v9438_v33 = vld [vmem:[#allocation5 + $0xe4] ss:$16 sps:$4 sm:$0xff]  }
0x1693   :  { %v7337_v3 = vpop.f32.mrf.mxu0  ;;  %5443 = vmatprep.subr.bf16.mxu0 %v9438_v33 }
0x1694   :  { %9942 = vst [vmem:[#allocation29_spill] sm:$0xff] %v9396_v53  ;;  %4403 = vmax.xlane.f32.xlu0 %v9396_v53  ;;  %v9442_v3 = vld [vmem:[#allocation5 + $0xec] ss:$16 sps:$4 sm:$0xff]  }
0x1695   :  { %v4400_v4 = vpop.f32.mrf.mxu0 }
0x1696   :  { %v9444_v4 = vld [vmem:[#allocation5 + $0xc4] ss:$16 sps:$4 sm:$0xff]  }
0x1697   :  { %v7338_v1 = vpop.f32.mrf.mxu0 }
0x1698   :  { %v9447_v1 = vld [vmem:[#allocation5 + $0xcc] ss:$16 sps:$4 sm:$0xff]  }
0x171d   :  { %v9399_v14 = vpop.xlane.xlu0 %4403 }
0x171e   :  { %9943 = vst [vmem:[#allocation15_spill] sm:$0xff] %v9399_v14  ;;  %vm4405_vm12 = vcmp.eq.f32.partialorder %v9396_v53, %v9399_v14  ;;  %v9601_v53 = vld [vmem:[#allocation5 + $0x124] ss:$16 sps:$4 sm:$0xff]   ;;  %v9604_v14 = vld [vmem:[#allocation5 + $0x12c] ss:$16 sps:$4 sm:$0xff]  }
0x171f   :  { %v4406_v13 = vsel %vm4405_vm12, %v8371_v44, 128 }
0x1720   :  { %v4408_v24 = vshra.s32 %v4406_v13, 16  ;;  %v4407_v32 = vand.u32 65535, %v4406_v13  ;;  %v9451_v13 = vld [vmem:[#allocation5 + $0xc0] ss:$16 sps:$4 sm:$0xff]  }
0x1722   :  { %v4410_v41 = vcvt.s32.f32 %v4408_v24  ;;  %v4409_v51 = vcvt.s32.f32 %v4407_v32  ;;  %v9455_v24 = vld [vmem:[#allocation5 + $0xc8] ss:$16 sps:$4 sm:$0xff]   ;;  %v9460_v32 = vld [vmem:[#allocation5 + $0xac] ss:$16 sps:$4 sm:$0xff]  }
0x1724   :  { %4411 = vmin.xlane.f32.xlu1 %v4410_v41 }
0x17ad   :  { %v4412_v61 = vpop.xlane.xlu1 %4411 }
0x17ae   :  { %vm4413_vm13 = vcmp.eq.f32.partialorder %v4410_v41, %v4412_v61  ;;  %v4418_v57 = vcvt.f32.s32 %v4412_v61  ;;  %v9457_v41 = vld [vmem:[#allocation5 + $0xa4] ss:$16 sps:$4 sm:$0xff]   ;;  %v9463_v61 = vld [vmem:[#allocation5 + $0xa0] ss:$16 sps:$4 sm:$0xff]  }
0x17af   :  { %v4414_v15 = vsel %vm4413_vm13, %v4409_v51, inf  ;;  %v9467_v51 = vld [vmem:[#allocation5 + $0xa8] ss:$16 sps:$4 sm:$0xff]  }
0x17b0   :  { %4415 = vmin.xlane.f32.xlu0 %v4414_v15  ;;  %v4419_v40 = vshll.u32 %v4418_v57, 16  ;;  %v9469_v15 = vld [vmem:[#allocation5 + $0x84] ss:$16 sps:$4 sm:$0xff]   ;;  %v9472_v57 = vld [vmem:[#allocation5 + $0x8c] ss:$16 sps:$4 sm:$0xff]  }
0x1839   :  { %v4416_v63 = vpop.xlane.xlu0 %4415 }
0x183a   :  { %v4417_v48 = vcvt.f32.s32 %v4416_v63  ;;  %v9475_v63 = vld [vmem:[#allocation5 + $0x80] ss:$16 sps:$4 sm:$0xff]  }
0x183c   :  { %v4420_v62 = vadd.s32 %v4419_v40, %v4417_v48  ;;  %v9479_v40 = vld [vmem:[#allocation5 + $0x88] ss:$16 sps:$4 sm:$0xff]   ;;  %v9481_v48 = vld [vmem:[#allocation5 + $0x64] ss:$16 sps:$4 sm:$0xff]  }
0x183e   :  { %vm4432_vm14 = vcmp.eq.s32.totalorder %v8371_v44, %v4420_v62  ;;  %v9484_v62 = vld [vmem:[#allocation5 + $0x6c] ss:$16 sps:$4 sm:$0xff]  }
0x183f   :  { %vm6937_vm15 = vmpackc.low %vm4432_vm14, %vm4432_vm14 }
0x1840   :  { %6938 = vmatmul.mubr.msk.bf16.vlgmr.msra.gmra.mxu1 %vm6937_vm15, %v9880_v9  ;;  %6940 = vmatmul.mubr.msk.bf16.vlgmr.msra.gmra.mxu0 %vm6937_vm15, %v9880_v9 }
0x1841   :  { %7355 = vmatprep.mubr.msk.bf16.mxu1 %vm8260_vm2, %v9879_v5  ;;  %7340 = vmatpush3.bf16.msra.mxu1 %v7853_v6  ;;  %v9487_v6 = vld [vmem:[#allocation5 + $0x60] ss:$16 sps:$4 sm:$0xff]  }
0x1842   :  { %7341 = vmatprep.subr.bf16.mxu1 %v9879_v5  ;;  %5444 = vmatpush1.bf16.msra.mxu0 %v9436_v37 }
0x1843   :  { %5445 = vmatprep.subr.bf16.mxu0 %v9444_v4 }
0x1845   :  { %7342 = vmatpush3.bf16.msra.mxu1 %v7854_v0  ;;  %v9491_v0 = vld [vmem:[#allocation5 + $0x68] ss:$16 sps:$4 sm:$0xff]  }
0x1846   :  { %7343 = vmatprep.subr.bf16.mxu1 %v9879_v5  ;;  %5446 = vmatpush1.bf16.msra.mxu0 %v9451_v13 }
0x1847   :  { %5447 = vmatprep.subr.bf16.mxu0 %v9457_v41 }
0x1849   :  { %7344 = vmatpush3.bf16.msra.mxu1 %v7855_v42  ;;  %v9493_v42 = vld [vmem:[#allocation5 + $0x44] ss:$16 sps:$4 sm:$0xff]  }
0x184a   :  { %7345 = vmatprep.subr.bf16.mxu1 %v9879_v5  ;;  %5448 = vmatpush1.bf16.msra.mxu0 %v9463_v61 }
0x184b   :  { %5449 = vmatprep.subr.bf16.mxu0 %v9469_v15 }
0x184d   :  { %7346 = vmatpush3.bf16.msra.mxu1 %v7856_v39  ;;  %v9496_v39 = vld [vmem:[#allocation5 + $0x4c] ss:$16 sps:$4 sm:$0xff]  }
0x184e   :  { %7347 = vmatprep.subr.bf16.mxu1 %v9879_v5  ;;  %5450 = vmatpush1.bf16.msra.mxu0 %v9475_v63 }
0x184f   :  { %5451 = vmatprep.subr.bf16.mxu0 %v9481_v48 }
0x1851   :  { %7348 = vmatpush3.bf16.msra.mxu1 %v7857_v26  ;;  %v9499_v26 = vld [vmem:[#allocation5 + $0x40] ss:$16 sps:$4 sm:$0xff]  }
0x1852   :  { %7349 = vmatprep.subr.bf16.mxu1 %v9879_v5  ;;  %5452 = vmatpush1.bf16.msra.mxu0 %v9487_v6 }
0x1853   :  { %5453 = vmatprep.subr.bf16.mxu0 %v9493_v42 }
0x1855   :  { %7350 = vmatpush3.bf16.msra.mxu1 %v7858_v12  ;;  %v9503_v12 = vld [vmem:[#allocation5 + $0x48] ss:$16 sps:$4 sm:$0xff]  }
0x1856   :  { %7351 = vmatprep.subr.bf16.mxu1 %v9879_v5  ;;  %5454 = vmatpush1.bf16.msra.mxu0 %v9499_v26 }
0x1859   :  { %7352 = vmatpush3.bf16.msra.mxu1 %v7859_v34  ;;  %v9505_v34 = vld [vmem:[#allocation5 + $0x24] ss:$16 sps:$4 sm:$0xff]  }
0x185a   :  { %7353 = vmatprep.subr.bf16.mxu1 %v9879_v5  ;;  %5455 = vmatprep.subr.bf16.mxu0 %v9505_v34 }
0x185d   :  { %7354 = vmatpush3.bf16.msra.mxu1 %v7860_v43  ;;  %v9508_v43 = vld [vmem:[#allocation5 + $0x2c] ss:$16 sps:$4 sm:$0xff]  }
0x185e   :  { %5484 = vmatprep.subr.bf16.mxu1 %v9442_v3 }
0x1900   :  { %v4854_v16 = vpop.f32.mrf.mxu1  ;;  %v4895_v59 = vpop.f32.mrf.mxu0 }
0x1901   :  { %v6941_v17 = vmul.f32 -1.442695, %v4854_v16  ;;  %v9511_v16 = vld [vmem:[#allocation5 + $0x20] ss:$16 sps:$4 sm:$0xff]  }
0x1902   :  { %v4856_v23 = vpop.f32.mrf.mxu1  ;;  %v4897_v29 = vpop.f32.mrf.mxu0  ;;  %5456 = vmatpush1.bf16.msra.mxu0 %v9511_v16 }
0x1903   :  { %8043 = vpow2.f32 %v6941_v17  ;;  %v6942_v58 = vmul.f32 -1.442695, %v4856_v23  ;;  %v9517_v17 = vld [vmem:[#allocation5 + $0x4] ss:$16 sps:$4 sm:$0xff]   ;;  %v9520_v23 = vld [vmem:[#allocation5 + $0xc] ss:$16 sps:$4 sm:$0xff]  }
0x1904   :  { %v4858_v11 = vpop.f32.mrf.mxu1  ;;  %v4899_v21 = vpop.f32.mrf.mxu0  ;;  %5457 = vmatprep.subr.bf16.mxu0 %v9517_v17 }
0x1905   :  { %8045 = vpow2.f32 %v6942_v58  ;;  %v9527_v11 = vld [vmem:[#allocation5 + $0x8] ss:$16 sps:$4 sm:$0xff]   ;;  %v9529_v21 = vld [vmem:[#allocation5 + $0x1e4] ss:$16 sps:$4 sm:$0xff]  }
0x1906   :  { %v4859_v49 = vpop.f32.mrf.mxu1  ;;  %v4900_v2 = vpop.f32.mrf.mxu0  ;;  %v9539_v58 = vld [vmem:[#allocation5 + $0x1e8] ss:$16 sps:$4 sm:$0xff]  }
0x1907   :  { %v9532_v49 = vld [vmem:[#allocation5 + $0x1ec] ss:$16 sps:$4 sm:$0xff]   ;;  %v9535_v2 = vld [vmem:[#allocation5 + $0x1e0] ss:$16 sps:$4 sm:$0xff]  }
0x1910   :  { %v8044_v8 = vpop.eup %8043 }
0x1911   :  { %v4905_v60 = vadd.f32 1.0, %v8044_v8  ;;  %v9541_v8 = vld [vmem:[#allocation5 + $0x1c4] ss:$16 sps:$4 sm:$0xff]  }
0x1912   :  { %v8046_v20 = vpop.eup %8045 }
0x1913   :  { %8047 = vrcp.f32 %v4905_v60  ;;  %v4911_v28 = vadd.f32 1.0, %v8046_v20  ;;  %v9544_v60 = vld [vmem:[#allocation5 + $0x1cc] ss:$16 sps:$4 sm:$0xff]   ;;  %v9547_v20 = vld [vmem:[#allocation5 + $0x1c0] ss:$16 sps:$4 sm:$0xff]  }
0x1914   :  { %9946 = vst [vmem:[#allocation32_spill] sm:$0xff] %v9544_v60 }
0x1915   :  { %8049 = vrcp.f32 %v4911_v28  ;;  %v9551_v28 = vld [vmem:[#allocation5 + $0x1c8] ss:$16 sps:$4 sm:$0xff]  }
0x1916   :  { %9947 = vst [vmem:[#allocation33_spill] sm:$0xff] %v9551_v28 }
0x1920   :  { %v8048_v36 = vpop.eup %8047 }
0x1921   :  { %v4914_v22 = vmul.f32 %v8048_v36, %v4897_v29  ;;  %v9523_v29 = vld [vmem:[#allocation5] ss:$16 sps:$4 sm:$0xff]   ;;  %v9553_v36 = vld [vmem:[#allocation5 + $0x1a4] ss:$16 sps:$4 sm:$0xff]  }
0x1922   :  { %v8050_v46 = vpop.eup %8049  ;;  %5458 = vmatpush1.bf16.msra.mxu0 %v9523_v29 }
0x1923   :  { %v4915_v35 = vadd.f32 %v4914_v22, %v4895_v59  ;;  %v4917_v7 = vsub.f32 1.0, %v8050_v46  ;;  %v4919_v55 = vmul.f32 %v8050_v46, %v9360_v31  ;;  %v9515_v59 = vld [vmem:[#allocation5 + $0x28] ss:$16 sps:$4 sm:$0xff]   ;;  %5459 = vmatprep.subr.bf16.mxu0 %v9529_v21  ;;  %v9556_v22 = vld [vmem:[#allocation5 + $0x1ac] ss:$16 sps:$4 sm:$0xff]  }
0x1924   :  { %9948 = vst [vmem:[#allocation34_spill] sm:$0xff] %v9556_v22  ;;  %v9563_v46 = vld [vmem:[#allocation5 + $0x1a8] ss:$16 sps:$4 sm:$0xff]  }
0x1925   :  { %8051 = vtanh.f32 %v4915_v35  ;;  %v9559_v35 = vld [vmem:[#allocation5 + $0x1a0] ss:$16 sps:$4 sm:$0xff]   ;;  %9949 = vst [vmem:[#allocation35_spill] sm:$0xff] %v9563_v46 }
0x1926   :  { %5460 = vmatpush2.bf16.msra.mxu0 %v9535_v2 }
0x1927   :  { %5461 = vmatprep.subr.bf16.mxu0 %v9541_v8 }
0x192a   :  { %5462 = vmatpush2.bf16.msra.mxu0 %v9547_v20 }
0x192b   :  { %5463 = vmatprep.subr.bf16.mxu0 %v9553_v36 }
0x192e   :  { %5464 = vmatpush2.bf16.msra.mxu0 %v9559_v35 }
0x1932   :  { %v8052_v52 = vpop.eup %8051 }
0x1933   :  { %v4918_v54 = vmul.f32 %v8052_v52, %v4917_v7  ;;  %v9565_v7 = vld [vmem:[#allocation5 + $0x184] ss:$16 sps:$4 sm:$0xff]   ;;  %v9568_v52 = vld [vmem:[#allocation5 + $0x18c] ss:$16 sps:$4 sm:$0xff]  }
0x1934   :  { %9950 = vst [vmem:[#allocation36_spill] sm:$0xff] %v9568_v52  ;;  %5465 = vmatprep.subr.bf16.mxu0 %v9565_v7 }
0x1935   :  { %v9417_v47 = vadd.f32 %v4919_v55, %v4918_v54  ;;  %v9571_v54 = vld [vmem:[#allocation5 + $0x180] ss:$16 sps:$4 sm:$0xff]   ;;  %v9575_v55 = vld [vmem:[#allocation5 + $0x188] ss:$16 sps:$4 sm:$0xff]  }
0x1936   :  { %9951 = vst [vmem:[#allocation37_spill] sm:$0xff] %v9575_v55  ;;  %5466 = vmatpush2.bf16.msra.mxu0 %v9571_v54 }
0x1937   :  { %v4921_v10 = vpack.c.bf16 %v9417_v47, %v9417_v47 }
0x1939   :  { %7356 = vmatmul.mubr.bf16.vlgmr.msra.gmra.mxu1 %v4921_v10  ;;  %5475 = vmatprep.mubr.bf16.mxu0 %v4921_v10 }
0x193a   :  { %5516 = vmatprep.mubr.bf16.mxu1 %v4921_v10  ;;  %v9577_v10 = vld [vmem:[#allocation5 + $0x164] ss:$16 sps:$4 sm:$0xff]  }
0x193b   :  { %5467 = vmatprep.subr.bf16.mxu0 %v9577_v10 }
0x19f9   :  { %v5020_v18 = vpop.f32.mrf.mxu1 }
0x19fa   :  { %v9422_v30 = vadd.f32 %v9941_v45, %v5020_v18  ;;  %v9440_v45 = vld [vmem:[#allocation5 + $0xe8] ss:$16 sps:$4 sm:$0xff]   ;;  %v9580_v18 = vld [vmem:[#allocation5 + $0x16c] ss:$16 sps:$4 sm:$0xff]  }
0x19fb   :  { %v7357_v38 = vpop.f32.mrf.mxu1  ;;  %5485 = vmatpush1.bf16.msra.mxu1 %v9440_v45  ;;  %9952 = vst [vmem:[#allocation24_spill] sm:$0xff] %v9580_v18 }
0x19fc   :  { %9944 = vst [vmem:[#allocation30_spill] sm:$0xff] %v9422_v30  ;;  %5026 = vmax.xlane.f32.xlu1 %v9422_v30  ;;  %5486 = vmatprep.subr.bf16.mxu1 %v9447_v1  ;;  %v9583_v38 = vld [vmem:[#allocation5 + $0x160] ss:$16 sps:$4 sm:$0xff]  }
0x19fd   :  { %v5023_v56 = vpop.f32.mrf.mxu1  ;;  %5468 = vmatpush2.bf16.msra.mxu0 %v9583_v38 }
0x19fe   :  { %v9587_v56 = vld [vmem:[#allocation5 + $0x168] ss:$16 sps:$4 sm:$0xff]  }
0x19ff   :  { %v7358_v19 = vpop.f32.mrf.mxu1  ;;  %5487 = vmatpush1.bf16.msra.mxu1 %v9455_v24  ;;  %9953 = vst [vmem:[#allocation38_spill] sm:$0xff] %v9587_v56 }
0x1a00   :  { %5488 = vmatprep.subr.bf16.mxu1 %v9460_v32  ;;  %v9589_v19 = vld [vmem:[#allocation5 + $0x144] ss:$16 sps:$4 sm:$0xff]  }
0x1a01   :  { %5469 = vmatprep.subr.bf16.mxu0 %v9589_v19 }
0x1a03   :  { %5489 = vmatpush1.bf16.msra.mxu1 %v9467_v51 }
0x1a04   :  { %5490 = vmatprep.subr.bf16.mxu1 %v9472_v57 }
0x1a07   :  { %5491 = vmatpush1.bf16.msra.mxu1 %v9479_v40 }
0x1a08   :  { %5492 = vmatprep.subr.bf16.mxu1 %v9484_v62 }
0x1a0b   :  { %5493 = vmatpush1.bf16.msra.mxu1 %v9491_v0 }
0x1a0c   :  { %5494 = vmatprep.subr.bf16.mxu1 %v9496_v39 }
0x1a0f   :  { %5495 = vmatpush1.bf16.msra.mxu1 %v9503_v12 }
0x1a10   :  { %5496 = vmatprep.subr.bf16.mxu1 %v9508_v43 }
0x1a13   :  { %5497 = vmatpush1.bf16.msra.mxu1 %v9515_v59 }
0x1a14   :  { %5498 = vmatprep.subr.bf16.mxu1 %v9520_v23 }
0x1a17   :  { %5499 = vmatpush1.bf16.msra.mxu1 %v9527_v11 }
0x1a18   :  { %5500 = vmatprep.subr.bf16.mxu1 %v9532_v49 }
0x1a1b   :  { %5501 = vmatpush2.bf16.msra.mxu1 %v9539_v58 }
0x1a1c   :  { %5502 = vmatprep.subr.bf16.mxu1 %v9544_v60  ;;  %v9617_v60 = vld [vmem:[#allocation5 + $0x108] ss:$16 sps:$4 sm:$0xff]  }
0x1a1f   :  { %5503 = vmatpush2.bf16.msra.mxu1 %v9551_v28  ;;  %v9615_v28 = vld [vmem:[#allocation5 + $0x10c] ss:$16 sps:$4 sm:$0xff]  }
0x1a20   :  { %5504 = vmatprep.subr.bf16.mxu1 %v9556_v22  ;;  %v7953_v22 = vld [vmem:[#allocation5 + $0x104] ss:$16 sps:$4 sm:$0xff]  }
0x1a23   :  { %5505 = vmatpush2.bf16.msra.mxu1 %v9563_v46 }
0x1a24   :  { %5506 = vmatprep.subr.bf16.mxu1 %v9568_v52 }
0x1a27   :  { %5507 = vmatpush2.bf16.msra.mxu1 %v9575_v55  ;;  %v9609_v55 = vld [vmem:[#allocation5 + $0x128] ss:$16 sps:$4 sm:$0xff]  }
0x1a28   :  { %5508 = vmatprep.subr.bf16.mxu1 %v9580_v18  ;;  %v7945_v18 = vld [vmem:[#allocation5 + $0x120] ss:$16 sps:$4 sm:$0xff]  }
0x1a2b   :  { %5509 = vmatpush2.bf16.msra.mxu1 %v9587_v56 }
0x1a85   :  { %v9425_v25 = vpop.xlane.xlu1 %5026 }
0x1a86   :  { %9945 = vst [vmem:[#allocation31_spill] sm:$0xff] %v9425_v25  ;;  %vm5028_vm0 = vcmp.eq.f32.partialorder %v9422_v30, %v9425_v25  ;;  %v9595_v30 = vld [vmem:[#allocation5 + $0x140] ss:$16 sps:$4 sm:$0xff]   ;;  %v9599_v25 = vld [vmem:[#allocation5 + $0x148] ss:$16 sps:$4 sm:$0xff]  }
0x1a87   :  { %v9430_v31 = vsel %vm5028_vm0, %v8371_v44, 128  ;;  %9955 = vst [vmem:[#allocation40_spill] sm:$0xff] %v9599_v25  ;;  %5470 = vmatpush2.bf16.msra.mxu0 %v9595_v30 }
0x1a88   :  { %v5031_v50 = vshra.s32 %v9430_v31, 16  ;;  %5471 = vmatprep.subr.bf16.mxu0 %v9601_v53  ;;  %v5030_v56 = vand.u32 65535, %v9430_v31 }
0x1a8a   :  { %v9433_v27 = vcvt.s32.f32 %v5031_v50  ;;  %v9592_v50 = vld [vmem:[#allocation5 + $0x14c] ss:$16 sps:$4 sm:$0xff]  }
0x1a8b   :  { %9954 = vst [vmem:[#allocation39_spill] sm:$0xff] %v9592_v50  ;;  %5510 = vmatprep.subr.bf16.mxu1 %v9592_v50  ;;  %5472 = vmatpush2.bf16.msra.mxu0 %v7945_v18  ;;  %v5032_v50 = vcvt.s32.f32 %v5030_v56 }
0x1a8c   :  { %5034 = vmin.xlane.f32.xlu0 %v9433_v27  ;;  %5511 = vmatpush2.bf16.msra.mxu1 %v9599_v25  ;;  %v7951_v25 = vld [vmem:[#allocation5 + $0x100] ss:$16 sps:$4 sm:$0xff]  }
0x1a8d   :  { %5512 = vmatprep.subr.bf16.mxu1 %v9604_v14  ;;  %5473 = vmatprep.subr.bf16.mxu0 %v7953_v22 }
0x1a8f   :  { %5474 = vmatpush2.bf16.msra.mxu0 %v7951_v25 }
0x1a90   :  { %5513 = vmatpush2.bf16.msra.mxu1 %v9609_v55  ;;  %7359 = vmatprep.subr.bf16.mxu0 %v9879_v5 }
0x1a91   :  { %5514 = vmatprep.subr.bf16.mxu1 %v9615_v28 }
0x1a94   :  { %5515 = vmatpush2.bf16.msra.mxu1 %v9617_v60 }
0x1a95   :  { %6066 = vmatprep.subr.bf16.mxu1 %v9438_v33  ;;  %v7958_v33 = vld [vmem:[#allocation7 + $0x30] sm:$0xff]  }
0x1b15   :  { %v5035_v52 = vpop.xlane.xlu0 %5034 }
0x1b16   :  { %vm5036_vm1 = vcmp.eq.f32.partialorder %v9433_v27, %v5035_v52  ;;  %v5041_v31 = vcvt.f32.s32 %v5035_v52 }
0x1b17   :  { %v5037_v46 = vsel %vm5036_vm1, %v5032_v50, inf }
0x1b18   :  { %5038 = vmin.xlane.f32.xlu1 %v5037_v46  ;;  %v5042_v56 = vshll.u32 %v5041_v31, 16  ;;  %v9968_v31 = vld [vmem:[#allocation21_spill] sm:$0xff] }
0x1ba1   :  { %v5039_v27 = vpop.xlane.xlu1 %5038 }
0x1ba2   :  { %v5040_v46 = vcvt.f32.s32 %v5039_v27  ;;  %v9969_v27 = vld [vmem:[#allocation20_spill] sm:$0xff] }
0x1ba4   :  { %v5043_v50 = vadd.s32 %v5042_v56, %v5040_v46  ;;  %v1929_v56 = vsub.f32 %v9969_v27, %v9968_v31 }
0x1ba6   :  { %vm5055_vm3 = vcmp.eq.s32.totalorder %v8371_v44, %v5043_v50  ;;  %v1930_v46 = vmul.f32 1.442695, %v1929_v56  ;;  %v9970_v50 = vld [vmem:[#allocation26_spill] sm:$0xff] }
0x1ba7   :  { %vm7016_vm4 = vmpackc.low %vm5055_vm3, %vm5055_vm3 }
0x1ba8   :  { %7017 = vmatmul.mubr.msk.bf16.vlgmr.msra.gmra.mxu0 %vm7016_vm4, %v9880_v9  ;;  %7019 = vmatmul.mubr.msk.bf16.vlgmr.msra.gmra.mxu1 %vm7016_vm4, %v9880_v9 }
0x1ba9   :  { %7375 = vmatprep.mubr.msk.bf16.mxu0 %vm8260_vm2, %v9879_v5  ;;  %6067 = vmatpush1.bf16.msra.mxu1 %v9436_v37  ;;  %v7957_v37 = vld [vmem:[#allocation7 + $0x38] sm:$0xff]  }
0x1baa   :  { %6068 = vmatprep.subr.bf16.mxu1 %v9444_v4  ;;  %7360 = vmatpush3.bf16.msra.mxu0 %v7957_v37  ;;  %v7959_v4 = vld [vmem:[#allocation7 + $0x28] sm:$0xff]  }
0x1bab   :  { %7361 = vmatprep.subr.bf16.mxu0 %v9879_v5  ;;  %v9971_v37 = vld [vmem:[#allocation25_spill] sm:$0xff] }
0x1bad   :  { %6069 = vmatpush1.bf16.msra.mxu1 %v9451_v13  ;;  %v7963_v13 = vld [vmem:[#allocation7 + $0x8] sm:$0xff]  }
0x1bae   :  { %6070 = vmatprep.subr.bf16.mxu1 %v9457_v41  ;;  %7362 = vmatpush3.bf16.msra.mxu0 %v7958_v33  ;;  %v7964_v41 = vld [vmem:[#allocation7] sm:$0xff]   ;;  %v3175_v33 = vsub.f32 %v9971_v37, %v9970_v50 }
0x1baf   :  { %7363 = vmatprep.subr.bf16.mxu0 %v9879_v5 }
0x1bb1   :  { %6071 = vmatpush1.bf16.msra.mxu1 %v9463_v61 }
0x1bb2   :  { %6072 = vmatprep.subr.bf16.mxu1 %v9469_v15  ;;  %7364 = vmatpush3.bf16.msra.mxu0 %v7959_v4 }
0x1bb3   :  { %7365 = vmatprep.subr.bf16.mxu0 %v9879_v5 }
0x1bb5   :  { %6073 = vmatpush1.bf16.msra.mxu1 %v9475_v63 }
0x1bb6   :  { %6074 = vmatprep.subr.bf16.mxu1 %v9481_v48 }
0x1bb9   :  { %6075 = vmatpush1.bf16.msra.mxu1 %v9487_v6 }
0x1bba   :  { %6076 = vmatprep.subr.bf16.mxu1 %v9493_v42 }
0x1bbd   :  { %6077 = vmatpush1.bf16.msra.mxu1 %v9499_v26 }
0x1bbe   :  { %6078 = vmatprep.subr.bf16.mxu1 %v9505_v34 }
0x1bc1   :  { %6079 = vmatpush1.bf16.msra.mxu1 %v9511_v16 }
0x1bc2   :  { %6080 = vmatprep.subr.bf16.mxu1 %v9517_v17 }
0x1bc5   :  { %6081 = vmatpush1.bf16.msra.mxu1 %v9523_v29 }
0x1bc6   :  { %6082 = vmatprep.subr.bf16.mxu1 %v9529_v21 }
0x1bc9   :  { %6083 = vmatpush2.bf16.msra.mxu1 %v9535_v2 }
0x1bca   :  { %6084 = vmatprep.subr.bf16.mxu1 %v9541_v8 }
0x1bcd   :  { %6085 = vmatpush2.bf16.msra.mxu1 %v9547_v20 }
0x1bce   :  { %6086 = vmatprep.subr.bf16.mxu1 %v9553_v36 }
0x1bd1   :  { %6087 = vmatpush2.bf16.msra.mxu1 %v9559_v35 }
0x1bd2   :  { %6088 = vmatprep.subr.bf16.mxu1 %v9565_v7 }
0x1bd5   :  { %6089 = vmatpush2.bf16.msra.mxu1 %v9571_v54 }
0x1bd6   :  { %6090 = vmatprep.subr.bf16.mxu1 %v9577_v10 }
0x1bd9   :  { %6091 = vmatpush2.bf16.msra.mxu1 %v9583_v38 }
0x1bda   :  { %6092 = vmatprep.subr.bf16.mxu1 %v9589_v19 }
0x1bdd   :  { %6093 = vmatpush2.bf16.msra.mxu1 %v9595_v30  ;;  %v7960_v30 = vld [vmem:[#allocation7 + $0x20] sm:$0xff]  }
0x1bde   :  { %6094 = vmatprep.subr.bf16.mxu1 %v9601_v53  ;;  %7366 = vmatpush3.bf16.msra.mxu0 %v7960_v30  ;;  %v7961_v53 = vld [vmem:[#allocation7 + $0x18] sm:$0xff]   ;;  %v3176_v30 = vmul.f32 1.442695, %v3175_v33 }
0x1bdf   :  { %7367 = vmatprep.subr.bf16.mxu0 %v9879_v5 }
0x1be1   :  { %6095 = vmatpush2.bf16.msra.mxu1 %v7945_v18 }
0x1be2   :  { %6096 = vmatprep.subr.bf16.mxu1 %v7953_v22  ;;  %7368 = vmatpush3.bf16.msra.mxu0 %v7961_v53  ;;  %v9972_v53 = vld [vmem:[#allocation15_spill] sm:$0xff] }
0x1be3   :  { %7369 = vmatprep.subr.bf16.mxu0 %v9879_v5 }
0x1be5   :  { %6097 = vmatpush2.bf16.msra.mxu1 %v7951_v25  ;;  %v7962_v25 = vld [vmem:[#allocation7 + $0x10] sm:$0xff]  }
0x1be6   :  { %7379 = vmatprep.subr.bf16.mxu1 %v9879_v5  ;;  %7370 = vmatpush3.bf16.msra.mxu0 %v7962_v25  ;;  %v9973_v25 = vld [vmem:[#allocation29_spill] sm:$0xff] }
0x1be7   :  { %7371 = vmatprep.subr.bf16.mxu0 %v9879_v5 }
0x1bea   :  { %7372 = vmatpush3.bf16.msra.mxu0 %v7963_v13  ;;  %v4421_v13 = vsub.f32 %v9973_v25, %v9972_v53 }
0x1beb   :  { %7373 = vmatprep.subr.bf16.mxu0 %v9879_v5 }
0x1bee   :  { %7374 = vmatpush3.bf16.msra.mxu0 %v7964_v41 }
0x1bef   :  { %6107 = vmatprep.subr.bf16.mxu0 %v9442_v3 }
0x1c68   :  { %v5477_v61 = vpop.f32.mrf.mxu0  ;;  %v5518_v15 = vpop.f32.mrf.mxu1 }
0x1c69   :  { %v7020_v63 = vmul.f32 -1.442695, %v5477_v61 }
0x1c6a   :  { %v5479_v48 = vpop.f32.mrf.mxu0  ;;  %v5520_v6 = vpop.f32.mrf.mxu1 }
0x1c6b   :  { %8053 = vpow2.f32 %v7020_v63  ;;  %v7021_v17 = vmul.f32 -1.442695, %v5479_v48 }
0x1c6c   :  { %v5481_v42 = vpop.f32.mrf.mxu0  ;;  %v5522_v26 = vpop.f32.mrf.mxu1 }
0x1c6d   :  { %8055 = vpow2.f32 %v7021_v17 }
0x1c6e   :  { %v5482_v34 = vpop.f32.mrf.mxu0  ;;  %v5523_v16 = vpop.f32.mrf.mxu1 }
0x1c78   :  { %v8054_v29 = vpop.eup %8053 }
0x1c79   :  { %v5528_v21 = vadd.f32 1.0, %v8054_v29 }
0x1c7a   :  { %v8056_v2 = vpop.eup %8055 }
0x1c7b   :  { %8057 = vrcp.f32 %v5528_v21  ;;  %v5534_v8 = vadd.f32 1.0, %v8056_v2 }
0x1c7d   :  { %8059 = vrcp.f32 %v5534_v8 }
0x1c88   :  { %v8058_v20 = vpop.eup %8057 }
0x1c89   :  { %v5537_v3 = vmul.f32 %v8058_v20, %v5520_v6 }
0x1c8a   :  { %v8060_v22 = vpop.eup %8059 }
0x1c8b   :  { %v5538_v36 = vadd.f32 %v5537_v3, %v5518_v15  ;;  %v5540_v35 = vsub.f32 1.0, %v8060_v22  ;;  %v5542_v54 = vmul.f32 %v8060_v22, %v9417_v47  ;;  %v9956_v47 = vld [vmem:[#allocation32_spill] sm:$0xff]  ;;  %v4422_v15 = vmul.f32 1.442695, %v4421_v13 }
0x1c8d   :  { %8061 = vtanh.f32 %v5538_v36 }
0x1c9a   :  { %v8062_v7 = vpop.eup %8061 }
0x1c9b   :  { %v5541_v52 = vmul.f32 %v8062_v7, %v5540_v35 }
0x1c9d   :  { %v9666_v10 = vadd.f32 %v5542_v54, %v5541_v52 }
0x1c9f   :  { %v5544_v18 = vpack.c.bf16 %v9666_v10, %v9666_v10 }
0x1ca1   :  { %7376 = vmatmul.mubr.bf16.vlgmr.msra.gmra.mxu0 %v5544_v18  ;;  %6098 = vmatprep.mubr.bf16.mxu1 %v5544_v18 }
0x1ca2   :  { %6139 = vmatprep.mubr.bf16.mxu0 %v5544_v18  ;;  %6108 = vmatpush1.bf16.msra.mxu0 %v9440_v45  ;;  %v9957_v45 = vld [vmem:[#allocation33_spill] sm:$0xff] }
0x1ca3   :  { %6109 = vmatprep.subr.bf16.mxu0 %v9447_v1  ;;  %v9958_v1 = vld [vmem:[#allocation34_spill] sm:$0xff] }
0x1ca6   :  { %6110 = vmatpush1.bf16.msra.mxu0 %v9455_v24  ;;  %v9959_v24 = vld [vmem:[#allocation35_spill] sm:$0xff] }
0x1ca7   :  { %6111 = vmatprep.subr.bf16.mxu0 %v9460_v32  ;;  %v9960_v32 = vld [vmem:[#allocation36_spill] sm:$0xff] }
0x1caa   :  { %6112 = vmatpush1.bf16.msra.mxu0 %v9467_v51  ;;  %v9961_v51 = vld [vmem:[#allocation37_spill] sm:$0xff] }
0x1cab   :  { %6113 = vmatprep.subr.bf16.mxu0 %v9472_v57  ;;  %v9962_v57 = vld [vmem:[#allocation24_spill] sm:$0xff] }
0x1cae   :  { %6114 = vmatpush1.bf16.msra.mxu0 %v9479_v40  ;;  %v9963_v40 = vld [vmem:[#allocation38_spill] sm:$0xff] }
0x1caf   :  { %6115 = vmatprep.subr.bf16.mxu0 %v9484_v62  ;;  %v9964_v62 = vld [vmem:[#allocation39_spill] sm:$0xff] }
0x1cb2   :  { %6116 = vmatpush1.bf16.msra.mxu0 %v9491_v0  ;;  %v9965_v0 = vld [vmem:[#allocation40_spill] sm:$0xff] }
0x1cb3   :  { %6117 = vmatprep.subr.bf16.mxu0 %v9496_v39 }
0x1cb6   :  { %6118 = vmatpush1.bf16.msra.mxu0 %v9503_v12  ;;  %v9704_v12 = vld [vmem:[%s9779_s3] ss:$0 sm:$0xff]  ;;  %s8261_s3 = smov [#allocation9]  }
0x1cb7   :  { %6119 = vmatprep.subr.bf16.mxu0 %v9508_v43  ;;  %s6304_s15 = sshll.u32 %s8261_s3, 4  ;;  %s6305_s15 = int_to_ptr.vmem [resolvable:$true] %s6304_s15 }
0x1cb8   :  { %s8203_s16 = scalar_lea.vmem %s6305_s15, 128  ;;  %p8208_p2 = scmp.lt.s32.totalorder %s6305_s15, %s6305_s15 }
0x1cb9   :  { %p8204_p1 = scmp.ne.s32.totalorder %s6305_s15, %s8203_s16  ;;  %p8209_p3 = scmp.lt.s32.totalorder %s8203_s16, %s8203_s16 }
0x1cba   :  { %6120 = vmatpush1.bf16.msra.mxu0 %v9515_v59 }
0x1cbb   :  { %6121 = vmatprep.subr.bf16.mxu0 %v9520_v23  ;;  %p8210_p4 = por %p8209_p3, %p8208_p2 }
0x1cbd   :  { %p8211_p5 = pnand %p8210_p4, %p8204_p1 }
0x1cbe   :  { %6122 = vmatpush1.bf16.msra.mxu0 %v9527_v11 }
0x1cbf   :  { %6123 = vmatprep.subr.bf16.mxu0 %v9532_v49 }
0x1cc2   :  { %6124 = vmatpush2.bf16.msra.mxu0 %v9539_v58 }
0x1cc3   :  { %6125 = vmatprep.subr.bf16.mxu0 %v9956_v47 }
0x1cc6   :  { %6126 = vmatpush2.bf16.msra.mxu0 %v9957_v45 }
0x1cc7   :  { %6127 = vmatprep.subr.bf16.mxu0 %v9958_v1 }
0x1cca   :  { %6128 = vmatpush2.bf16.msra.mxu0 %v9959_v24 }
0x1ccb   :  { %6129 = vmatprep.subr.bf16.mxu0 %v9960_v32 }
0x1cce   :  { %6130 = vmatpush2.bf16.msra.mxu0 %v9961_v51 }
0x1ccf   :  { %6131 = vmatprep.subr.bf16.mxu0 %v9962_v57 }
0x1cd2   :  { %6132 = vmatpush2.bf16.msra.mxu0 %v9963_v40 }
0x1cd3   :  { %6133 = vmatprep.subr.bf16.mxu0 %v9964_v62 }
0x1cd6   :  { %6134 = vmatpush2.bf16.msra.mxu0 %v9965_v0 }
0x1cd7   :  { %6135 = vmatprep.subr.bf16.mxu0 %v9604_v14 }
0x1cda   :  { %6136 = vmatpush2.bf16.msra.mxu0 %v9609_v55  ;;  %v9967_v55 = vld [vmem:[#allocation16_spill] sm:$0xff] }
0x1cdb   :  { %6137 = vmatprep.subr.bf16.mxu0 %v9615_v28  ;;  %v9966_v28 = vld [vmem:[#allocation17_spill] sm:$0xff] }
0x1cdc   :  { %v684_v38 = vsub.f32 %v9967_v55, %v9966_v28 }
0x1cde   :  { %6138 = vmatpush2.bf16.msra.mxu0 %v9617_v60  ;;  %v685_v19 = vmul.f32 1.442695, %v684_v38  ;;  %v7969_v38 = vld [vmem:[#allocation7 + $0x18] sm:$0xff]  }
0x1ce0   :  { %8063 = vpow2.f32 %v685_v19  ;;  %v7972_v19 = vld [vmem:[#allocation7] sm:$0xff]  }
0x1ce1   :  { %8065 = vpow2.f32 %v1930_v46 }
0x1ce2   :  { %8067 = vpow2.f32 %v3176_v30 }
0x1ce3   :  { %8069 = vpow2.f32 %v4422_v15 }
0x1ced   :  { %v8064_v42 = vpop.eup %8063 }
0x1cee   :  { %v8066_v26 = vpop.eup %8065 }
0x1cef   :  { %v8068_v34 = vpop.eup %8067 }
0x1cf0   :  { %v8070_v16 = vpop.eup %8069 }
0x1d61   :  { %v5643_v39 = vpop.f32.mrf.mxu0 }
0x1d62   :  { %v9707_v43 = vadd.f32 %v9704_v12, %v5643_v39 }
0x1d63   :  { %v7377_v59 = vpop.f32.mrf.mxu0 }
0x1d64   :  { %5649 = vmax.xlane.f32.xlu0 %v9707_v43 }
0x1d65   :  { %v5646_v23 = vpop.f32.mrf.mxu0 }
0x1d67   :  { %v7378_v14 = vpop.f32.mrf.mxu0 }
0x1ded   :  { %v9710_v11 = vpop.xlane.xlu0 %5649 }
0x1dee   :  { %vm5651_vm5 = vcmp.eq.f32.partialorder %v9707_v43, %v9710_v11  ;;  %v5667_v63 = vsub.f32 %v9707_v43, %v9710_v11 }
0x1def   :  { %v5652_v49 = vsel %vm5651_vm5, %v8371_v44, 128 }
0x1df0   :  { %v5654_v58 = vshra.s32 %v5652_v49, 16  ;;  %v5653_v4 = vand.u32 65535, %v5652_v49  ;;  %v5668_v6 = vmul.f32 1.442695, %v5667_v63 }
0x1df2   :  { %v5656_v60 = vcvt.s32.f32 %v5654_v58  ;;  %v5655_v61 = vcvt.s32.f32 %v5653_v4  ;;  %8071 = vpow2.f32 %v5668_v6  ;;  %v7965_v58 = vld [vmem:[#allocation7 + $0x38] sm:$0xff]  }
0x1df4   :  { %5657 = vmin.xlane.f32.xlu1 %v5656_v60 }
0x1dff   :  { %v8072_v17 = vpop.eup %8071 }
0x1e7d   :  { %v5658_v41 = vpop.xlane.xlu1 %5657 }
0x1e7e   :  { %vm5659_vm6 = vcmp.eq.f32.partialorder %v5656_v60, %v5658_v41  ;;  %v5664_v29 = vcvt.f32.s32 %v5658_v41  ;;  %v7966_v60 = vld [vmem:[#allocation7 + $0x30] sm:$0xff]  }
0x1e7f   :  { %v5660_v48 = vsel %vm5659_vm6, %v5655_v61, inf }
0x1e80   :  { %5661 = vmin.xlane.f32.xlu0 %v5660_v48  ;;  %v5665_v2 = vshll.u32 %v5664_v29, 16  ;;  %v9974_v29 = vld [vmem:[#allocation19_spill] sm:$0xff] }
0x1e84   :  { %687 = vadd.xlane.f32.xlu0 %v8064_v42 }
0x1e88   :  { %1932 = vadd.xlane.f32.xlu0 %v8066_v26 }
0x1e8c   :  { %3178 = vadd.xlane.f32.xlu0 %v8068_v34 }
0x1e90   :  { %4424 = vadd.xlane.f32.xlu0 %v8070_v16 }
0x1e94   :  { %5670 = vadd.xlane.f32.xlu0 %v8072_v17 }
0x1f09   :  { %v5662_v21 = vpop.xlane.xlu0 %5661 }
0x1f0a   :  { %v5663_v8 = vcvt.f32.s32 %v5662_v21  ;;  %v9975_v21 = vld [vmem:[#allocation18_spill] sm:$0xff] }
0x1f0c   :  { %v5666_v20 = vadd.s32 %v5665_v2, %v5663_v8  ;;  %v1306_v2 = vsub.f32 %v9975_v21, %v9974_v29 }
0x1f0d   :  { %v688_v3 = vpop.xlane.xlu0 %687 }
0x1f0e   :  { %vm5678_vm7 = vcmp.eq.s32.totalorder %v8371_v44, %v5666_v20  ;;  %8073 = vlog2.f32 %v688_v3  ;;  %v1307_v8 = vmul.f32 1.442695, %v1306_v2  ;;  %v9976_v20 = vld [vmem:[#allocation23_spill] sm:$0xff]  ;;  %v9977_v3 = vld [vmem:[#allocation22_spill] sm:$0xff] }
0x1f0f   :  { %vm7095_vm8 = vmpackc.low %vm5678_vm7, %vm5678_vm7 }
0x1f10   :  { %7096 = vmatmul.mubr.msk.bf16.vlgmr.msra.gmra.mxu1 %vm7095_vm8, %v9880_v9  ;;  %7098 = vmatmul.mubr.msk.bf16.vlgmr.msra.gmra.mxu0 %vm7095_vm8, %v9880_v9 }
0x1f11   :  { %v1933_v36 = vpop.xlane.xlu0 %1932  ;;  %7395 = vmatprep.mubr.msk.bf16.mxu1 %vm8260_vm2, %v9879_v5  ;;  %7380 = vmatpush3.bf16.msra.mxu1 %v7965_v58 }
0x1f12   :  { %8075 = vlog2.f32 %v1933_v36  ;;  %7381 = vmatprep.subr.bf16.mxu1 %v9879_v5  ;;  %v2552_v36 = vsub.f32 %v9977_v3, %v9976_v20 }
0x1f15   :  { %v3179_v22 = vpop.xlane.xlu0 %3178  ;;  %7382 = vmatpush3.bf16.msra.mxu1 %v7966_v60 }
0x1f16   :  { %8077 = vlog2.f32 %v3179_v22  ;;  %7383 = vmatprep.subr.bf16.mxu1 %v9879_v5  ;;  %v2553_v22 = vmul.f32 1.442695, %v2552_v36 }
0x1f19   :  { %v4425_v35 = vpop.xlane.xlu0 %4424 }
0x1f1a   :  { %8079 = vlog2.f32 %v4425_v35  ;;  %v9978_v35 = vld [vmem:[#allocation28_spill] sm:$0xff] }
0x1f1b   :  { %v8074_v7 = vpop.eup %8073 }
0x1f1c   :  { %v690_v52 = vmul.f32 0.6931472, %v8074_v7  ;;  %v9979_v7 = vld [vmem:[#allocation27_spill] sm:$0xff] }
0x1f1d   :  { %v5671_v54 = vpop.xlane.xlu0 %5670 }
0x1f1e   :  { %v691_v44 = vadd.f32 %v690_v52, %v9966_v28  ;;  %8081 = vlog2.f32 %v5671_v54  ;;  %v7967_v28 = vld [vmem:[#allocation7 + $0x28] sm:$0xff]   ;;  %v3798_v52 = vsub.f32 %v9979_v7, %v9978_v35 }
0x1f1f   :  { %v8076_v18 = vpop.eup %8075  ;;  %7384 = vmatpush3.bf16.msra.mxu1 %v7967_v28 }
0x1f20   :  { %v692_v47 = vsub.f32 %v9967_v55, %v691_v44  ;;  %v1935_v45 = vmul.f32 0.6931472, %v8076_v18  ;;  %7385 = vmatprep.subr.bf16.mxu1 %v9879_v5  ;;  %v7968_v55 = vld [vmem:[#allocation7 + $0x20] sm:$0xff]   ;;  %v3799_v54 = vmul.f32 1.442695, %v3798_v52  ;;  %v9980_v44 = vld [vmem:[#allocation31_spill] sm:$0xff] }
0x1f22   :  { %693 = vst [vmem:[#allocation8] sm:$0xff] %v692_v47  ;;  %v1936_v9 = vadd.f32 %v1935_v45, %v9968_v31 }
0x1f23   :  { %v8078_v1 = vpop.eup %8077  ;;  %7386 = vmatpush3.bf16.msra.mxu1 %v7968_v55 }
0x1f24   :  { %v1937_v24 = vsub.f32 %v9969_v27, %v1936_v9  ;;  %v3181_v32 = vmul.f32 0.6931472, %v8078_v1  ;;  %7387 = vmatprep.subr.bf16.mxu1 %v9879_v5 }
0x1f26   :  { %1939 = vst [vmem:[#allocation8 + $0x10] sm:$0xff] %v1937_v24  ;;  %v3182_v51 = vadd.f32 %v3181_v32, %v9970_v50 }
0x1f27   :  { %v8080_v57 = vpop.eup %8079  ;;  %7388 = vmatpush3.bf16.msra.mxu1 %v7969_v38 }
0x1f28   :  { %v3183_v40 = vsub.f32 %v9971_v37, %v3182_v51  ;;  %v4427_v62 = vmul.f32 0.6931472, %v8080_v57  ;;  %7389 = vmatprep.subr.bf16.mxu1 %v9879_v5 }
0x1f2a   :  { %3185 = vst [vmem:[#allocation8 + $0x20] sm:$0xff] %v3183_v40  ;;  %v4428_v0 = vadd.f32 %v4427_v62, %v9972_v53 }
0x1f2b   :  { %v8082_v39 = vpop.eup %8081 }
0x1f2c   :  { %v4429_v59 = vsub.f32 %v9973_v25, %v4428_v0  ;;  %v5673_v23 = vmul.f32 0.6931472, %v8082_v39 }
0x1f2e   :  { %4431 = vst [vmem:[#allocation8 + $0x30] sm:$0xff] %v4429_v59  ;;  %v5674_v14 = vadd.f32 %v5673_v23, %v9710_v11  ;;  %v7971_v11 = vld [vmem:[#allocation7 + $0x8] sm:$0xff]  }
0x1f30   :  { %v5675_v49 = vsub.f32 %v9707_v43, %v5674_v14  ;;  %v7970_v43 = vld [vmem:[#allocation7 + $0x10] sm:$0xff]  }
0x1f31   :  { %7390 = vmatpush3.bf16.msra.mxu1 %v7970_v43 }
0x1f32   :  { %5677 = vst [vmem:[#allocation8 + $0x40] sm:$0xff] %v5675_v49  ;;  %7391 = vmatprep.subr.bf16.mxu1 %v9879_v5 }
0x1f35   :  { %7392 = vmatpush3.bf16.msra.mxu1 %v7971_v11 }
0x1f36   :  { %7393 = vmatprep.subr.bf16.mxu1 %v9879_v5 }
0x1f39   :  { %7394 = vmatpush3.bf16.msra.mxu1 %v7972_v19 }
0x1fd0   :  { %v6100_v31 = vpop.f32.mrf.mxu1  ;;  %v6141_v27 = vpop.f32.mrf.mxu0 }
0x1fd1   :  { %v7099_v56 = vmul.f32 -1.442695, %v6100_v31 }
0x1fd2   :  { %v6102_v46 = vpop.f32.mrf.mxu1  ;;  %v6143_v50 = vpop.f32.mrf.mxu0 }
0x1fd3   :  { %8083 = vpow2.f32 %v7099_v56  ;;  %v7100_v53 = vmul.f32 -1.442695, %v6102_v46 }
0x1fd4   :  { %v6104_v37 = vpop.f32.mrf.mxu1  ;;  %v6145_v33 = vpop.f32.mrf.mxu0 }
0x1fd5   :  { %8085 = vpow2.f32 %v7100_v53 }
0x1fd6   :  { %v6105_v4 = vpop.f32.mrf.mxu1  ;;  %v6146_v30 = vpop.f32.mrf.mxu0 }
0x1fe0   :  { %v8084_v25 = vpop.eup %8083 }
0x1fe1   :  { %v6151_v13 = vadd.f32 1.0, %v8084_v25 }
0x1fe2   :  { %v8086_v41 = vpop.eup %8085 }
0x1fe3   :  { %8087 = vrcp.f32 %v6151_v13  ;;  %v6157_v61 = vadd.f32 1.0, %v8086_v41 }
0x1fe5   :  { %8089 = vrcp.f32 %v6157_v61 }
0x1ff0   :  { %v8088_v15 = vpop.eup %8087 }
0x1ff1   :  { %v6160_v5 = vmul.f32 %v8088_v15, %v6143_v50 }
0x1ff2   :  { %v8090_v48 = vpop.eup %8089 }
0x1ff3   :  { %v6161_v63 = vadd.f32 %v6160_v5, %v6141_v27  ;;  %v6163_v6 = vsub.f32 1.0, %v8090_v48  ;;  %v6165_v34 = vmul.f32 %v8090_v48, %v9666_v10  ;;  %v9981_v10 = vld [vmem:[#allocation30_spill] sm:$0xff] }
0x1ff4   :  { %v5044_v18 = vsub.f32 %v9981_v10, %v9980_v44 }
0x1ff5   :  { %8091 = vtanh.f32 %v6161_v63 }
0x1ff6   :  { %8093 = vpow2.f32 %v1307_v8  ;;  %v5045_v45 = vmul.f32 1.442695, %v5044_v18 }
0x1ff7   :  { %8095 = vpow2.f32 %v2553_v22 }
0x1ff8   :  { %8097 = vpow2.f32 %v3799_v54 }
0x1ff9   :  { %8099 = vpow2.f32 %v5045_v45 }
0x2002   :  { %v8092_v42 = vpop.eup %8091 }
0x2003   :  { %v6164_v26 = vmul.f32 %v8092_v42, %v6163_v6  ;;  %v8094_v32 = vpop.eup %8093 }
0x2004   :  { %v8096_v57 = vpop.eup %8095 }
0x2005   :  { %v6166_v16 = vadd.f32 %v6165_v34, %v6164_v26  ;;  %v8098_v40 = vpop.eup %8097 }
0x2006   :  { %v8100_v62 = vpop.eup %8099 }
0x2007   :  { %v6167_v17 = vpack.c.bf16 %v6166_v16, %v6166_v16  ;;  %6285 = vst [vmem:[#allocation9] sm:$0xff] %v6166_v16 }
0x2009   :  { %7396 = vmatmul.mubr.bf16.vlgmr.msra.gmra.mxu1 %v6167_v17 }
0x20c9   :  { %v6266_v47 = vpop.f32.mrf.mxu1 }
0x20ca   :  { %v9757_v9 = vadd.f32 %v9704_v12, %v6266_v47 }
0x20cb   :  { %v7397_v1 = vpop.f32.mrf.mxu1 }
0x20cc   :  { %6272 = vmax.xlane.f32.xlu1 %v9757_v9 }
0x20cd   :  { %v6269_v24 = vpop.f32.mrf.mxu1 }
0x20cf   :  { %v7398_v51 = vpop.f32.mrf.mxu1 }
0x20d0   :  { %1309 = vadd.xlane.f32.xlu1 %v8094_v32 }
0x20d4   :  { %2555 = vadd.xlane.f32.xlu1 %v8096_v57 }
0x20d8   :  { %3801 = vadd.xlane.f32.xlu1 %v8098_v40 }
0x20dc   :  { %5047 = vadd.xlane.f32.xlu1 %v8100_v62 }
0x2155   :  { %v6273_v0 = vpop.xlane.xlu1 %6272 }
0x2156   :  { %v6274_v39 = vsub.f32 %v9757_v9, %v6273_v0 }
0x2158   :  { %v6275_v59 = vmul.f32 1.442695, %v6274_v39 }
0x2159   :  { %v1310_v12 = vpop.xlane.xlu1 %1309 }
0x215a   :  { %8101 = vpow2.f32 %v6275_v59 }
0x215b   :  { %8103 = vlog2.f32 %v1310_v12 }
0x215d   :  { %v2556_v23 = vpop.xlane.xlu1 %2555 }
0x215e   :  { %8105 = vlog2.f32 %v2556_v23 }
0x2161   :  { %v3802_v14 = vpop.xlane.xlu1 %3801 }
0x2162   :  { %8107 = vlog2.f32 %v3802_v14 }
0x2165   :  { %v5048_v49 = vpop.xlane.xlu1 %5047 }
0x2166   :  { %8109 = vlog2.f32 %v5048_v49 }
0x2167   :  { %v8102_v58 = vpop.eup %8101 }
0x2168   :  { %v8104_v60 = vpop.eup %8103  ;;  %6277 = vadd.xlane.f32.xlu1 %v8102_v58 }
0x2169   :  { %v1312_v28 = vmul.f32 0.6931472, %v8104_v60 }
0x216b   :  { %v8106_v55 = vpop.eup %8105  ;;  %v1313_v38 = vadd.f32 %v1312_v28, %v9974_v29 }
0x216c   :  { %v2558_v43 = vmul.f32 0.6931472, %v8106_v55 }
0x216d   :  { %v1314_v11 = vsub.f32 %v9975_v21, %v1313_v38 }
0x216e   :  { %v2559_v19 = vadd.f32 %v2558_v43, %v9976_v20 }
0x216f   :  { %v8108_v31 = vpop.eup %8107  ;;  %1316 = vst [vmem:[#allocation8 + $0x8] sm:$0xff] %v1314_v11 }
0x2170   :  { %v2560_v27 = vsub.f32 %v9977_v3, %v2559_v19  ;;  %v3804_v56 = vmul.f32 0.6931472, %v8108_v31 }
0x2172   :  { %2562 = vst [vmem:[#allocation8 + $0x18] sm:$0xff] %v2560_v27  ;;  %v3805_v46 = vadd.f32 %v3804_v56, %v9978_v35 }
0x2173   :  { %v8110_v50 = vpop.eup %8109 }
0x2174   :  { %v3806_v37 = vsub.f32 %v9979_v7, %v3805_v46  ;;  %v5050_v33 = vmul.f32 0.6931472, %v8110_v50 }
0x2176   :  { %3808 = vst [vmem:[#allocation8 + $0x28] sm:$0xff] %v3806_v37  ;;  %v5051_v4 = vadd.f32 %v5050_v33, %v9980_v44 }
0x2178   :  { %v5052_v30 = vsub.f32 %v9981_v10, %v5051_v4 }
0x217a   :  { %5054 = vst [vmem:[#allocation8 + $0x38] sm:$0xff] %v5052_v30 }
0x217b   :  { %8214 = shalt.err (!%p8211_p5)
}
0x217c   :  { %6307 = dma.vmem_to_hbm [thread:$0]  %s6305_s15, 128, %s9781_s5, [#allocation10]  }
0x217d   :  { %s8262_s19 = smov [#allocation8]  }
0x217e   :  { %s6291_s20 = sshll.u32 %s8262_s19, 4  ;;  %s6292_s20 = int_to_ptr.vmem [resolvable:$true] %s6291_s20 }
0x217f   :  { %s8223_s21 = scalar_lea.vmem %s6292_s20, 1280  ;;  %p8228_p7 = scmp.lt.s32.totalorder %s6292_s20, %s6292_s20 }
0x2180   :  { %p8224_p6 = scmp.ne.s32.totalorder %s6292_s20, %s8223_s21  ;;  %p8229_p8 = scmp.lt.s32.totalorder %s8223_s21, %s8223_s21 }
0x2182   :  { %p8230_p9 = por %p8229_p8, %p8228_p7 }
0x2184   :  { %p8231_p10 = pnand %p8230_p9, %p8224_p6 }
0x21f1   :  { %v6278_v53 = vpop.xlane.xlu1 %6277 }
0x21f2   :  { %8111 = vlog2.f32 %v6278_v53 }
0x21ff   :  { %v8112_v25 = vpop.eup %8111 }
0x2200   :  { %v6280_v13 = vmul.f32 0.6931472, %v8112_v25 }
0x2202   :  { %v6281_v41 = vadd.f32 %v6280_v13, %v6273_v0 }
0x2204   :  { %v6282_v61 = vsub.f32 %v9757_v9, %v6281_v41 }
0x2206   :  { %6284 = vst [vmem:[#allocation8 + $0x48] sm:$0xff] %v6282_v61 }
0x2207   :  { %8234 = shalt.err (!%p8231_p10)
}
0x2208   :  { %s8263_s22 = smov 128   ;;  %s8264_s5 = smov 8  }
0x2209   :  { %6297 = dma.vmem_to_hbm [thread:$0]  %s6292_s20, 1280, %s9780_s4, [#allocation4], %s8263_s22, %s8263_s22, %s8264_s5  }
0x220a   :  { %8247 = dma.done.wait [#allocation4], 1280  }
0x220b   :  { %8248 = vsyncadd [#allocation4], 4294966016 }
0x220c   :  { %8249 = dma.done.wait [#allocation10], 128  }
0x220d   :  { %8250 = vsyncadd [#allocation10], 4294967168 }
0x220e   :  { %6314 = vsyncpa [#allocation3], 1 }
0x220f   :  { %6315 = vsyncpa [#allocation6], 1 }
0x2210   :  { %6316 = vsyncpa [#allocation4], 1 }
0x2211   :  { %6317 = vsyncpa [#allocation10], 1 }

</bundles_post_ra>
